<compile_context>
chip_gen: v7x
topology: tpu7x:2x2x1
jax: 0.10.0
libtpu: 0.0.40
codegen_flags: <defaults>
</compile_context>

<pallas_src>
import functools

import jax
import jax.numpy as jnp
from jax.experimental import pallas as pl
from jax.experimental.pallas import tpu as pltpu


def _svd_attention_kernel(x_ref, wqkv_ref, wproj_ref, bproj_ref, mask_ref, o_ref,
                          *, num_heads):
    rows, c = x_ref.shape            # rows = Bt * N fused batch rows
    dh = c // num_heads

    # Fused QKV projection: (rows, C) @ (C, 3C) on the MXU, f32 accumulation.
    # wqkv_ref columns are head-major: [q_h | k_h | v_h] per head (scale folded into q).
    qkv = jnp.dot(x_ref[...], wqkv_ref[...],
                  preferred_element_type=jnp.float32).astype(jnp.bfloat16)  # (rows, 3C)

    y_parts = []
    for h in range(num_heads):                                      # static unroll
        base = 3 * h * dh
        qh = qkv[:, base:base + dh]                                 # (rows, Dh)
        kh = qkv[:, base + dh:base + 2 * dh]                        # (rows, Dh)
        vh = qkv[:, base + 2 * dh:base + 3 * dh]                    # (rows, Dh)

        # One flattened score matmul per head over the fused row slab; cross-batch
        # pairs are killed by the block-diagonal additive mask (applied before max).
        s = jax.lax.dot_general(qh, kh, (((1,), (1,)), ((), ())),
                                preferred_element_type=jnp.float32)  # (rows, rows) f32
        s = s + mask_ref[...]
        s = s - jnp.max(s, axis=-1, keepdims=True)
        p = jnp.exp(s)                                               # masked entries -> 0
        inv = pl.reciprocal(jnp.sum(p, axis=-1, keepdims=True), approx=True)
        p = (p * inv).astype(jnp.bfloat16)

        y_parts.append(jnp.dot(p, vh, preferred_element_type=jnp.float32))  # (rows, Dh)

    # Merge heads in registers (single concat), then output projection + bias.
    y = jnp.concatenate(y_parts, axis=-1).astype(jnp.bfloat16)       # (rows, C)
    out = jnp.dot(y, wproj_ref[...],
                  preferred_element_type=jnp.float32) + bproj_ref[...]
    o_ref[...] = out.astype(o_ref.dtype)


def _pick_batch_tile(batch, tokens, target_rows=128):
    """Largest divisor Bt of `batch` with Bt*tokens <= target_rows (at least 1)."""
    best = 1
    for bt in range(1, batch + 1):
        if batch % bt == 0 and bt * tokens <= target_rows:
            best = bt
    return best


def svd_attention_forward(x, w_qkv, w_proj, b_proj, num_heads, *, block_batch=None):
    B, N, C = x.shape
    head_dim = C // num_heads
    scale = head_dim ** -0.5
    out_dtype = x.dtype

    # Host-side weight prep: fold the softmax scale into the q rows (rows 0:C of
    # Wqkv produce q), pre-transpose (kernel does plain x @ W), reorder Wqkv^T
    # columns head-major, and store MXU operands in bf16.
    w_qkv32 = w_qkv.astype(jnp.float32).at[:C, :].multiply(scale)
    wqkv_t = w_qkv32.T                                                # (C, 3C), [q|k|v] blocks
    perm = jnp.asarray([t * C + h * head_dim + d
                        for h in range(num_heads)
                        for t in range(3)
                        for d in range(head_dim)], dtype=jnp.int32)
    wqkv_t = jnp.take(wqkv_t, perm, axis=1).astype(jnp.bfloat16)      # head-major columns
    wproj_t = w_proj.T.astype(jnp.bfloat16)                           # (C, C)
    bproj = b_proj.reshape(1, C).astype(jnp.float32)

    bt = block_batch if block_batch is not None else _pick_batch_tile(B, N)
    assert B % bt == 0, "block_batch must divide the batch size"
    rows = bt * N
    assert rows % 8 == 0 or rows == B * N, "row slab must be sublane-aligned"
    grid_steps = B // bt

    # Block-diagonal additive mask for the fused slab: rows i, j may attend iff they
    # belong to the same batch element (i//N == j//N). Same mask for every grid step.
    ids = jnp.arange(rows, dtype=jnp.int32) // N
    mask = jnp.where(ids[:, None] == ids[None, :], 0.0, -1e30).astype(jnp.float32)

    # Flatten (B, N, C) -> (B*N, C): row-dense activation slab; bt batches per step.
    x2 = x.reshape(B * N, C).astype(jnp.bfloat16)

    kernel = functools.partial(_svd_attention_kernel, num_heads=num_heads)

    flops_per_step = (2 * rows * C * 3 * C                           # qkv projection
                      + num_heads * 4 * rows * rows * head_dim       # scores + PV
                      + 2 * rows * C * C)                            # output projection
    cost = pl.CostEstimate(
        flops=int(grid_steps * flops_per_step),
        transcendentals=int(grid_steps * num_heads * rows * rows),
        bytes_accessed=int(x2.size * 2 + wqkv_t.size * 2 + wproj_t.size * 2
                           + bproj.size * 4 + mask.size * 4
                           + B * N * C * jnp.dtype(out_dtype).itemsize),
    )

    out2 = pl.pallas_call(
        kernel,
        out_shape=jax.ShapeDtypeStruct((B * N, C), out_dtype),
        grid_spec=pltpu.PrefetchScalarGridSpec(
            num_scalar_prefetch=0,
            grid=(grid_steps,),
            in_specs=[
                pl.BlockSpec((rows, C), lambda i: (i, 0)),            # x slab per step
                pl.BlockSpec((C, 3 * C), lambda i: (0, 0)),           # Wqkv^T (resident)
                pl.BlockSpec((C, C), lambda i: (0, 0)),               # Wproj^T (resident)
                pl.BlockSpec((1, C), lambda i: (0, 0)),               # bias (resident)
                pl.BlockSpec((rows, rows), lambda i: (0, 0)),         # block-diag mask (resident)
            ],
            out_specs=pl.BlockSpec((rows, C), lambda i: (i, 0)),
        ),
        compiler_params=pltpu.CompilerParams(dimension_semantics=("parallel",)),
        cost_estimate=cost,
    )(x2, wqkv_t, wproj_t, bproj, mask)

    return out2.reshape(B, N, C)


def _reference_forward(x, w_qkv, w_proj, b_proj, num_heads):
    """Pure-JAX f32 reference mirroring the PyTorch forward (eval mode)."""
    B, N, C = x.shape
    Dh = C // num_heads
    qkv = jnp.einsum('bnc,dc->bnd', x, w_qkv)                        # (B, N, 3C)
    qkv = qkv.reshape(B, N, 3, num_heads, Dh).transpose(2, 0, 3, 1, 4)
    q, k, v = qkv[0], qkv[1], qkv[2]                                 # (B, H, N, Dh)
    attn = jnp.einsum('bhnd,bhmd->bhnm', q * (Dh ** -0.5), k)
    attn = jax.nn.softmax(attn, axis=-1)
    out = jnp.einsum('bhnm,bhmd->bhnd', attn, v)
    out = out.transpose(0, 2, 1, 3).reshape(B, N, C)
    return out @ w_proj.T + b_proj


if __name__ == "__main__":
    # Small shapes consistent with the module: dim=64, num_heads=8 (head_dim=8).
    # B=32, N=8 -> Bt=16 (rows=128) and a 2-step "parallel" grid.
    B, N, C, H = 32, 8, 64, 8

    key = jax.random.PRNGKey(0)
    k_x, k_wqkv, k_wproj, k_bproj = jax.random.split(key, 4)

    x = jax.random.normal(k_x, (B, N, C), dtype=jnp.float32)
    # nn.Linear-style deterministic init (scaled normals).
    w_qkv = jax.random.normal(k_wqkv, (3 * C, C), dtype=jnp.float32) * (C ** -0.5)
    w_proj = jax.random.normal(k_wproj, (C, C), dtype=jnp.float32) * (C ** -0.5)
    b_proj = jax.random.normal(k_bproj, (C,), dtype=jnp.float32) * 0.02

    out = svd_attention_forward(x, w_qkv, w_proj, b_proj, num_heads=H)
    out = jax.block_until_ready(out)

    ref = _reference_forward(x, w_qkv, w_proj, b_proj, num_heads=H)
    assert out.shape == (B, N, C)
    # bf16 MXU operands (f32 accumulation) => ~1e-2-level deviation vs the pure-f32
    # reference is expected; semantic bugs would show up as O(1) errors.
    assert jnp.allclose(out, ref, atol=7.5e-2, rtol=7.5e-2), "mismatch vs reference"

    print("KERNEL_OK")
</pallas_src>

<mosaic_0001>
module attributes {stable_mosaic.version = 11 : i64} {
  func.func @_svd_attention_kernel(%arg0: i32, %arg1: memref<128x64xbf16, #tpu.memory_space<vmem>>, %arg2: memref<64x192xbf16, #tpu.memory_space<vmem>>, %arg3: memref<64x64xbf16, #tpu.memory_space<vmem>>, %arg4: memref<1x64xf32, #tpu.memory_space<vmem>>, %arg5: memref<128x128xf32, #tpu.memory_space<vmem>>, %arg6: memref<128x64xf32, #tpu.memory_space<vmem>>) attributes {dimension_semantics = [#tpu.dimension_semantics<parallel>], iteration_bounds = array<i64: 2>, scalar_prefetch = 0 : i64, scratch_operands = 0 : i64, tpu.core_type = #tpu.core_type<tc>, window_params = [{transform_indices = @transform_0, window_bounds = array<i64: 128, 64>}, {pipeline_mode = #tpu.pipeline_mode<synchronous>, transform_indices = @transform_1, window_bounds = array<i64: 64, 192>}, {pipeline_mode = #tpu.pipeline_mode<synchronous>, transform_indices = @transform_2, window_bounds = array<i64: 64, 64>}, {pipeline_mode = #tpu.pipeline_mode<synchronous>, transform_indices = @transform_3, window_bounds = array<i64: 1, 64>}, {pipeline_mode = #tpu.pipeline_mode<synchronous>, transform_indices = @transform_4, window_bounds = array<i64: 128, 128>}, {transform_indices = @transform_5, window_bounds = array<i64: 128, 64>}]} {
    %c0 = arith.constant 0 : index
    %c0_0 = arith.constant 0 : index
    %0 = vector.load %arg1[%c0, %c0_0] : memref<128x64xbf16, #tpu.memory_space<vmem>>, vector<128x64xbf16>
    %c0_1 = arith.constant 0 : index
    %c0_2 = arith.constant 0 : index
    %1 = vector.load %arg2[%c0_1, %c0_2] : memref<64x192xbf16, #tpu.memory_space<vmem>>, vector<64x192xbf16>
    %cst = arith.constant dense<0.000000e+00> : vector<128x192xf32>
    %2 = tpu.matmul %0, %1, %cst {dimension_numbers = #tpu.dot_dimension_numbers<[1], [0], [0], [1], [0, 0, 1, 1], [], []>} : vector<128x64xbf16>, vector<64x192xbf16>, vector<128x192xf32> -> vector<128x192xf32>
    %3 = arith.truncf %2 : vector<128x192xf32> to vector<128x192xbf16>
    %4 = vector.extract_strided_slice %3 {offsets = [0, 0], sizes = [128, 8], strides = [1, 1]} : vector<128x192xbf16> to vector<128x8xbf16>
    %5 = vector.extract_strided_slice %3 {offsets = [0, 8], sizes = [128, 8], strides = [1, 1]} : vector<128x192xbf16> to vector<128x8xbf16>
    %6 = vector.extract_strided_slice %3 {offsets = [0, 16], sizes = [128, 8], strides = [1, 1]} : vector<128x192xbf16> to vector<128x8xbf16>
    %cst_3 = arith.constant dense<0.000000e+00> : vector<128x128xf32>
    %7 = tpu.matmul %4, %5, %cst_3 {dimension_numbers = #tpu.dot_dimension_numbers<[1], [1], [0], [0], [0, 0, 1, 0], [], []>} : vector<128x8xbf16>, vector<128x8xbf16>, vector<128x128xf32> -> vector<128x128xf32>
    %c0_4 = arith.constant 0 : index
    %c0_5 = arith.constant 0 : index
    %8 = vector.load %arg5[%c0_4, %c0_5] : memref<128x128xf32, #tpu.memory_space<vmem>>, vector<128x128xf32>
    %9 = arith.addf %7, %8 : vector<128x128xf32>
    %cst_6 = arith.constant dense<0xFF800000> : vector<128xf32>
    %10 = vector.multi_reduction <maximumf>, %9, %cst_6 [1] : vector<128x128xf32> to vector<128xf32>
    %11 = vector.shape_cast %10 : vector<128xf32> to vector<128x1xf32>
    %12 = vector.broadcast %11 : vector<128x1xf32> to vector<128x128xf32>
    %13 = arith.subf %9, %12 : vector<128x128xf32>
    %14 = math.exp %13 : vector<128x128xf32>
    %cst_7 = arith.constant dense<0.000000e+00> : vector<128xf32>
    %15 = vector.multi_reduction <add>, %14, %cst_7 [1] : vector<128x128xf32> to vector<128xf32>
    %16 = vector.shape_cast %15 : vector<128xf32> to vector<128x1xf32>
    %17 = tpu.reciprocal %16 {approx = true} : vector<128x1xf32> -> vector<128x1xf32>
    %18 = vector.broadcast %17 : vector<128x1xf32> to vector<128x128xf32>
    %19 = arith.mulf %14, %18 : vector<128x128xf32>
    %20 = arith.truncf %19 : vector<128x128xf32> to vector<128x128xbf16>
    %cst_8 = arith.constant dense<0.000000e+00> : vector<128x8xf32>
    %21 = tpu.matmul %20, %6, %cst_8 {dimension_numbers = #tpu.dot_dimension_numbers<[1], [0], [0], [1], [0, 0, 1, 1], [], []>} : vector<128x128xbf16>, vector<128x8xbf16>, vector<128x8xf32> -> vector<128x8xf32>
    %22 = vector.extract_strided_slice %3 {offsets = [0, 24], sizes = [128, 8], strides = [1, 1]} : vector<128x192xbf16> to vector<128x8xbf16>
    %23 = vector.extract_strided_slice %3 {offsets = [0, 32], sizes = [128, 8], strides = [1, 1]} : vector<128x192xbf16> to vector<128x8xbf16>
    %24 = vector.extract_strided_slice %3 {offsets = [0, 40], sizes = [128, 8], strides = [1, 1]} : vector<128x192xbf16> to vector<128x8xbf16>
    %cst_9 = arith.constant dense<0.000000e+00> : vector<128x128xf32>
    %25 = tpu.matmul %22, %23, %cst_9 {dimension_numbers = #tpu.dot_dimension_numbers<[1], [1], [0], [0], [0, 0, 1, 0], [], []>} : vector<128x8xbf16>, vector<128x8xbf16>, vector<128x128xf32> -> vector<128x128xf32>
    %c0_10 = arith.constant 0 : index
    %c0_11 = arith.constant 0 : index
    %26 = vector.load %arg5[%c0_10, %c0_11] : memref<128x128xf32, #tpu.memory_space<vmem>>, vector<128x128xf32>
    %27 = arith.addf %25, %26 : vector<128x128xf32>
    %cst_12 = arith.constant dense<0xFF800000> : vector<128xf32>
    %28 = vector.multi_reduction <maximumf>, %27, %cst_12 [1] : vector<128x128xf32> to vector<128xf32>
    %29 = vector.shape_cast %28 : vector<128xf32> to vector<128x1xf32>
    %30 = vector.broadcast %29 : vector<128x1xf32> to vector<128x128xf32>
    %31 = arith.subf %27, %30 : vector<128x128xf32>
    %32 = math.exp %31 : vector<128x128xf32>
    %cst_13 = arith.constant dense<0.000000e+00> : vector<128xf32>
    %33 = vector.multi_reduction <add>, %32, %cst_13 [1] : vector<128x128xf32> to vector<128xf32>
    %34 = vector.shape_cast %33 : vector<128xf32> to vector<128x1xf32>
    %35 = tpu.reciprocal %34 {approx = true} : vector<128x1xf32> -> vector<128x1xf32>
    %36 = vector.broadcast %35 : vector<128x1xf32> to vector<128x128xf32>
    %37 = arith.mulf %32, %36 : vector<128x128xf32>
    %38 = arith.truncf %37 : vector<128x128xf32> to vector<128x128xbf16>
    %cst_14 = arith.constant dense<0.000000e+00> : vector<128x8xf32>
    %39 = tpu.matmul %38, %24, %cst_14 {dimension_numbers = #tpu.dot_dimension_numbers<[1], [0], [0], [1], [0, 0, 1, 1], [], []>} : vector<128x128xbf16>, vector<128x8xbf16>, vector<128x8xf32> -> vector<128x8xf32>
    %40 = vector.extract_strided_slice %3 {offsets = [0, 48], sizes = [128, 8], strides = [1, 1]} : vector<128x192xbf16> to vector<128x8xbf16>
    %41 = vector.extract_strided_slice %3 {offsets = [0, 56], sizes = [128, 8], strides = [1, 1]} : vector<128x192xbf16> to vector<128x8xbf16>
    %42 = vector.extract_strided_slice %3 {offsets = [0, 64], sizes = [128, 8], strides = [1, 1]} : vector<128x192xbf16> to vector<128x8xbf16>
    %cst_15 = arith.constant dense<0.000000e+00> : vector<128x128xf32>
    %43 = tpu.matmul %40, %41, %cst_15 {dimension_numbers = #tpu.dot_dimension_numbers<[1], [1], [0], [0], [0, 0, 1, 0], [], []>} : vector<128x8xbf16>, vector<128x8xbf16>, vector<128x128xf32> -> vector<128x128xf32>
    %c0_16 = arith.constant 0 : index
    %c0_17 = arith.constant 0 : index
    %44 = vector.load %arg5[%c0_16, %c0_17] : memref<128x128xf32, #tpu.memory_space<vmem>>, vector<128x128xf32>
    %45 = arith.addf %43, %44 : vector<128x128xf32>
    %cst_18 = arith.constant dense<0xFF800000> : vector<128xf32>
    %46 = vector.multi_reduction <maximumf>, %45, %cst_18 [1] : vector<128x128xf32> to vector<128xf32>
    %47 = vector.shape_cast %46 : vector<128xf32> to vector<128x1xf32>
    %48 = vector.broadcast %47 : vector<128x1xf32> to vector<128x128xf32>
    %49 = arith.subf %45, %48 : vector<128x128xf32>
    %50 = math.exp %49 : vector<128x128xf32>
    %cst_19 = arith.constant dense<0.000000e+00> : vector<128xf32>
    %51 = vector.multi_reduction <add>, %50, %cst_19 [1] : vector<128x128xf32> to vector<128xf32>
    %52 = vector.shape_cast %51 : vector<128xf32> to vector<128x1xf32>
    %53 = tpu.reciprocal %52 {approx = true} : vector<128x1xf32> -> vector<128x1xf32>
    %54 = vector.broadcast %53 : vector<128x1xf32> to vector<128x128xf32>
    %55 = arith.mulf %50, %54 : vector<128x128xf32>
    %56 = arith.truncf %55 : vector<128x128xf32> to vector<128x128xbf16>
    %cst_20 = arith.constant dense<0.000000e+00> : vector<128x8xf32>
    %57 = tpu.matmul %56, %42, %cst_20 {dimension_numbers = #tpu.dot_dimension_numbers<[1], [0], [0], [1], [0, 0, 1, 1], [], []>} : vector<128x128xbf16>, vector<128x8xbf16>, vector<128x8xf32> -> vector<128x8xf32>
    %58 = vector.extract_strided_slice %3 {offsets = [0, 72], sizes = [128, 8], strides = [1, 1]} : vector<128x192xbf16> to vector<128x8xbf16>
    %59 = vector.extract_strided_slice %3 {offsets = [0, 80], sizes = [128, 8], strides = [1, 1]} : vector<128x192xbf16> to vector<128x8xbf16>
    %60 = vector.extract_strided_slice %3 {offsets = [0, 88], sizes = [128, 8], strides = [1, 1]} : vector<128x192xbf16> to vector<128x8xbf16>
    %cst_21 = arith.constant dense<0.000000e+00> : vector<128x128xf32>
    %61 = tpu.matmul %58, %59, %cst_21 {dimension_numbers = #tpu.dot_dimension_numbers<[1], [1], [0], [0], [0, 0, 1, 0], [], []>} : vector<128x8xbf16>, vector<128x8xbf16>, vector<128x128xf32> -> vector<128x128xf32>
    %c0_22 = arith.constant 0 : index
    %c0_23 = arith.constant 0 : index
    %62 = vector.load %arg5[%c0_22, %c0_23] : memref<128x128xf32, #tpu.memory_space<vmem>>, vector<128x128xf32>
    %63 = arith.addf %61, %62 : vector<128x128xf32>
    %cst_24 = arith.constant dense<0xFF800000> : vector<128xf32>
    %64 = vector.multi_reduction <maximumf>, %63, %cst_24 [1] : vector<128x128xf32> to vector<128xf32>
    %65 = vector.shape_cast %64 : vector<128xf32> to vector<128x1xf32>
    %66 = vector.broadcast %65 : vector<128x1xf32> to vector<128x128xf32>
    %67 = arith.subf %63, %66 : vector<128x128xf32>
    %68 = math.exp %67 : vector<128x128xf32>
    %cst_25 = arith.constant dense<0.000000e+00> : vector<128xf32>
    %69 = vector.multi_reduction <add>, %68, %cst_25 [1] : vector<128x128xf32> to vector<128xf32>
    %70 = vector.shape_cast %69 : vector<128xf32> to vector<128x1xf32>
    %71 = tpu.reciprocal %70 {approx = true} : vector<128x1xf32> -> vector<128x1xf32>
    %72 = vector.broadcast %71 : vector<128x1xf32> to vector<128x128xf32>
    %73 = arith.mulf %68, %72 : vector<128x128xf32>
    %74 = arith.truncf %73 : vector<128x128xf32> to vector<128x128xbf16>
    %cst_26 = arith.constant dense<0.000000e+00> : vector<128x8xf32>
    %75 = tpu.matmul %74, %60, %cst_26 {dimension_numbers = #tpu.dot_dimension_numbers<[1], [0], [0], [1], [0, 0, 1, 1], [], []>} : vector<128x128xbf16>, vector<128x8xbf16>, vector<128x8xf32> -> vector<128x8xf32>
    %76 = vector.extract_strided_slice %3 {offsets = [0, 96], sizes = [128, 8], strides = [1, 1]} : vector<128x192xbf16> to vector<128x8xbf16>
    %77 = vector.extract_strided_slice %3 {offsets = [0, 104], sizes = [128, 8], strides = [1, 1]} : vector<128x192xbf16> to vector<128x8xbf16>
    %78 = vector.extract_strided_slice %3 {offsets = [0, 112], sizes = [128, 8], strides = [1, 1]} : vector<128x192xbf16> to vector<128x8xbf16>
    %cst_27 = arith.constant dense<0.000000e+00> : vector<128x128xf32>
    %79 = tpu.matmul %76, %77, %cst_27 {dimension_numbers = #tpu.dot_dimension_numbers<[1], [1], [0], [0], [0, 0, 1, 0], [], []>} : vector<128x8xbf16>, vector<128x8xbf16>, vector<128x128xf32> -> vector<128x128xf32>
    %c0_28 = arith.constant 0 : index
    %c0_29 = arith.constant 0 : index
    %80 = vector.load %arg5[%c0_28, %c0_29] : memref<128x128xf32, #tpu.memory_space<vmem>>, vector<128x128xf32>
    %81 = arith.addf %79, %80 : vector<128x128xf32>
    %cst_30 = arith.constant dense<0xFF800000> : vector<128xf32>
    %82 = vector.multi_reduction <maximumf>, %81, %cst_30 [1] : vector<128x128xf32> to vector<128xf32>
    %83 = vector.shape_cast %82 : vector<128xf32> to vector<128x1xf32>
    %84 = vector.broadcast %83 : vector<128x1xf32> to vector<128x128xf32>
    %85 = arith.subf %81, %84 : vector<128x128xf32>
    %86 = math.exp %85 : vector<128x128xf32>
    %cst_31 = arith.constant dense<0.000000e+00> : vector<128xf32>
    %87 = vector.multi_reduction <add>, %86, %cst_31 [1] : vector<128x128xf32> to vector<128xf32>
    %88 = vector.shape_cast %87 : vector<128xf32> to vector<128x1xf32>
    %89 = tpu.reciprocal %88 {approx = true} : vector<128x1xf32> -> vector<128x1xf32>
    %90 = vector.broadcast %89 : vector<128x1xf32> to vector<128x128xf32>
    %91 = arith.mulf %86, %90 : vector<128x128xf32>
    %92 = arith.truncf %91 : vector<128x128xf32> to vector<128x128xbf16>
    %cst_32 = arith.constant dense<0.000000e+00> : vector<128x8xf32>
    %93 = tpu.matmul %92, %78, %cst_32 {dimension_numbers = #tpu.dot_dimension_numbers<[1], [0], [0], [1], [0, 0, 1, 1], [], []>} : vector<128x128xbf16>, vector<128x8xbf16>, vector<128x8xf32> -> vector<128x8xf32>
    %94 = vector.extract_strided_slice %3 {offsets = [0, 120], sizes = [128, 8], strides = [1, 1]} : vector<128x192xbf16> to vector<128x8xbf16>
    %95 = vector.extract_strided_slice %3 {offsets = [0, 128], sizes = [128, 8], strides = [1, 1]} : vector<128x192xbf16> to vector<128x8xbf16>
    %96 = vector.extract_strided_slice %3 {offsets = [0, 136], sizes = [128, 8], strides = [1, 1]} : vector<128x192xbf16> to vector<128x8xbf16>
    %cst_33 = arith.constant dense<0.000000e+00> : vector<128x128xf32>
    %97 = tpu.matmul %94, %95, %cst_33 {dimension_numbers = #tpu.dot_dimension_numbers<[1], [1], [0], [0], [0, 0, 1, 0], [], []>} : vector<128x8xbf16>, vector<128x8xbf16>, vector<128x128xf32> -> vector<128x128xf32>
    %c0_34 = arith.constant 0 : index
    %c0_35 = arith.constant 0 : index
    %98 = vector.load %arg5[%c0_34, %c0_35] : memref<128x128xf32, #tpu.memory_space<vmem>>, vector<128x128xf32>
    %99 = arith.addf %97, %98 : vector<128x128xf32>
    %cst_36 = arith.constant dense<0xFF800000> : vector<128xf32>
    %100 = vector.multi_reduction <maximumf>, %99, %cst_36 [1] : vector<128x128xf32> to vector<128xf32>
    %101 = vector.shape_cast %100 : vector<128xf32> to vector<128x1xf32>
    %102 = vector.broadcast %101 : vector<128x1xf32> to vector<128x128xf32>
    %103 = arith.subf %99, %102 : vector<128x128xf32>
    %104 = math.exp %103 : vector<128x128xf32>
    %cst_37 = arith.constant dense<0.000000e+00> : vector<128xf32>
    %105 = vector.multi_reduction <add>, %104, %cst_37 [1] : vector<128x128xf32> to vector<128xf32>
    %106 = vector.shape_cast %105 : vector<128xf32> to vector<128x1xf32>
    %107 = tpu.reciprocal %106 {approx = true} : vector<128x1xf32> -> vector<128x1xf32>
    %108 = vector.broadcast %107 : vector<128x1xf32> to vector<128x128xf32>
    %109 = arith.mulf %104, %108 : vector<128x128xf32>
    %110 = arith.truncf %109 : vector<128x128xf32> to vector<128x128xbf16>
    %cst_38 = arith.constant dense<0.000000e+00> : vector<128x8xf32>
    %111 = tpu.matmul %110, %96, %cst_38 {dimension_numbers = #tpu.dot_dimension_numbers<[1], [0], [0], [1], [0, 0, 1, 1], [], []>} : vector<128x128xbf16>, vector<128x8xbf16>, vector<128x8xf32> -> vector<128x8xf32>
    %112 = vector.extract_strided_slice %3 {offsets = [0, 144], sizes = [128, 8], strides = [1, 1]} : vector<128x192xbf16> to vector<128x8xbf16>
    %113 = vector.extract_strided_slice %3 {offsets = [0, 152], sizes = [128, 8], strides = [1, 1]} : vector<128x192xbf16> to vector<128x8xbf16>
    %114 = vector.extract_strided_slice %3 {offsets = [0, 160], sizes = [128, 8], strides = [1, 1]} : vector<128x192xbf16> to vector<128x8xbf16>
    %cst_39 = arith.constant dense<0.000000e+00> : vector<128x128xf32>
    %115 = tpu.matmul %112, %113, %cst_39 {dimension_numbers = #tpu.dot_dimension_numbers<[1], [1], [0], [0], [0, 0, 1, 0], [], []>} : vector<128x8xbf16>, vector<128x8xbf16>, vector<128x128xf32> -> vector<128x128xf32>
    %c0_40 = arith.constant 0 : index
    %c0_41 = arith.constant 0 : index
    %116 = vector.load %arg5[%c0_40, %c0_41] : memref<128x128xf32, #tpu.memory_space<vmem>>, vector<128x128xf32>
    %117 = arith.addf %115, %116 : vector<128x128xf32>
    %cst_42 = arith.constant dense<0xFF800000> : vector<128xf32>
    %118 = vector.multi_reduction <maximumf>, %117, %cst_42 [1] : vector<128x128xf32> to vector<128xf32>
    %119 = vector.shape_cast %118 : vector<128xf32> to vector<128x1xf32>
    %120 = vector.broadcast %119 : vector<128x1xf32> to vector<128x128xf32>
    %121 = arith.subf %117, %120 : vector<128x128xf32>
    %122 = math.exp %121 : vector<128x128xf32>
    %cst_43 = arith.constant dense<0.000000e+00> : vector<128xf32>
    %123 = vector.multi_reduction <add>, %122, %cst_43 [1] : vector<128x128xf32> to vector<128xf32>
    %124 = vector.shape_cast %123 : vector<128xf32> to vector<128x1xf32>
    %125 = tpu.reciprocal %124 {approx = true} : vector<128x1xf32> -> vector<128x1xf32>
    %126 = vector.broadcast %125 : vector<128x1xf32> to vector<128x128xf32>
    %127 = arith.mulf %122, %126 : vector<128x128xf32>
    %128 = arith.truncf %127 : vector<128x128xf32> to vector<128x128xbf16>
    %cst_44 = arith.constant dense<0.000000e+00> : vector<128x8xf32>
    %129 = tpu.matmul %128, %114, %cst_44 {dimension_numbers = #tpu.dot_dimension_numbers<[1], [0], [0], [1], [0, 0, 1, 1], [], []>} : vector<128x128xbf16>, vector<128x8xbf16>, vector<128x8xf32> -> vector<128x8xf32>
    %130 = vector.extract_strided_slice %3 {offsets = [0, 168], sizes = [128, 8], strides = [1, 1]} : vector<128x192xbf16> to vector<128x8xbf16>
    %131 = vector.extract_strided_slice %3 {offsets = [0, 176], sizes = [128, 8], strides = [1, 1]} : vector<128x192xbf16> to vector<128x8xbf16>
    %132 = vector.extract_strided_slice %3 {offsets = [0, 184], sizes = [128, 8], strides = [1, 1]} : vector<128x192xbf16> to vector<128x8xbf16>
    %cst_45 = arith.constant dense<0.000000e+00> : vector<128x128xf32>
    %133 = tpu.matmul %130, %131, %cst_45 {dimension_numbers = #tpu.dot_dimension_numbers<[1], [1], [0], [0], [0, 0, 1, 0], [], []>} : vector<128x8xbf16>, vector<128x8xbf16>, vector<128x128xf32> -> vector<128x128xf32>
    %c0_46 = arith.constant 0 : index
    %c0_47 = arith.constant 0 : index
    %134 = vector.load %arg5[%c0_46, %c0_47] : memref<128x128xf32, #tpu.memory_space<vmem>>, vector<128x128xf32>
    %135 = arith.addf %133, %134 : vector<128x128xf32>
    %cst_48 = arith.constant dense<0xFF800000> : vector<128xf32>
    %136 = vector.multi_reduction <maximumf>, %135, %cst_48 [1] : vector<128x128xf32> to vector<128xf32>
    %137 = vector.shape_cast %136 : vector<128xf32> to vector<128x1xf32>
    %138 = vector.broadcast %137 : vector<128x1xf32> to vector<128x128xf32>
    %139 = arith.subf %135, %138 : vector<128x128xf32>
    %140 = math.exp %139 : vector<128x128xf32>
    %cst_49 = arith.constant dense<0.000000e+00> : vector<128xf32>
    %141 = vector.multi_reduction <add>, %140, %cst_49 [1] : vector<128x128xf32> to vector<128xf32>
    %142 = vector.shape_cast %141 : vector<128xf32> to vector<128x1xf32>
    %143 = tpu.reciprocal %142 {approx = true} : vector<128x1xf32> -> vector<128x1xf32>
    %144 = vector.broadcast %143 : vector<128x1xf32> to vector<128x128xf32>
    %145 = arith.mulf %140, %144 : vector<128x128xf32>
    %146 = arith.truncf %145 : vector<128x128xf32> to vector<128x128xbf16>
    %cst_50 = arith.constant dense<0.000000e+00> : vector<128x8xf32>
    %147 = tpu.matmul %146, %132, %cst_50 {dimension_numbers = #tpu.dot_dimension_numbers<[1], [0], [0], [1], [0, 0, 1, 1], [], []>} : vector<128x128xbf16>, vector<128x8xbf16>, vector<128x8xf32> -> vector<128x8xf32>
    %148 = tpu.concatenate %21, %39, %57, %75, %93, %111, %129, %147 in 1 : vector<128x8xf32>, vector<128x8xf32>, vector<128x8xf32>, vector<128x8xf32>, vector<128x8xf32>, vector<128x8xf32>, vector<128x8xf32>, vector<128x8xf32> -> vector<128x64xf32>
    %149 = arith.truncf %148 : vector<128x64xf32> to vector<128x64xbf16>
    %c0_51 = arith.constant 0 : index
    %c0_52 = arith.constant 0 : index
    %150 = vector.load %arg3[%c0_51, %c0_52] : memref<64x64xbf16, #tpu.memory_space<vmem>>, vector<64x64xbf16>
    %cst_53 = arith.constant dense<0.000000e+00> : vector<128x64xf32>
    %151 = tpu.matmul %149, %150, %cst_53 {dimension_numbers = #tpu.dot_dimension_numbers<[1], [0], [0], [1], [0, 0, 1, 1], [], []>} : vector<128x64xbf16>, vector<64x64xbf16>, vector<128x64xf32> -> vector<128x64xf32>
    %c0_54 = arith.constant 0 : index
    %c0_55 = arith.constant 0 : index
    %152 = vector.load %arg4[%c0_54, %c0_55] : memref<1x64xf32, #tpu.memory_space<vmem>>, vector<1x64xf32>
    %153 = vector.broadcast %152 : vector<1x64xf32> to vector<128x64xf32>
    %154 = arith.addf %151, %153 : vector<128x64xf32>
    %c0_56 = arith.constant 0 : index
    %c0_57 = arith.constant 0 : index
    %155 = vector.load %arg6[%c0_56, %c0_57] : memref<128x64xf32, #tpu.memory_space<vmem>>, vector<128x64xf32>
    tpu.vector_store %arg6[%c0_56, %c0_57], %154 {strides = array<i32>} : memref<128x64xf32, #tpu.memory_space<vmem>>, vector<128x64xf32>,
    return
  }
  func.func @transform_0(%arg0: i32) -> (i32, i32) {
    %c0_i32 = arith.constant 0 : i32
    %c0_i32_0 = arith.constant 0 : i32
    return %arg0, %c0_i32 : i32, i32
  }
  func.func @transform_1(%arg0: i32) -> (i32, i32) {
    %c0_i32 = arith.constant 0 : i32
    %c0_i32_0 = arith.constant 0 : i32
    %c0_i32_1 = arith.constant 0 : i32
    return %c0_i32, %c0_i32_0 : i32, i32
  }
  func.func @transform_2(%arg0: i32) -> (i32, i32) {
    %c0_i32 = arith.constant 0 : i32
    %c0_i32_0 = arith.constant 0 : i32
    %c0_i32_1 = arith.constant 0 : i32
    return %c0_i32, %c0_i32_0 : i32, i32
  }
  func.func @transform_3(%arg0: i32) -> (i32, i32) {
    %c0_i32 = arith.constant 0 : i32
    %c0_i32_0 = arith.constant 0 : i32
    %c0_i32_1 = arith.constant 0 : i32
    return %c0_i32, %c0_i32_0 : i32, i32
  }
  func.func @transform_4(%arg0: i32) -> (i32, i32) {
    %c0_i32 = arith.constant 0 : i32
    %c0_i32_0 = arith.constant 0 : i32
    %c0_i32_1 = arith.constant 0 : i32
    return %c0_i32, %c0_i32_0 : i32, i32
  }
  func.func @transform_5(%arg0: i32) -> (i32, i32) {
    %c0_i32 = arith.constant 0 : i32
    %c0_i32_0 = arith.constant 0 : i32
    return %arg0, %c0_i32 : i32, i32
  }
}

</mosaic_0001>

<bundles_post_ra>
// kernel: tpu_custom_call.1
= control target key start
LH: loop header
LB: loop body
LE: loop exit
PB: predicated region body
PF: predicated region fallthrough
CT: control target
= control target key end

     0   :  { %10 = vsyncpa [#allocation3], 0  ;;  %s6909_s18 = smov 0   ;;  %s9893_s0 = inlined_call_operand.vmem [shape: bf16[256,64], index: 0, kind: input, shape index: {}]   ;;  %s9894_s1 = inlined_call_operand.vmem [shape: bf16[64,192], index: 1, kind: input, shape index: {}]   ;;  %s9895_s2 = inlined_call_operand.hbm [shape: bf16[64,64], index: 2, kind: input, shape index: {}]   ;;  %s9896_s3 = inlined_call_operand.vmem [shape: f32[1,64], index: 3, kind: input, shape index: {}]   ;;  %s9897_s4 = inlined_call_operand.vmem [shape: f32[128,128], index: 4, kind: input, shape index: {}]   ;;  %s9898_s5 = inlined_call_operand.vmem [shape: f32[256,64], index: 5, kind: output, shape index: {}]  }
   0x1 LB: > { %s4921_s19 = sadd.s32 4294967295, %s6858_s18   ;;  %p4923_p0 = scmp.ge.s32.totalorder %s6858_s18, 1  ;;  %s6858_s18 = sphi %s6909_s18, %s16_s18  }
   0x2   : > { %p157_p1 = scmp.lt.s32.totalorder %s6858_s18, 3  ;;  %s6860_s20 = smov [#allocation2]  }
   0x3   : > { %s172_s21 = sshll.u32 %s6860_s20, 4  ;;  %p6923_p3 = scmp.eq.s32.totalorder %s4921_s19, 0  ;;  %s173_s21 = int_to_ptr.vmem [resolvable:$true] %s172_s21 }
   0x4   : > { %p6917_p2 = pnand %p4923_p0, %p157_p1  ;;  %s6820_s27 = scalar_lea.hbm %s9895_s2, 512 }
   0x5   : > { %s9989_s23 = scalar_select %p6923_p3, 1, 0 }
   0x6   : > { %s9988_s22 = scalar_select %p6917_p2, 1, 0 }
   0x7   : > { %p5923_p4 = pneg %p6917_p2  ;;  %p6821_p6 = scmp.ne.s32.totalorder %s9895_s2, %s6820_s27 }
   0x8   : > { %p6827_p10 = scmp.lt.u32.totalorder %s6820_s27, %s9895_s2 }
   0x9   : > { %p6931_p5 = pnand %p6923_p3, %p5923_p4 }
   0xb   : > { %p6822_p7 = pneg %p6931_p5 }
   0xd   : > { %p6823_p8 = pnand %p6822_p7, %p6821_p6 }
   0xf   : > { %p6824_p9 = pneg %p6823_p8 }
  0x11   : > { %p6829_p11 = pnand %p6827_p10, %p6824_p9 }
  0x13   : > { %6832 = shalt.err (!%p6829_p11)
}
  0x14   : > { %s6833_s7 = scalar_lea.vmem %s173_s21, 512  ;;  %p6841_p1 = scmp.lt.s32.totalorder %s173_s21, %s173_s21 }
  0x15   : > { %p6834_p12 = scmp.ne.s32.totalorder %s173_s21, %s6833_s7  ;;  %p6842_p4 = scmp.lt.s32.totalorder %s6833_s7, %s6833_s7 }
  0x17   : > { %p6836_p13 = pnand %p6834_p12, %p6822_p7  ;;  %p6843_p3 = por %p6842_p4, %p6841_p1 }
  0x19   : > { %p6837_p0 = pneg %p6836_p13 }
  0x1b   : > { %p6844_p2 = pnand %p6843_p3, %p6837_p0 }
  0x1d   : > { %6847 = shalt.err (!%p6844_p2)
}
  0x1e   : > { %s6861_s8 = smov 64   ;;  %s6862_s9 = smov 4  }
  0x1f   : > { %5926 = dma.hbm_to_vmem [thread:$0]  (!%p6931_p5), %s9895_s2, 512, %s173_s21, [#allocation3], %s6861_s8, %s6861_s8, %s6862_s9  }
  0x20   : > { %p9991_p6 = scmp.ne.s32.totalorder %s9988_s22, 0 }
  0x22   : > { %203 = sbr.rel (%p9991_p6) target bundleno = 5652 (0x1614), region = 40 }
  0x29   : > { %p9992_p8 = scmp.ne.s32.totalorder %s9989_s23, 0 }
  0x2b   : > { %6853 = dma.done.wait (%p9992_p8), [#allocation3], 512  }
  0x2c   : > { %6855 = vsyncadd (%p9992_p8), [#allocation3], 4294966784  ;;  %s4928_s12 = sshll.u32 %s4921_s19, 4  ;;  %v6863_v0 = vmov 0   ;;  %v6236_v1 = vld [vmem:[%s9894_s1 + $0x4] ss:$8 sps:$4 sm:$0xff]  }
  0x2d   : > { %405 = vmatprep.mubr.bf16.mxu0 %v6863_v0  ;;  %p232_p2 = scmp.lt.s32.totalorder %s4928_s12, 31  ;;  %v6238_v2 = vld [vmem:[%s9894_s1] ss:$8 sps:$4 sm:$0xff]   ;;  %373 = vmatprep.subr.bf16.mxu0 %v6236_v1  ;;  %v6239_v3 = vld [vmem:[%s9894_s1 + $0x14] ss:$8 sps:$4 sm:$0xff]   ;;  %vm348_vm0 = vcmask 523264  }
  0x2e   : > { %374 = vmatpush1.bf16.msra.mxu0 %v6238_v2  ;;  %v6241_v4 = vld [vmem:[%s9894_s1 + $0x10] ss:$8 sps:$4 sm:$0xff]   ;;  %v6242_v5 = vld [vmem:[%s9894_s1 + $0x24] ss:$8 sps:$4 sm:$0xff]   ;;  %v6244_v6 = vld [vmem:[%s9894_s1 + $0x20] ss:$8 sps:$4 sm:$0xff]  }
  0x2f   : > { %s10238_s12 = smov (!%p232_p2, %s4928_s12), 31  ;;  %375 = vmatprep.subr.bf16.mxu0 %v6239_v3  ;;  %v6245_v7 = vld [vmem:[%s9894_s1 + $0x34] ss:$8 sps:$4 sm:$0xff]   ;;  %v6247_v8 = vld [vmem:[%s9894_s1 + $0x30] ss:$8 sps:$4 sm:$0xff]   ;;  %vm542_vm1 = vcmask 64512  }
  0x30   : > { %s4929_s17 = sshll.u32 %s10238_s12, 2  ;;  %s6864_s9 = smov 120   ;;  %vm4567_vm2 = vcmask 130048   ;;  %vm4584_vm3 = vcmask 195584   ;;  %vm4601_vm4 = vcmask 261120   ;;  %vm4618_vm5 = vcmask 326656  }
  0x31   : > { %s6980_s27 = scalar_lea.vmem %s9893_s0, %s4929_s17  ;;  %s6865_s10 = smov 96   ;;  %vm4635_vm6 = vcmask 392192   ;;  %vm4652_vm7 = vcmask 457728  }
  0x32   : > { %376 = vmatpush1.bf16.msra.mxu0 %v6241_v4  ;;  %v6248_v9 = vld [vmem:[%s6980_s27] sm:$0xff]   ;;  %v6249_v10 = vld [vmem:[%s6980_s27 + $0x8] sm:$0xff]   ;;  %v6250_v11 = vld [vmem:[%s6980_s27 + $0x10] sm:$0xff]   ;;  %s6866_s11 = smov 104   ;;  %s6867_s13 = smov 112  }
  0x33   : > { %377 = vmatprep.subr.bf16.mxu0 %v6242_v5  ;;  %v6251_v12 = vld [vmem:[%s6980_s27 + $0x18] sm:$0xff]   ;;  %v6252_v13 = vld [vmem:[%s6980_s27 + $0x20] sm:$0xff]   ;;  %v6253_v14 = vld [vmem:[%s6980_s27 + $0x28] sm:$0xff]   ;;  %s6868_s14 = smov 88   ;;  %s6869_s15 = smov 72  }
  0x34   : > { %v6254_v15 = vld [vmem:[%s6980_s27 + $0x30] sm:$0xff]   ;;  %v6255_v16 = vld [vmem:[%s6980_s27 + $0x38] sm:$0xff]   ;;  %s6870_s7 = smov 80   ;;  %s6871_s8 = smov 64  }
  0x35   : > { %s6872_s23 = smov 48   ;;  %s6873_s20 = smov 56  }
  0x36   : > { %378 = vmatpush1.bf16.msra.mxu0 %v6244_v6  ;;  %s6874_s21 = smov 40   ;;  %s6875_s19 = smov 24  }
  0x37   : > { %379 = vmatprep.subr.bf16.mxu0 %v6245_v7  ;;  %s6876_s22 = smov 32   ;;  %s6877_s24 = smov 16  }
  0x38   : > { %s6878_s27 = smov 8  }
  0x3a   : > { %380 = vmatpush1.bf16.msra.mxu0 %v6247_v8 }
  0x3d   : > { %4948 = vmatmul.mubr.msk.bf16.vlgmr.msra.gmra.mrb[0].mxu0 %vm348_vm0, %v6248_v9 }
  0x3e   : > { %415 = vmatprep.mubr.bf16.mxu0 %v6863_v0 }
  0x45   : > { %4949 = vmatmul.mubr.msk.bf16.gmra.mrb[4].mxu0 %vm348_vm0, %v6249_v10 }
  0x46   : > { %425 = vmatprep.mubr.bf16.mxu0 %v6863_v0 }
  0x4d   : > { %4950 = vmatmul.mubr.msk.bf16.gmra.mrb[8].mxu0 %vm348_vm0, %v6250_v11 }
  0x4e   : > { %435 = vmatprep.mubr.bf16.mxu0 %v6863_v0 }
  0x55   : > { %4951 = vmatmul.mubr.msk.bf16.gmra.mrb[12].mxu0 %vm348_vm0, %v6251_v12 }
  0x56   : > { %445 = vmatprep.mubr.bf16.mxu0 %v6863_v0 }
  0x5d   : > { %4952 = vmatmul.mubr.msk.bf16.gmra.mrb[16].mxu0 %vm348_vm0, %v6252_v13 }
  0x5e   : > { %455 = vmatprep.mubr.bf16.mxu0 %v6863_v0 }
  0x65   : > { %4953 = vmatmul.mubr.msk.bf16.gmra.mrb[20].mxu0 %vm348_vm0, %v6253_v14 }
  0x66   : > { %465 = vmatprep.mubr.bf16.mxu0 %v6863_v0 }
  0x6d   : > { %4954 = vmatmul.mubr.msk.bf16.gmra.mrb[24].mxu0 %vm348_vm0, %v6254_v15 }
  0x6e   : > { %475 = vmatprep.mubr.bf16.mxu0 %v6863_v0 }
  0x75   : > { %4955 = vmatmul.mubr.msk.bf16.gmra.mrb[28].mxu0 %vm348_vm0, %v6255_v16 }
 0x110   : > { %v407_v17 = vpop.f32.mrb[0].mxu0 }
 0x111   : > { %v409_v18 = vpop.f32.mrb[1].mxu0 }
 0x112   : > { %v411_v19 = vpop.f32.mrb[2].mxu0 }
 0x113   : > { %v7007_v20 = vpack.c.bf16 %v411_v19, %v407_v17  ;;  %v413_v21 = vpop.f32.mrb[3].mxu0 }
 0x114   : > { %v7009_v22 = vpack.c.bf16 %v413_v21, %v409_v18 }
 0x115   : > { %526 = vrot.lane.b32.xlu0 %v7007_v20, %s6864_s9  ;;  %5319 = vmatprep.mubr.msk.bf16.mxu1 %vm542_vm1, %v7007_v20 }
 0x116   : > { %9993 = vst [vmem:[#allocation5_spill] sm:$0xff] %v7009_v22 }
 0x118   : > { %v417_v23 = vpop.f32.mrb[4].mxu0 }
 0x119   : > { %v419_v24 = vpop.f32.mrb[5].mxu0 }
 0x11a   : > { %v421_v25 = vpop.f32.mrb[6].mxu0 }
 0x11b   : > { %v7015_v26 = vpack.c.bf16 %v421_v25, %v417_v23  ;;  %v423_v27 = vpop.f32.mrb[7].mxu0 }
 0x11c   : > { %v7017_v28 = vpack.c.bf16 %v423_v27, %v419_v24 }
 0x11d   : > { %528 = vrot.lane.b32.xlu0 %v7015_v26, %s6864_s9 }
 0x11e   : > { %9994 = vst [vmem:[#allocation6_spill] sm:$0xff] %v7017_v28 }
 0x120   : > { %v427_v29 = vpop.f32.mrb[8].mxu0 }
 0x121   : > { %v429_v30 = vpop.f32.mrb[9].mxu0 }
 0x122   : > { %v431_v31 = vpop.f32.mrb[10].mxu0 }
 0x123   : > { %v7021_v32 = vpack.c.bf16 %v431_v31, %v427_v29  ;;  %v433_v33 = vpop.f32.mrb[11].mxu0 }
 0x124   : > { %v7023_v34 = vpack.c.bf16 %v433_v33, %v429_v30 }
 0x125   : > { %530 = vrot.lane.b32.xlu1 %v7021_v32, %s6864_s9 }
 0x126   : > { %9995 = vst [vmem:[#allocation7_spill] sm:$0xff] %v7023_v34 }
 0x128   : > { %v437_v35 = vpop.f32.mrb[12].mxu0 }
 0x129   : > { %v439_v36 = vpop.f32.mrb[13].mxu0 }
 0x12a   : > { %v441_v37 = vpop.f32.mrb[14].mxu0 }
 0x12b   : > { %v7027_v38 = vpack.c.bf16 %v441_v37, %v437_v35  ;;  %v443_v39 = vpop.f32.mrb[15].mxu0 }
 0x12c   : > { %v7029_v40 = vpack.c.bf16 %v443_v39, %v439_v36 }
 0x12d   : > { %532 = vrot.lane.b32.xlu1 %v7027_v38, %s6864_s9 }
 0x12e   : > { %9996 = vst [vmem:[#allocation8_spill] sm:$0xff] %v7029_v40 }
 0x130   : > { %v447_v41 = vpop.f32.mrb[16].mxu0 }
 0x131   : > { %v449_v42 = vpop.f32.mrb[17].mxu0 }
 0x132   : > { %v451_v43 = vpop.f32.mrb[18].mxu0 }
 0x133   : > { %v7033_v44 = vpack.c.bf16 %v451_v43, %v447_v41  ;;  %v453_v45 = vpop.f32.mrb[19].mxu0 }
 0x134   : > { %v7035_v46 = vpack.c.bf16 %v453_v45, %v449_v42 }
 0x135   : > { %534 = vrot.lane.b32.xlu0 %v7033_v44, %s6864_s9 }
 0x136   : > { %9997 = vst [vmem:[#allocation9_spill] sm:$0xff] %v7035_v46 }
 0x138   : > { %v457_v47 = vpop.f32.mrb[20].mxu0 }
 0x139   : > { %v459_v48 = vpop.f32.mrb[21].mxu0 }
 0x13a   : > { %v461_v49 = vpop.f32.mrb[22].mxu0 }
 0x13b   : > { %v7039_v50 = vpack.c.bf16 %v461_v49, %v457_v47  ;;  %v463_v51 = vpop.f32.mrb[23].mxu0 }
 0x13c   : > { %v7041_v52 = vpack.c.bf16 %v463_v51, %v459_v48 }
 0x13d   : > { %536 = vrot.lane.b32.xlu1 %v7039_v50, %s6864_s9 }
 0x13e   : > { %9998 = vst [vmem:[#allocation10_spill] sm:$0xff] %v7041_v52 }
 0x140   : > { %v467_v53 = vpop.f32.mrb[24].mxu0 }
 0x141   : > { %v469_v54 = vpop.f32.mrb[25].mxu0 }
 0x142   : > { %v471_v55 = vpop.f32.mrb[26].mxu0 }
 0x143   : > { %v7045_v56 = vpack.c.bf16 %v471_v55, %v467_v53  ;;  %v473_v57 = vpop.f32.mrb[27].mxu0 }
 0x144   : > { %v7047_v58 = vpack.c.bf16 %v473_v57, %v469_v54 }
 0x145   : > { %538 = vrot.lane.b32.xlu0 %v7045_v56, %s6864_s9 }
 0x146   : > { %9999 = vst [vmem:[#allocation11_spill] sm:$0xff] %v7047_v58 }
 0x148   : > { %v477_v59 = vpop.f32.mrb[28].mxu0 }
 0x149   : > { %977 = vrot.lane.b32.xlu0 %v7007_v20, %s6865_s10  ;;  %v479_v60 = vpop.f32.mrb[29].mxu0 }
 0x14a   : > { %v481_v61 = vpop.f32.mrb[30].mxu0 }
 0x14b   : > { %v7053_v62 = vpack.c.bf16 %v481_v61, %v477_v59  ;;  %v483_v63 = vpop.f32.mrb[31].mxu0 }
 0x14c   : > { %v7055_v0 = vpack.c.bf16 %v483_v63, %v479_v60 }
 0x14d   : > { %981 = vrot.lane.b32.xlu0 %v7021_v32, %s6865_s10  ;;  %540 = vrot.lane.b32.xlu1 %v7053_v62, %s6864_s9 }
 0x14e   : > { %10000 = vst [vmem:[#allocation12_spill] sm:$0xff] %v7055_v0 }
 0x151   : > { %985 = vrot.lane.b32.xlu0 %v7033_v44, %s6865_s10  ;;  %979 = vrot.lane.b32.xlu1 %v7015_v26, %s6865_s10 }
 0x155   : > { %989 = vrot.lane.b32.xlu0 %v7045_v56, %s6865_s10  ;;  %983 = vrot.lane.b32.xlu1 %v7027_v38, %s6865_s10 }
 0x159   : > { %961 = vrot.lane.b32.xlu0 %v7007_v20, %s6866_s11  ;;  %987 = vrot.lane.b32.xlu1 %v7039_v50, %s6865_s10 }
 0x15d   : > { %965 = vrot.lane.b32.xlu0 %v7021_v32, %s6866_s11  ;;  %991 = vrot.lane.b32.xlu1 %v7053_v62, %s6865_s10 }
 0x161   : > { %969 = vrot.lane.b32.xlu0 %v7033_v44, %s6866_s11  ;;  %963 = vrot.lane.b32.xlu1 %v7015_v26, %s6866_s11 }
 0x165   : > { %973 = vrot.lane.b32.xlu0 %v7045_v56, %s6866_s11  ;;  %967 = vrot.lane.b32.xlu1 %v7027_v38, %s6866_s11 }
 0x169   : > { %842 = vrot.lane.b32.xlu0 %v7015_v26, %s6867_s13  ;;  %971 = vrot.lane.b32.xlu1 %v7039_v50, %s6866_s11 }
 0x16d   : > { %844 = vrot.lane.b32.xlu0 %v7021_v32, %s6867_s13  ;;  %975 = vrot.lane.b32.xlu1 %v7053_v62, %s6866_s11 }
 0x171   : > { %848 = vrot.lane.b32.xlu0 %v7033_v44, %s6867_s13  ;;  %840 = vrot.lane.b32.xlu1 %v7007_v20, %s6867_s13 }
 0x175   : > { %852 = vrot.lane.b32.xlu0 %v7045_v56, %s6867_s13  ;;  %846 = vrot.lane.b32.xlu1 %v7027_v38, %s6867_s13 }
 0x179   : > { %1290 = vrot.lane.b32.xlu0 %v7007_v20, %s6868_s14  ;;  %850 = vrot.lane.b32.xlu1 %v7039_v50, %s6867_s13 }
 0x17d   : > { %1294 = vrot.lane.b32.xlu0 %v7021_v32, %s6868_s14  ;;  %1292 = vrot.lane.b32.xlu1 %v7015_v26, %s6868_s14 }
 0x181   : > { %1302 = vrot.lane.b32.xlu0 %v7045_v56, %s6868_s14  ;;  %1296 = vrot.lane.b32.xlu1 %v7027_v38, %s6868_s14 }
 0x185   : > { %1298 = vrot.lane.b32.xlu1 %v7033_v44, %s6868_s14 }
 0x187   : > { %v527_v1 = vpop.permute.xlu0 %526 }
 0x188   : > { %5855 = vmatprep.subr.msk.bf16.mxu1 %vm542_vm1, %v527_v1  ;;  %v568_v2 = vsel %vm542_vm1, %v527_v1, 0 }
 0x189   : > { %5304 = vmatpush3.bf16.xpose.msra.mxu1 %v568_v2  ;;  %1300 = vrot.lane.b32.xlu1 %v7039_v50, %s6868_s14 }
 0x18d   : > { %1427 = vrot.lane.b32.xlu1 %v7007_v20, %s6869_s15 }
 0x18f   : > { %v529_v3 = vpop.permute.xlu0 %528 }
 0x190   : > { %5856 = vmatprep.subr.msk.bf16.mxu1 %vm542_vm1, %v529_v3  ;;  %v571_v4 = vsel %vm542_vm1, %v529_v3, 0 }
 0x191   : > { %5306 = vmatpush3.bf16.xpose.msra.mxu1 %v571_v4  ;;  %1429 = vrot.lane.b32.xlu1 %v7015_v26, %s6869_s15 }
 0x195   : > { %854 = vrot.lane.b32.xlu1 %v7053_v62, %s6867_s13 }
 0x197   : > { %v531_v5 = vpop.permute.xlu1 %530 }
 0x198   : > { %5857 = vmatprep.subr.msk.bf16.mxu1 %vm542_vm1, %v531_v5  ;;  %v574_v6 = vsel %vm542_vm1, %v531_v5, 0 }
 0x199   : > { %5308 = vmatpush3.bf16.xpose.msra.mxu1 %v574_v6  ;;  %1304 = vrot.lane.b32.xlu1 %v7053_v62, %s6868_s14 }
 0x19f   : > { %v533_v7 = vpop.permute.xlu1 %532 }
 0x1a0   : > { %5858 = vmatprep.subr.msk.bf16.mxu1 %vm542_vm1, %v533_v7  ;;  %v577_v8 = vsel %vm542_vm1, %v533_v7, 0 }
 0x1a1   : > { %5310 = vmatpush3.bf16.xpose.msra.mxu1 %v577_v8  ;;  %v7200_v8 = vld [vmem:[%s9897_s4 + $0x10] sm:$0xff] }
 0x1a7   : > { %v535_v9 = vpop.permute.xlu0 %534 }
 0x1a8   : > { %5859 = vmatprep.subr.msk.bf16.mxu1 %vm542_vm1, %v535_v9  ;;  %v580_v10 = vsel %vm542_vm1, %v535_v9, 0 }
 0x1a9   : > { %5312 = vmatpush3.bf16.xpose.msra.mxu1 %v580_v10 }
 0x1af   : > { %v537_v11 = vpop.permute.xlu1 %536 }
 0x1b0   : > { %5860 = vmatprep.subr.msk.bf16.mxu1 %vm542_vm1, %v537_v11  ;;  %v583_v12 = vsel %vm542_vm1, %v537_v11, 0 }
 0x1b1   : > { %5314 = vmatpush3.bf16.xpose.msra.mxu1 %v583_v12  ;;  %v7208_v12 = vld [vmem:[%s9897_s4 + $0x8] sm:$0xff] }
 0x1b7   : > { %v539_v13 = vpop.permute.xlu0 %538 }
 0x1b8   : > { %5861 = vmatprep.subr.msk.bf16.mxu1 %vm542_vm1, %v539_v13  ;;  %v586_v14 = vsel %vm542_vm1, %v539_v13, 0  ;;  %v7213_v13 = vld [vmem:[%s9897_s4] sm:$0xff] }
 0x1b9   : > { %5316 = vmatpush3.bf16.xpose.msra.mxu1 %v586_v14 }
 0x1bb   : > { %v978_v15 = vpop.permute.xlu0 %977 }
 0x1bc   : > { %v1018_v25 = vsel %vm542_vm1, %v978_v15, 0 }
 0x1bf   : > { %v982_v16 = vpop.permute.xlu0 %981  ;;  %v541_v17 = vpop.permute.xlu1 %540 }
 0x1c0   : > { %5862 = vmatprep.subr.msk.bf16.mxu1 %vm542_vm1, %v541_v17  ;;  %v589_v18 = vsel %vm542_vm1, %v541_v17, 0  ;;  %v1024_v39 = vsel %vm542_vm1, %v982_v16, 0 }
 0x1c1   : > { %5318 = vmatpush3.bf16.xpose.msra.mxu1 %v589_v18  ;;  %v505_v18 = vld [vmem:[%s9897_s4 + $0x18] sm:$0xff] }
 0x1c2   : > { %5863 = vmatprep.subr.msk.bf16.mxu1 %vm542_vm1, %v978_v15 }
 0x1c3   : > { %v986_v19 = vpop.permute.xlu0 %985  ;;  %v980_v21 = vpop.permute.xlu1 %979 }
 0x1c4   : > { %v1021_v31 = vsel %vm542_vm1, %v980_v21, 0  ;;  %v1030_v51 = vsel %vm542_vm1, %v986_v19, 0 }
 0x1c7   : > { %v990_v23 = vpop.permute.xlu0 %989  ;;  %v984_v24 = vpop.permute.xlu1 %983 }
 0x1c8   : > { %5320 = vmatmul.mubr.msk.bf16.vlgmr.msra.gmra.mrb[0].mxu1 %vm542_vm1, %v7015_v26  ;;  %v1027_v45 = vsel %vm542_vm1, %v984_v24, 0  ;;  %v1036_v63 = vsel %vm542_vm1, %v990_v23, 0 }
 0x1c9   : > { %5323 = vmatprep.mubr.msk.bf16.mxu1 %vm542_vm1, %v7021_v32  ;;  %5368 = vmatpush3.bf16.xpose.msra.mxu1 %v1018_v25 }
 0x1ca   : > { %5864 = vmatprep.subr.msk.bf16.mxu1 %vm542_vm1, %v980_v21 }
 0x1cb   : > { %v962_v27 = vpop.permute.xlu0 %961  ;;  %v988_v29 = vpop.permute.xlu1 %987 }
 0x1cc   : > { %v1033_v57 = vsel %vm542_vm1, %v988_v29, 0 }
 0x1cf   : > { %v992_v30 = vpop.permute.xlu1 %991  ;;  %v7151_v33 = vpop.permute.xlu0 %965 }
 0x1d0   : > { %5324 = vmatmul.mubr.msk.bf16.gmra.mrb[4].mxu1 %vm542_vm1, %v7027_v38  ;;  %v1039_v4 = vsel %vm542_vm1, %v992_v30, 0 }
 0x1d1   : > { %5327 = vmatprep.mubr.msk.bf16.mxu1 %vm542_vm1, %v7033_v44  ;;  %5370 = vmatpush3.bf16.xpose.msra.mxu1 %v1021_v31 }
 0x1d2   : > { %5865 = vmatprep.subr.msk.bf16.mxu1 %vm542_vm1, %v982_v16 }
 0x1d3   : > { %v964_v35 = vpop.permute.xlu1 %963  ;;  %v970_v36 = vpop.permute.xlu0 %969 }
 0x1d7   : > { %v968_v37 = vpop.permute.xlu1 %967  ;;  %v974_v42 = vpop.permute.xlu0 %973 }
 0x1d8   : > { %5328 = vmatmul.mubr.msk.bf16.gmra.mrb[8].mxu1 %vm542_vm1, %v7039_v50 }
 0x1d9   : > { %5331 = vmatprep.mubr.msk.bf16.mxu1 %vm542_vm1, %v7045_v56  ;;  %5372 = vmatpush3.bf16.xpose.msra.mxu1 %v1024_v39 }
 0x1da   : > { %5866 = vmatprep.subr.msk.bf16.mxu1 %vm542_vm1, %v984_v24 }
 0x1db   : > { %v972_v41 = vpop.permute.xlu1 %971  ;;  %v843_v47 = vpop.permute.xlu0 %842 }
 0x1df   : > { %v976_v43 = vpop.permute.xlu1 %975  ;;  %v845_v53 = vpop.permute.xlu0 %844 }
 0x1e0   : > { %5332 = vmatmul.mubr.msk.bf16.gmra.mrb[12].mxu1 %vm542_vm1, %v7053_v62 }
 0x1e1   : > { %5374 = vmatpush3.bf16.xpose.msra.mxu1 %v1027_v45  ;;  %5383 = vmatprep.mubr.msk.bf16.mxu1 %vm542_vm1, %v962_v27  ;;  %v7240_v27 = vld [vmem:[%s9897_s4 + $0x20] sm:$0xff] }
 0x1e2   : > { %5867 = vmatprep.subr.msk.bf16.mxu1 %vm542_vm1, %v986_v19  ;;  %v7229_v19 = vld [vmem:[%s9897_s4 + $0x30] sm:$0xff]  ;;  %v510_v45 = vld [vmem:[%s9897_s4 + $0x40] sm:$0xff] }
 0x1e3   : > { %v841_v48 = vpop.permute.xlu1 %840  ;;  %v849_v59 = vpop.permute.xlu0 %848 }
 0x1e4   : > { %5335 = vmatprep.subr.bf16.mxu0 %v841_v48 }
 0x1e5   : > { %5336 = vmatpush3.bf16.msra.mxu0 %v841_v48 }
 0x1e6   : > { %5337 = vmatprep.subr.bf16.mxu0 %v843_v47 }
 0x1e7   : > { %v847_v49 = vpop.permute.xlu1 %846  ;;  %v853_v1 = vpop.permute.xlu0 %852 }
 0x1e9   : > { %5338 = vmatpush3.bf16.msra.mxu0 %v843_v47  ;;  %5376 = vmatpush3.bf16.xpose.msra.mxu1 %v1030_v51  ;;  %v513_v47 = vld [vmem:[%s9897_s4 + $0x58] sm:$0xff] }
 0x1ea   : > { %5339 = vmatprep.subr.bf16.mxu0 %v845_v53  ;;  %5868 = vmatprep.subr.msk.bf16.mxu1 %vm542_vm1, %v988_v29  ;;  %v509_v29 = vld [vmem:[%s9897_s4 + $0x38] sm:$0xff] }
 0x1eb   : > { %v851_v54 = vpop.permute.xlu1 %850  ;;  %v7187_v7 = vpop.permute.xlu0 %1290 }
 0x1ed   : > { %5340 = vmatpush3.bf16.msra.mxu0 %v845_v53 }
 0x1ee   : > { %5341 = vmatprep.subr.bf16.mxu0 %v847_v49 }
 0x1ef   : > { %v7169_v55 = vpop.permute.xlu1 %1292 }
 0x1f1   : > { %5342 = vmatpush3.bf16.msra.mxu0 %v847_v49  ;;  %5378 = vmatpush3.bf16.xpose.msra.mxu1 %v1033_v57  ;;  %v7282_v57 = vld [vmem:[%s9897_s4 + $0x70] sm:$0xff] }
 0x1f2   : > { %5343 = vmatprep.subr.bf16.mxu0 %v849_v59  ;;  %5869 = vmatprep.subr.msk.bf16.mxu1 %vm542_vm1, %v990_v23 }
 0x1f3   : > { %v7173_v60 = vpop.permute.xlu1 %1296 }
 0x1f5   : > { %5344 = vmatpush3.bf16.msra.mxu0 %v849_v59 }
 0x1f6   : > { %5345 = vmatprep.subr.bf16.mxu0 %v851_v54 }
 0x1f7   : > { %v7175_v61 = vpop.permute.xlu1 %1298 }
 0x1f9   : > { %5346 = vmatpush3.bf16.msra.mxu0 %v851_v54  ;;  %5380 = vmatpush3.bf16.xpose.msra.mxu1 %v1036_v63  ;;  %v511_v54 = vld [vmem:[%s9897_s4 + $0x48] sm:$0xff] }
 0x1fa   : > { %5347 = vmatprep.subr.bf16.mxu0 %v853_v1  ;;  %5870 = vmatprep.subr.msk.bf16.mxu1 %vm542_vm1, %v992_v30 }
 0x1fb   : > { %v7179_v2 = vpop.permute.xlu1 %1300 }
 0x1fd   : > { %5348 = vmatpush3.bf16.msra.mxu0 %v853_v1 }
 0x1ff   : > { %v7181_v3 = vpop.permute.xlu1 %1427 }
 0x201   : > { %5382 = vmatpush3.bf16.xpose.msra.mxu1 %v1039_v4 }
 0x203   : > { %v7184_v5 = vpop.permute.xlu1 %1429 }
 0x204   : > { %10001 = vst [vmem:[#allocation13_spill] sm:$0xff] %v7184_v5 }
 0x207   : > { %v855_v6 = vpop.permute.xlu1 %854 }
 0x208   : > { %5349 = vmatprep.subr.bf16.mxu0 %v855_v6  ;;  %5384 = vmatmul.mubr.msk.bf16.vlgmr.msra.gmra.mrb[16].mxu1 %vm542_vm1, %v964_v35 }
 0x209   : > { %5350 = vmatpush3.bf16.msra.mxu0 %v855_v6  ;;  %5387 = vmatprep.mubr.msk.bf16.mxu1 %vm542_vm1, %v7151_v33  ;;  %v514_v6 = vld [vmem:[%s9897_s4 + $0x60] sm:$0xff] }
 0x20a   : > { %5399 = vmatprep.subr.bf16.mxu0 %v7187_v7 }
 0x210   : > { %5388 = vmatmul.mubr.msk.bf16.gmra.mrb[20].mxu1 %vm542_vm1, %v968_v37  ;;  %v512_v37 = vld [vmem:[%s9897_s4 + $0x50] sm:$0xff] }
 0x211   : > { %5391 = vmatprep.mubr.msk.bf16.mxu1 %vm542_vm1, %v970_v36  ;;  %v507_v36 = vld [vmem:[%s9897_s4 + $0x28] sm:$0xff] }
 0x218   : > { %5392 = vmatmul.mubr.msk.bf16.gmra.mrb[24].mxu1 %vm542_vm1, %v972_v41 }
 0x219   : > { %5395 = vmatprep.mubr.msk.bf16.mxu1 %vm542_vm1, %v974_v42 }
 0x220   : > { %5396 = vmatmul.mubr.msk.bf16.gmra.mrb[28].mxu1 %vm542_vm1, %v976_v43 }
 0x29b   : > { %v5321_v9 = vpop.f32.mrb[0].mxu1 }
 0x29c   : > { %v7203_v10 = vadd.f32 %v5321_v9, %v7200_v8  ;;  %v625_v11 = vpop.f32.mrb[1].mxu1  ;;  %v517_v9 = vld [vmem:[%s9897_s4 + $0x78] sm:$0xff] }
 0x29d   : > { %v5322_v14 = vpop.f32.mrb[2].mxu1  ;;  %v7220_v17 = vadd.f32 %v625_v11, %v7213_v13 }
 0x29e   : > { %692 = vmax.xlane.f32.xlu0 %v7203_v10  ;;  %v628_v15 = vpop.f32.mrb[3].mxu1  ;;  %v7232_v23 = vadd.f32 %v5322_v14, %v505_v18 }
 0x29f   : > { %v7217_v16 = vadd.f32 %v628_v15, %v7208_v12 }
 0x2a1   : > { %690 = vmax.xlane.f32.xlu1 %v7217_v16 }
 0x2a2   : > { %688 = vmax.xlane.f32.xlu0 %v7220_v17 }
 0x2a3   : > { %v5325_v21 = vpop.f32.mrb[4].mxu1 }
 0x2a4   : > { %v7235_v24 = vadd.f32 %v5325_v21, %v7229_v19  ;;  %v641_v25 = vpop.f32.mrb[5].mxu1 }
 0x2a5   : > { %v5326_v30 = vpop.f32.mrb[6].mxu1  ;;  %v7248_v33 = vadd.f32 %v641_v25, %v7240_v27  ;;  %v515_v25 = vld [vmem:[%s9897_s4 + $0x68] sm:$0xff] }
 0x2a6   : > { %v644_v31 = vpop.f32.mrb[7].mxu1  ;;  %700 = vmax.xlane.f32.xlu1 %v7235_v24  ;;  %694 = vmax.xlane.f32.xlu0 %v7232_v23  ;;  %v7250_v35 = vadd.f32 %v5326_v30, %v509_v29 }
 0x2a7   : > { %v7260_v41 = vadd.f32 %v644_v31, %v507_v36 }
 0x2aa   : > { %696 = vmax.xlane.f32.xlu1 %v7248_v33  ;;  %702 = vmax.xlane.f32.xlu0 %v7250_v35 }
 0x2ab   : > { %v5329_v39 = vpop.f32.mrb[8].mxu1 }
 0x2ac   : > { %v7262_v42 = vadd.f32 %v5329_v39, %v512_v37  ;;  %v657_v43 = vpop.f32.mrb[9].mxu1 }
 0x2ad   : > { %v5330_v48 = vpop.f32.mrb[10].mxu1  ;;  %v7272_v51 = vadd.f32 %v657_v43, %v510_v45 }
 0x2ae   : > { %v660_v49 = vpop.f32.mrb[11].mxu1  ;;  %708 = vmax.xlane.f32.xlu1 %v7262_v42  ;;  %698 = vmax.xlane.f32.xlu0 %v7260_v41  ;;  %v7274_v53 = vadd.f32 %v5330_v48, %v513_v47 }
 0x2af   : > { %v7286_v63 = vadd.f32 %v660_v49, %v511_v54 }
 0x2b2   : > { %704 = vmax.xlane.f32.xlu1 %v7272_v51  ;;  %710 = vmax.xlane.f32.xlu0 %v7274_v53 }
 0x2b3   : > { %v5333_v59 = vpop.f32.mrb[12].mxu1 }
 0x2b4   : > { %v7289_v1 = vadd.f32 %v5333_v59, %v7282_v57  ;;  %v673_v4 = vpop.f32.mrb[13].mxu1 }
 0x2b5   : > { %v5334_v11 = vpop.f32.mrb[14].mxu1  ;;  %v7299_v15 = vadd.f32 %v673_v4, %v514_v6 }
 0x2b6   : > { %v676_v14 = vpop.f32.mrb[15].mxu1  ;;  %716 = vmax.xlane.f32.xlu1 %v7289_v1  ;;  %706 = vmax.xlane.f32.xlu0 %v7286_v63  ;;  %v7301_v21 = vadd.f32 %v5334_v11, %v517_v9 }
 0x2b7   : > { %v7308_v30 = vadd.f32 %v676_v14, %v515_v25 }
 0x2ba   : > { %712 = vmax.xlane.f32.xlu1 %v7299_v15  ;;  %718 = vmax.xlane.f32.xlu0 %v7301_v21 }
 0x2be   : > { %714 = vmax.xlane.f32.xlu0 %v7308_v30 }
 0x2db   : > { %v5385_v31 = vpop.f32.mrb[16].mxu1 }
 0x2dc   : > { %v7312_v39 = vadd.f32 %v5385_v31, %v7200_v8  ;;  %v1075_v43 = vpop.f32.mrb[17].mxu1 }
 0x2dd   : > { %v5386_v48 = vpop.f32.mrb[18].mxu1  ;;  %v7318_v4 = vadd.f32 %v1075_v43, %v7213_v13 }
 0x2de   : > { %v7314_v49 = vadd.f32 %v5386_v48, %v505_v18  ;;  %1142 = vmax.xlane.f32.xlu1 %v7312_v39  ;;  %v1078_v59 = vpop.f32.mrb[19].mxu1 }
 0x2df   : > { %v7322_v11 = vadd.f32 %v1078_v59, %v7208_v12 }
 0x2e0   : > { %1144 = vmax.xlane.f32.xlu0 %v7314_v49 }
 0x2e2   : > { %1138 = vmax.xlane.f32.xlu1 %v7318_v4 }
 0x2e3   : > { %v5389_v14 = vpop.f32.mrb[20].mxu1 }
 0x2e4   : > { %1140 = vmax.xlane.f32.xlu0 %v7322_v11  ;;  %v1091_v8 = vpop.f32.mrb[21].mxu1 }
 0x2e5   : > { %v5390_v31 = vpop.f32.mrb[22].mxu1 }
 0x2e6   : > { %v7326_v18 = vadd.f32 %v5390_v31, %v509_v29  ;;  %v1094_v48 = vpop.f32.mrb[23].mxu1 }
 0x2e7   : > { %v7329_v0 = vadd.f32 %v1094_v48, %v507_v36 }
 0x2e8   : > { %1152 = vmax.xlane.f32.xlu0 %v7326_v18 }
 0x2eb   : > { %v5393_v13 = vpop.f32.mrb[24].mxu1 }
 0x2ec   : > { %1148 = vmax.xlane.f32.xlu0 %v7329_v0  ;;  %v1107_v43 = vpop.f32.mrb[25].mxu1  ;;  %v7332_v59 = vadd.f32 %v5393_v13, %v512_v37 }
 0x2ed   : > { %v5394_v12 = vpop.f32.mrb[26].mxu1  ;;  %v7335_v46 = vadd.f32 %v1107_v43, %v510_v45  ;;  %v7350_v45 = vadd.f32 %v5389_v14, %v7229_v19  ;;  %v7354_v43 = vadd.f32 %v1091_v8, %v7240_v27  ;;  %v7371_v27 = vpop.permute.xlu1 %1304 }
 0x2ee   : > { %v1110_v52 = vpop.f32.mrb[27].mxu1  ;;  %v7340_v48 = vadd.f32 %v5394_v12, %v513_v47 }
 0x2ef   : > { %v7343_v37 = vadd.f32 %v1110_v52, %v511_v54  ;;  %v7361_v52 = vpop.permute.xlu0 %1294 }
 0x2f0   : > { %1158 = vmax.xlane.f32.xlu0 %v7332_v59 }
 0x2f3   : > { %1431 = vrot.lane.b32.xlu1 %v7021_v32, %s6869_s15  ;;  %v5397_v29 = vpop.f32.mrb[28].mxu1  ;;  %v7368_v54 = vpop.permute.xlu0 %1302 }
 0x2f4   : > { %1154 = vmax.xlane.f32.xlu0 %v7335_v46  ;;  %v1123_v36 = vpop.f32.mrb[29].mxu1  ;;  %v7358_v47 = vadd.f32 %v5397_v29, %v7282_v57 }
 0x2f5   : > { %v5398_v31 = vpop.f32.mrb[30].mxu1 }
 0x2f6   : > { %v1126_v34 = vpop.f32.mrb[31].mxu1  ;;  %v7366_v19 = vadd.f32 %v5398_v31, %v517_v9 }
 0x2f7   : > { %v7346_v13 = vadd.f32 %v1126_v34, %v515_v25  ;;  %v7363_v34 = vadd.f32 %v1123_v36, %v514_v6 }
 0x2f8   : > { %1160 = vmax.xlane.f32.xlu0 %v7340_v48 }
 0x2fc   : > { %1156 = vmax.xlane.f32.xlu0 %v7343_v37 }
 0x300   : > { %1164 = vmax.xlane.f32.xlu0 %v7346_v13 }
 0x317   : > { %1150 = vmax.xlane.f32.xlu1 %v7350_v45 }
 0x31b   : > { %1146 = vmax.xlane.f32.xlu1 %v7354_v43 }
 0x31f   : > { %1166 = vmax.xlane.f32.xlu1 %v7358_v47 }
 0x323   : > { %1162 = vmax.xlane.f32.xlu1 %v7363_v34 }
 0x327   : > { %1168 = vmax.xlane.f32.xlu1 %v7366_v19 }
 0x32b   : > { %v693_v25 = vpop.xlane.xlu0 %692 }
 0x32c   : > { %v722_v57 = vsub.f32 %v7203_v10, %v693_v25 }
 0x32e   : > { %v740_v14 = vmul.f32 1.442695, %v722_v57  ;;  %v691_v8 = vpop.xlane.xlu1 %690 }
 0x32f   : > { %v689_v12 = vpop.xlane.xlu0 %688  ;;  %v721_v9 = vsub.f32 %v7217_v16, %v691_v8 }
 0x330   : > { %6260 = vpow2.f32 %v740_v14  ;;  %v720_v6 = vsub.f32 %v7220_v17, %v689_v12 }
 0x331   : > { %v738_v5 = vmul.f32 1.442695, %v721_v9 }
 0x332   : > { %v736_v29 = vmul.f32 1.442695, %v720_v6 }
 0x333   : > { %v695_v36 = vpop.xlane.xlu0 %694  ;;  %v701_v22 = vpop.xlane.xlu1 %700 }
 0x334   : > { %6262 = vpow2.f32 %v736_v29  ;;  %v723_v31 = vsub.f32 %v7232_v23, %v695_v36  ;;  %v726_v10 = vsub.f32 %v7235_v24, %v701_v22 }
 0x336   : > { %v742_v58 = vmul.f32 1.442695, %v723_v31  ;;  %v748_v23 = vmul.f32 1.442695, %v726_v10 }
 0x337   : > { %v703_v40 = vpop.xlane.xlu0 %702  ;;  %v697_v28 = vpop.xlane.xlu1 %696 }
 0x338   : > { %6264 = vpow2.f32 %v742_v58  ;;  %v724_v25 = vsub.f32 %v7248_v33, %v697_v28  ;;  %v727_v57 = vsub.f32 %v7250_v35, %v703_v40 }
 0x339   : > { %6266 = vpow2.f32 %v738_v5 }
 0x33a   : > { %v7380_v17 = vpop.eup %6260  ;;  %v744_v14 = vmul.f32 1.442695, %v724_v25  ;;  %v750_v6 = vmul.f32 1.442695, %v727_v57 }
 0x33b   : > { %v699_v12 = vpop.xlane.xlu0 %698  ;;  %772 = vadd.xlane.f32.xlu0 %v7380_v17  ;;  %v709_v16 = vpop.xlane.xlu1 %708 }
 0x33c   : > { %v725_v8 = vsub.f32 %v7260_v41, %v699_v12  ;;  %6268 = vpow2.f32 %v744_v14  ;;  %v730_v24 = vsub.f32 %v7262_v42, %v709_v16 }
 0x33d   : > { %6270 = vpow2.f32 %v748_v23 }
 0x33e   : > { %v7384_v58 = vpop.eup %6262  ;;  %v746_v40 = vmul.f32 1.442695, %v725_v8  ;;  %6272 = vpow2.f32 %v750_v6  ;;  %v756_v9 = vmul.f32 1.442695, %v730_v24 }
 0x33f   : > { %v711_v22 = vpop.xlane.xlu0 %710  ;;  %768 = vadd.xlane.f32.xlu1 %v7384_v58  ;;  %v705_v28 = vpop.xlane.xlu1 %704 }
 0x340   : > { %v728_v33 = vsub.f32 %v7272_v51, %v705_v28  ;;  %v731_v5 = vsub.f32 %v7274_v53, %v711_v22  ;;  %6274 = vpow2.f32 %v746_v40 }
 0x342   : > { %v7390_v35 = vpop.eup %6264  ;;  %v752_v41 = vmul.f32 1.442695, %v728_v33  ;;  %v758_v10 = vmul.f32 1.442695, %v731_v5 }
 0x343   : > { %v707_v29 = vpop.xlane.xlu0 %706  ;;  %774 = vadd.xlane.f32.xlu0 %v7390_v35  ;;  %v717_v36 = vpop.xlane.xlu1 %716 }
 0x344   : > { %v729_v31 = vsub.f32 %v7286_v63, %v707_v29  ;;  %6276 = vpow2.f32 %v752_v41  ;;  %v7394_v25 = vpop.eup %6266  ;;  %v734_v14 = vsub.f32 %v7289_v1, %v717_v36 }
 0x345   : > { %6278 = vpow2.f32 %v756_v9 }
 0x346   : > { %v7396_v42 = vpop.eup %6268  ;;  %v754_v57 = vmul.f32 1.442695, %v729_v31  ;;  %6280 = vpow2.f32 %v758_v10  ;;  %v764_v22 = vmul.f32 1.442695, %v734_v14 }
 0x347   : > { %v719_v51 = vpop.xlane.xlu0 %718  ;;  %770 = vadd.xlane.f32.xlu0 %v7394_v25  ;;  %v713_v53 = vpop.xlane.xlu1 %712  ;;  %776 = vadd.xlane.f32.xlu1 %v7396_v42 }
 0x348   : > { %v732_v12 = vsub.f32 %v7299_v15, %v713_v53  ;;  %v735_v63 = vsub.f32 %v7301_v21, %v719_v51  ;;  %v7403_v16 = vpop.eup %6270  ;;  %6282 = vpow2.f32 %v754_v57 }
 0x349   : > { %v7405_v8 = vpop.eup %6272 }
 0x34a   : > { %v760_v23 = vmul.f32 1.442695, %v732_v12  ;;  %v766_v1 = vmul.f32 1.442695, %v735_v63  ;;  %v7410_v15 = vpop.eup %6274 }
 0x34b   : > { %v715_v6 = vpop.xlane.xlu0 %714  ;;  %780 = vadd.xlane.f32.xlu0 %v7403_v16  ;;  %782 = vadd.xlane.f32.xlu1 %v7405_v8 }
 0x34c   : > { %v733_v28 = vsub.f32 %v7308_v30, %v715_v6  ;;  %6284 = vpow2.f32 %v760_v23 }
 0x34d   : > { %6286 = vpow2.f32 %v764_v22 }
 0x34e   : > { %v7412_v40 = vpop.eup %6276  ;;  %v762_v21 = vmul.f32 1.442695, %v733_v28  ;;  %6288 = vpow2.f32 %v766_v1 }
 0x34f   : > { %778 = vadd.xlane.f32.xlu0 %v7410_v15  ;;  %784 = vadd.xlane.f32.xlu1 %v7412_v40  ;;  %v7416_v24 = vpop.eup %6278 }
 0x350   : > { %v7418_v33 = vpop.eup %6280  ;;  %6290 = vpow2.f32 %v762_v21 }
 0x352   : > { %v7422_v30 = vpop.eup %6282 }
 0x353   : > { %788 = vadd.xlane.f32.xlu0 %v7416_v24  ;;  %790 = vadd.xlane.f32.xlu1 %v7418_v33 }
 0x356   : > { %v7424_v5 = vpop.eup %6284 }
 0x357   : > { %786 = vadd.xlane.f32.xlu0 %v7422_v30  ;;  %792 = vadd.xlane.f32.xlu1 %v7424_v5  ;;  %v7428_v41 = vpop.eup %6286 }
 0x358   : > { %v7430_v29 = vpop.eup %6288 }
 0x35a   : > { %v7434_v36 = vpop.eup %6290 }
 0x35b   : > { %796 = vadd.xlane.f32.xlu0 %v7428_v41  ;;  %798 = vadd.xlane.f32.xlu1 %v7430_v29 }
 0x35f   : > { %794 = vadd.xlane.f32.xlu0 %v7434_v36 }
 0x36b   : > { %v1143_v9 = vpop.xlane.xlu1 %1142 }
 0x36c   : > { %v1172_v31 = vsub.f32 %v7312_v39, %v1143_v9 }
 0x36d   : > { %v1145_v10 = vpop.xlane.xlu0 %1144 }
 0x36e   : > { %v1190_v51 = vmul.f32 1.442695, %v1172_v31  ;;  %v1173_v57 = vsub.f32 %v7314_v49, %v1145_v10 }
 0x36f   : > { %v1139_v53 = vpop.xlane.xlu1 %1138 }
 0x370   : > { %6292 = vpow2.f32 %v1190_v51  ;;  %v1170_v14 = vsub.f32 %v7318_v4, %v1139_v53  ;;  %v1192_v6 = vmul.f32 1.442695, %v1173_v57 }
 0x371   : > { %v1141_v12 = vpop.xlane.xlu0 %1140 }
 0x372   : > { %v1186_v63 = vmul.f32 1.442695, %v1170_v14  ;;  %v1171_v23 = vsub.f32 %v7322_v11, %v1141_v12 }
 0x373   : > { %v7457_v1 = vpop.permute.xlu1 %1431 }
 0x374   : > { %6294 = vpow2.f32 %v1186_v63  ;;  %v1188_v22 = vmul.f32 1.442695, %v1171_v23  ;;  %10003 = vst [vmem:[#allocation15_spill] sm:$0xff] %v7457_v1 }
 0x375   : > { %v1153_v11 = vpop.xlane.xlu0 %1152 }
 0x376   : > { %6296 = vpow2.f32 %v1188_v22  ;;  %v1177_v51 = vsub.f32 %v7326_v18, %v1153_v11 }
 0x377   : > { %6298 = vpow2.f32 %v1192_v6 }
 0x378   : > { %v1200_v12 = vmul.f32 1.442695, %v1177_v51 }
 0x379   : > { %v1149_v21 = vpop.xlane.xlu0 %1148 }
 0x37a   : > { %v7441_v28 = vpop.eup %6292  ;;  %v1175_v63 = vsub.f32 %v7329_v0, %v1149_v21 }
 0x37b   : > { %1222 = vadd.xlane.f32.xlu0 %v7441_v28 }
 0x37c   : > { %v1196_v22 = vmul.f32 1.442695, %v1175_v63 }
 0x37d   : > { %v1159_v10 = vpop.xlane.xlu0 %1158 }
 0x37e   : > { %v7444_v39 = vpop.eup %6294  ;;  %v1180_v1 = vsub.f32 %v7332_v59, %v1159_v10 }
 0x37f   : > { %1218 = vadd.xlane.f32.xlu1 %v7444_v39 }
 0x380   : > { %v7447_v49 = vpop.eup %6296  ;;  %v1206_v18 = vmul.f32 1.442695, %v1180_v1 }
 0x381   : > { %1220 = vadd.xlane.f32.xlu0 %v7447_v49  ;;  %v7450_v4 = vpop.eup %6298  ;;  %v1155_v6 = vpop.xlane.xlu0 %1154 }
 0x382   : > { %10002 = vst [vmem:[#allocation14_spill] sm:$0xff] %v7450_v4  ;;  %v1178_v11 = vsub.f32 %v7335_v46, %v1155_v6 }
 0x383   : > { %1224 = vadd.xlane.f32.xlu1 %v7450_v4 }
 0x384   : > { %v1202_v0 = vmul.f32 1.442695, %v1178_v11 }
 0x385   : > { %v1161_v4 = vpop.xlane.xlu0 %1160 }
 0x386   : > { %v1181_v21 = vsub.f32 %v7340_v48, %v1161_v4 }
 0x388   : > { %v1208_v1 = vmul.f32 1.442695, %v1181_v21 }
 0x397   : > { %1435 = vrot.lane.b32.xlu0 %v7033_v44, %s6869_s15 }
 0x39b   : > { %1437 = vrot.lane.b32.xlu0 %v7039_v50, %s6869_s15 }
 0x3a4   : > { %v1151_v9 = vpop.xlane.xlu1 %1150 }
 0x3a5   : > { %v1176_v31 = vsub.f32 %v7350_v45, %v1151_v9  ;;  %v1157_v9 = vpop.xlane.xlu0 %1156 }
 0x3a6   : > { %v1179_v46 = vsub.f32 %v7343_v37, %v1157_v9 }
 0x3a7   : > { %v1198_v53 = vmul.f32 1.442695, %v1176_v31 }
 0x3a8   : > { %v1147_v57 = vpop.xlane.xlu1 %1146 }
 0x3a9   : > { %6300 = vpow2.f32 %v1198_v53  ;;  %v1174_v14 = vsub.f32 %v7354_v43, %v1147_v57  ;;  %v1204_v53 = vmul.f32 1.442695, %v1179_v46  ;;  %v1165_v6 = vpop.xlane.xlu0 %1164 }
 0x3ab   : > { %v1194_v23 = vmul.f32 1.442695, %v1174_v14 }
 0x3ac   : > { %v1167_v31 = vpop.xlane.xlu1 %1166 }
 0x3ad   : > { %6302 = vpow2.f32 %v1194_v23  ;;  %v1184_v48 = vsub.f32 %v7358_v47, %v1167_v31 }
 0x3ae   : > { %6304 = vpow2.f32 %v1200_v12 }
 0x3af   : > { %6306 = vpow2.f32 %v1196_v22  ;;  %v1214_v57 = vmul.f32 1.442695, %v1184_v48 }
 0x3b0   : > { %6308 = vpow2.f32 %v1206_v18  ;;  %v1163_v51 = vpop.xlane.xlu1 %1162 }
 0x3b1   : > { %6310 = vpow2.f32 %v1202_v0  ;;  %v1182_v14 = vsub.f32 %v7363_v34, %v1163_v51 }
 0x3b2   : > { %6312 = vpow2.f32 %v1208_v1  ;;  %v1183_v1 = vsub.f32 %v7346_v13, %v1165_v6 }
 0x3b3   : > { %v7464_v45 = vpop.eup %6300  ;;  %6314 = vpow2.f32 %v1204_v53  ;;  %v1210_v37 = vmul.f32 1.442695, %v1182_v14 }
 0x3b4   : > { %1230 = vadd.xlane.f32.xlu1 %v7464_v45  ;;  %v1169_v12 = vpop.xlane.xlu1 %1168  ;;  %6316 = vpow2.f32 %v1214_v57  ;;  %v1212_v57 = vmul.f32 1.442695, %v1183_v1 }
 0x3b5   : > { %v1185_v23 = vsub.f32 %v7366_v19, %v1169_v12  ;;  %6318 = vpow2.f32 %v1210_v37 }
 0x3b7   : > { %v7468_v43 = vpop.eup %6302  ;;  %v1216_v47 = vmul.f32 1.442695, %v1185_v23 }
 0x3b8   : > { %1226 = vadd.xlane.f32.xlu1 %v7468_v43  ;;  %v7472_v59 = vpop.eup %6304 }
 0x3b9   : > { %v7476_v10 = vpop.eup %6306  ;;  %6320 = vpow2.f32 %v1216_v47 }
 0x3ba   : > { %1232 = vadd.xlane.f32.xlu0 %v7472_v59  ;;  %v7480_v4 = vpop.eup %6308 }
 0x3bb   : > { %v7484_v63 = vpop.eup %6310 }
 0x3bc   : > { %v7488_v22 = vpop.eup %6312 }
 0x3bd   : > { %v7493_v18 = vpop.eup %6314 }
 0x3be   : > { %1228 = vadd.xlane.f32.xlu0 %v7476_v10  ;;  %v7496_v21 = vpop.eup %6316 }
 0x3bf   : > { %10004 = vst [vmem:[#allocation16_spill] sm:$0xff] %v7496_v21  ;;  %v7499_v9 = vpop.eup %6318 }
 0x3c2   : > { %1238 = vadd.xlane.f32.xlu0 %v7480_v4 }
 0x3c3   : > { %v7503_v51 = vpop.eup %6320 }
 0x3c6   : > { %1234 = vadd.xlane.f32.xlu0 %v7484_v63 }
 0x3c8   : > { %v773_v34 = vpop.xlane.xlu0 %772 }
 0x3c9   : > { %1433 = vrot.lane.b32.xlu1 %v7027_v38, %s6869_s15 }
 0x3ca   : > { %1240 = vadd.xlane.f32.xlu0 %v7488_v22 }
 0x3cc   : > { %v769_v11 = vpop.xlane.xlu1 %768 }
 0x3ce   : > { %1236 = vadd.xlane.f32.xlu0 %v7493_v18 }
 0x3d0   : > { %v775_v0 = vpop.xlane.xlu0 %774 }
 0x3d1   : > { %6322 = vrcp.f32 %v775_v0 }
 0x3d2   : > { %1246 = vadd.xlane.f32.xlu0 %v7496_v21  ;;  %6324 = vrcp.f32 %v769_v11 }
 0x3d3   : > { %6326 = vrcp.f32 %v773_v34 }
 0x3d4   : > { %v771_v19 = vpop.xlane.xlu0 %770  ;;  %v777_v31 = vpop.xlane.xlu1 %776 }
 0x3d5   : > { %6328 = vrcp.f32 %v771_v19 }
 0x3d6   : > { %1242 = vadd.xlane.f32.xlu0 %v7499_v9 }
 0x3d8   : > { %v781_v46 = vpop.xlane.xlu0 %780  ;;  %v783_v53 = vpop.xlane.xlu1 %782 }
 0x3d9   : > { %6330 = vrcp.f32 %v781_v46 }
 0x3da   : > { %6332 = vrcp.f32 %v783_v53  ;;  %1248 = vadd.xlane.f32.xlu0 %v7503_v51 }
 0x3db   : > { %6334 = vrcp.f32 %v777_v31  ;;  %v6323_v48 = vpop.eup %6322 }
 0x3dc   : > { %v779_v14 = vpop.xlane.xlu0 %778  ;;  %v6325_v12 = vpop.eup %6324  ;;  %v819_v34 = vmul.f32 %v6323_v48, %v7390_v35 }
 0x3dd   : > { %6336 = vrcp.f32 %v779_v14  ;;  %v785_v37 = vpop.xlane.xlu1 %784  ;;  %v6327_v23 = vpop.eup %6326  ;;  %v816_v6 = vmul.f32 %v6325_v12, %v7384_v58 }
 0x3de   : > { %6338 = vpow2.f32 %v1212_v57  ;;  %v818_v0 = vmul.f32 %v6327_v23, %v7380_v17 }
 0x3df   : > { %v6329_v47 = vpop.eup %6328 }
 0x3e0   : > { %v789_v13 = vpop.xlane.xlu0 %788  ;;  %v817_v11 = vmul.f32 %v6329_v47, %v7394_v25  ;;  %v833_v46 = vpack.c.bf16 %v819_v34, %v818_v0 }
 0x3e1   : > { %6340 = vrcp.f32 %v789_v13  ;;  %v791_v19 = vpop.xlane.xlu1 %790 }
 0x3e2   : > { %6342 = vrcp.f32 %v791_v19  ;;  %v832_v31 = vpack.c.bf16 %v817_v11, %v816_v6 }
 0x3e3   : > { %v6331_v1 = vpop.eup %6330  ;;  %6344 = vrcp.f32 %v785_v37 }
 0x3e4   : > { %v6333_v53 = vpop.eup %6332  ;;  %v787_v14 = vpop.xlane.xlu0 %786  ;;  %5351 = vmatprep.mubr.bf16.mxu0 %v832_v31  ;;  %v822_v17 = vmul.f32 %v6331_v1, %v7403_v16 }
 0x3e5   : > { %v6335_v21 = vpop.eup %6334  ;;  %6346 = vrcp.f32 %v787_v14  ;;  %v793_v35 = vpop.xlane.xlu1 %792  ;;  %5352 = vmatmul.mubr.bf16.vlgmr.msra.gmra.mrb[32].mxu0 %v833_v46  ;;  %v823_v25 = vmul.f32 %v6333_v53, %v7405_v8 }
 0x3e6   : > { %5400 = vmatpush3.bf16.msra.mxu0 %v7187_v7  ;;  %v820_v57 = vmul.f32 %v6335_v21, %v7396_v42 }
 0x3e7   : > { %v6337_v58 = vpop.eup %6336  ;;  %5401 = vmatprep.subr.bf16.mxu0 %v7169_v55  ;;  %v835_v16 = vpack.c.bf16 %v823_v25, %v822_v17 }
 0x3e8   : > { %v797_v48 = vpop.xlane.xlu0 %796  ;;  %v821_v12 = vmul.f32 %v6337_v58, %v7410_v15  ;;  %v7516_v23 = vpop.eup %6338  ;;  %v10005_v58 = vld [vmem:[#allocation14_spill] sm:$0xff] }
 0x3e9   : > { %6348 = vrcp.f32 %v797_v48  ;;  %v799_v37 = vpop.xlane.xlu1 %798 }
 0x3ea   : > { %6350 = vrcp.f32 %v799_v37  ;;  %5402 = vmatpush3.bf16.msra.mxu0 %v7169_v55  ;;  %v834_v7 = vpack.c.bf16 %v821_v12, %v820_v57  ;;  %v1468_v57 = vsel %vm542_vm1, %v7181_v3, 0  ;;  %v10006_v12 = vld [vmem:[#allocation13_spill] sm:$0xff] }
 0x3eb   : > { %v6341_v47 = vpop.eup %6340  ;;  %6352 = vrcp.f32 %v793_v35  ;;  %5403 = vmatprep.subr.bf16.mxu0 %v7361_v52 }
 0x3ec   : > { %v6343_v34 = vpop.eup %6342  ;;  %v795_v8 = vpop.xlane.xlu0 %794  ;;  %5355 = vmatprep.mubr.bf16.mxu0 %v834_v7  ;;  %v826_v55 = vmul.f32 %v6341_v47, %v7416_v24 }
 0x3ed   : > { %v6345_v13 = vpop.eup %6344  ;;  %6354 = vrcp.f32 %v795_v8  ;;  %1244 = vadd.xlane.f32.xlu1 %v7516_v23  ;;  %5356 = vmatmul.mubr.bf16.gmra.mrb[36].mxu0 %v835_v16  ;;  %v827_v15 = vmul.f32 %v6343_v34, %v7418_v33 }
 0x3ee   : > { %5404 = vmatpush3.bf16.msra.mxu0 %v7361_v52  ;;  %v824_v21 = vmul.f32 %v6345_v13, %v7412_v40 }
 0x3ef   : > { %v6347_v42 = vpop.eup %6346  ;;  %5405 = vmatprep.subr.bf16.mxu0 %v7173_v60  ;;  %v837_v52 = vpack.c.bf16 %v827_v15, %v826_v55 }
 0x3f0   : > { %1439 = vrot.lane.b32.xlu0 %v7045_v56, %s6869_s15  ;;  %v825_v6 = vmul.f32 %v6347_v42, %v7422_v30 }
 0x3f2   : > { %5406 = vmatpush3.bf16.msra.mxu0 %v7173_v60  ;;  %v836_v11 = vpack.c.bf16 %v825_v6, %v824_v21 }
 0x3f3   : > { %v6349_v0 = vpop.eup %6348  ;;  %5407 = vmatprep.subr.bf16.mxu0 %v7175_v61 }
 0x3f4   : > { %v6351_v19 = vpop.eup %6350  ;;  %1411 = vrot.lane.b32.xlu0 %v7007_v20, %s6870_s7  ;;  %5359 = vmatprep.mubr.bf16.mxu0 %v836_v11  ;;  %v830_v60 = vmul.f32 %v6349_v0, %v7428_v41 }
 0x3f5   : > { %v6353_v24 = vpop.eup %6352  ;;  %5360 = vmatmul.mubr.bf16.gmra.mrb[40].mxu0 %v837_v52  ;;  %v831_v33 = vmul.f32 %v6351_v19, %v7430_v29 }
 0x3f6   : > { %5408 = vmatpush3.bf16.msra.mxu0 %v7175_v61  ;;  %v828_v30 = vmul.f32 %v6353_v24, %v7424_v5 }
 0x3f7   : > { %v6355_v40 = vpop.eup %6354  ;;  %5409 = vmatprep.subr.bf16.mxu0 %v7179_v2  ;;  %v839_v61 = vpack.c.bf16 %v831_v33, %v830_v60 }
 0x3f8   : > { %1413 = vrot.lane.b32.xlu0 %v7015_v26, %s6870_s7  ;;  %v829_v31 = vmul.f32 %v6355_v40, %v7434_v36 }
 0x3fa   : > { %5410 = vmatpush3.bf16.msra.mxu0 %v7179_v2  ;;  %v838_v1 = vpack.c.bf16 %v829_v31, %v828_v30 }
 0x3fb   : > { %5411 = vmatprep.subr.bf16.mxu0 %v7368_v54 }
 0x3fc   : > { %1415 = vrot.lane.b32.xlu0 %v7021_v32, %s6870_s7  ;;  %5363 = vmatprep.mubr.bf16.mxu0 %v838_v1 }
 0x3fd   : > { %5364 = vmatmul.mubr.bf16.gmra.mrb[44].mxu0 %v839_v61 }
 0x3fe   : > { %5412 = vmatpush3.bf16.msra.mxu0 %v7368_v54  ;;  %1441 = vrot.lane.b32.xlu1 %v7053_v62, %s6869_s15 }
 0x3ff   : > { %5413 = vmatprep.subr.bf16.mxu0 %v7371_v27 }
 0x400   : > { %1417 = vrot.lane.b32.xlu0 %v7027_v38, %s6870_s7 }
 0x402   : > { %5414 = vmatpush3.bf16.msra.mxu0 %v7371_v27  ;;  %1419 = vrot.lane.b32.xlu1 %v7033_v44, %s6870_s7 }
 0x403   : > { %5871 = vmatprep.subr.msk.bf16.mxu0 %vm542_vm1, %v7181_v3 }
 0x404   : > { %1421 = vrot.lane.b32.xlu0 %v7039_v50, %s6870_s7 }
 0x406   : > { %1423 = vrot.lane.b32.xlu1 %v7045_v56, %s6870_s7 }
 0x408   : > { %1425 = vrot.lane.b32.xlu0 %v7053_v62, %s6870_s7  ;;  %v1223_v2 = vpop.xlane.xlu0 %1222 }
 0x40a   : > { %1742 = vrot.lane.b32.xlu1 %v7015_v26, %s6871_s8 }
 0x40c   : > { %1740 = vrot.lane.b32.xlu0 %v7007_v20, %s6871_s8  ;;  %v1219_v54 = vpop.xlane.xlu1 %1218 }
 0x40d   : > { %6356 = vrcp.f32 %v1219_v54 }
 0x40e   : > { %6358 = vrcp.f32 %v1223_v2  ;;  %v1221_v27 = vpop.xlane.xlu0 %1220  ;;  %1746 = vrot.lane.b32.xlu1 %v7027_v38, %s6871_s8 }
 0x40f   : > { %6360 = vrcp.f32 %v1221_v27 }
 0x410   : > { %1744 = vrot.lane.b32.xlu0 %v7021_v32, %s6871_s8  ;;  %v1225_v5 = vpop.xlane.xlu1 %1224 }
 0x411   : > { %6362 = vrcp.f32 %v1225_v5 }
 0x412   : > { %1752 = vrot.lane.b32.xlu1 %v7045_v56, %s6871_s8  ;;  %v1436_v37 = vpop.permute.xlu0 %1435 }
 0x413   : > { %v1480_v55 = vsel %vm542_vm1, %v1436_v37, 0 }
 0x414   : > { %1748 = vrot.lane.b32.xlu0 %v7033_v44, %s6871_s8 }
 0x416   : > { %v1438_v47 = vpop.permute.xlu0 %1437 }
 0x417   : > { %v6357_v41 = vpop.eup %6356  ;;  %v1483_v30 = vsel %vm542_vm1, %v1438_v47, 0 }
 0x418   : > { %v6359_v29 = vpop.eup %6358  ;;  %1750 = vrot.lane.b32.xlu0 %v7039_v50, %s6871_s8  ;;  %v1266_v46 = vmul.f32 %v6357_v41, %v7444_v39  ;;  %v1471_v39 = vsel %vm542_vm1, %v10006_v12, 0 }
 0x419   : > { %v6361_v36 = vpop.eup %6360  ;;  %v1268_v35 = vmul.f32 %v6359_v29, %v7441_v28  ;;  %v10007_v28 = vld [vmem:[#allocation15_spill] sm:$0xff] }
 0x41a   : > { %v1267_v53 = vmul.f32 %v6361_v36, %v7447_v49  ;;  %v1474_v49 = vsel %vm542_vm1, %v10007_v28, 0 }
 0x41b   : > { %v6363_v14 = vpop.eup %6362 }
 0x41c   : > { %v1269_v17 = vmul.f32 %v6363_v14, %v10005_v58  ;;  %1754 = vrot.lane.b32.xlu0 %v7053_v62, %s6871_s8  ;;  %v1282_v25 = vpack.c.bf16 %v1267_v53, %v1266_v46 }
 0x41e   : > { %5415 = vmatprep.mubr.bf16.mxu0 %v1282_v25  ;;  %v1283_v48 = vpack.c.bf16 %v1269_v17, %v1268_v35 }
 0x420   : > { %5416 = vmatmul.mubr.bf16.vlgmr.msra.gmra.mrb[48].mxu0 %v1283_v48 }
 0x421   : > { %5432 = vmatpush3.bf16.xpose.msra.mxu0 %v1468_v57 }
 0x422   : > { %5872 = vmatprep.subr.msk.bf16.mxu0 %vm542_vm1, %v10006_v12 }
 0x429   : > { %5434 = vmatpush3.bf16.xpose.msra.mxu0 %v1471_v39 }
 0x42a   : > { %5873 = vmatprep.subr.msk.bf16.mxu0 %vm542_vm1, %v10007_v28 }
 0x431   : > { %5436 = vmatpush3.bf16.xpose.msra.mxu0 %v1474_v49 }
 0x441   : > { %v1231_v7 = vpop.xlane.xlu1 %1230 }
 0x445   : > { %v1227_v16 = vpop.xlane.xlu1 %1226 }
 0x447   : > { %v1233_v3 = vpop.xlane.xlu0 %1232 }
 0x448   : > { %6364 = vrcp.f32 %v1233_v3 }
 0x449   : > { %v1434_v34 = vpop.permute.xlu1 %1433  ;;  %6366 = vrcp.f32 %v1227_v16 }
 0x44a   : > { %5874 = vmatprep.subr.msk.bf16.mxu0 %vm542_vm1, %v1434_v34  ;;  %v1477_v8 = vsel %vm542_vm1, %v1434_v34, 0  ;;  %6368 = vrcp.f32 %v1231_v7  ;;  %v10008_v34 = vld [vmem:[#allocation16_spill] sm:$0xff] }
 0x44b   : > { %v1229_v13 = vpop.xlane.xlu0 %1228  ;;  %5438 = vmatpush3.bf16.xpose.msra.mxu0 %v1477_v8 }
 0x44c   : > { %6370 = vrcp.f32 %v1229_v13  ;;  %5875 = vmatprep.subr.msk.bf16.mxu0 %vm542_vm1, %v1436_v37 }
 0x44f   : > { %v1239_v42 = vpop.xlane.xlu0 %1238 }
 0x452   : > { %v6365_v15 = vpop.eup %6364 }
 0x453   : > { %v1235_v21 = vpop.xlane.xlu0 %1234  ;;  %5440 = vmatpush3.bf16.xpose.msra.mxu0 %v1480_v55  ;;  %v6367_v6 = vpop.eup %6366  ;;  %v1273_v52 = vmul.f32 %v6365_v15, %v7472_v59 }
 0x454   : > { %5876 = vmatprep.subr.msk.bf16.mxu0 %vm542_vm1, %v1438_v47  ;;  %v6369_v11 = vpop.eup %6368  ;;  %v1270_v24 = vmul.f32 %v6367_v6, %v7468_v43 }
 0x455   : > { %v1272_v60 = vmul.f32 %v6369_v11, %v7464_v45 }
 0x456   : > { %v6371_v0 = vpop.eup %6370 }
 0x457   : > { %v1241_v19 = vpop.xlane.xlu0 %1240  ;;  %v1271_v40 = vmul.f32 %v6371_v0, %v7476_v10  ;;  %v1285_v31 = vpack.c.bf16 %v1273_v52, %v1272_v60 }
 0x458   : > { %6372 = vrcp.f32 %v1241_v19 }
 0x459   : > { %v1284_v33 = vpack.c.bf16 %v1271_v40, %v1270_v24  ;;  %6374 = vrcp.f32 %v1235_v21 }
 0x45a   : > { %6376 = vrcp.f32 %v1239_v42 }
 0x45b   : > { %v1237_v1 = vpop.xlane.xlu0 %1236  ;;  %5419 = vmatprep.mubr.bf16.mxu0 %v1284_v33  ;;  %5442 = vmatpush3.bf16.xpose.msra.mxu0 %v1483_v30 }
 0x45c   : > { %6378 = vrcp.f32 %v1237_v1  ;;  %5420 = vmatmul.mubr.bf16.gmra.mrb[52].mxu0 %v1285_v31 }
 0x45f   : > { %v1247_v59 = vpop.xlane.xlu0 %1246 }
 0x462   : > { %v6373_v61 = vpop.eup %6372 }
 0x463   : > { %v1243_v2 = vpop.xlane.xlu0 %1242  ;;  %v6375_v43 = vpop.eup %6374  ;;  %v1277_v45 = vmul.f32 %v6373_v61, %v7488_v22 }
 0x464   : > { %v6377_v54 = vpop.eup %6376  ;;  %v1274_v5 = vmul.f32 %v6375_v43, %v7484_v63 }
 0x465   : > { %v1276_v29 = vmul.f32 %v6377_v54, %v7480_v4 }
 0x466   : > { %v6379_v10 = vpop.eup %6378 }
 0x467   : > { %v1249_v27 = vpop.xlane.xlu0 %1248  ;;  %v1275_v41 = vmul.f32 %v6379_v10, %v7493_v18  ;;  %v1287_v46 = vpack.c.bf16 %v1277_v45, %v1276_v29 }
 0x468   : > { %6380 = vrcp.f32 %v1249_v27 }
 0x469   : > { %v1286_v36 = vpack.c.bf16 %v1275_v41, %v1274_v5  ;;  %6382 = vrcp.f32 %v1243_v2  ;;  %v7745_v5 = vld [vmem:[%s9897_s4 + $0x38] sm:$0xff] }
 0x46a   : > { %6384 = vrcp.f32 %v1247_v59 }
 0x46b   : > { %v1440_v53 = vpop.permute.xlu0 %1439  ;;  %5423 = vmatprep.mubr.bf16.mxu0 %v1286_v36 }
 0x46c   : > { %5424 = vmatmul.mubr.bf16.gmra.mrb[56].mxu0 %v1287_v46  ;;  %5877 = vmatprep.subr.msk.bf16.mxu0 %vm542_vm1, %v1440_v53  ;;  %v1486_v14 = vsel %vm542_vm1, %v1440_v53, 0 }
 0x46d   : > { %5444 = vmatpush3.bf16.xpose.msra.mxu0 %v1486_v14 }
 0x46f   : > { %v1412_v35 = vpop.permute.xlu0 %1411 }
 0x472   : > { %v6381_v48 = vpop.eup %6380 }
 0x473   : > { %v1414_v58 = vpop.permute.xlu0 %1413  ;;  %v6383_v12 = vpop.eup %6382  ;;  %v1281_v37 = vmul.f32 %v6381_v48, %v7503_v51 }
 0x474   : > { %v6385_v28 = vpop.eup %6384  ;;  %v1278_v47 = vmul.f32 %v6383_v12, %v7499_v9 }
 0x475   : > { %v1280_v8 = vmul.f32 %v6385_v28, %v10008_v34 }
 0x477   : > { %v1416_v22 = vpop.permute.xlu0 %1415  ;;  %v1289_v42 = vpack.c.bf16 %v1281_v37, %v1280_v8 }
 0x47a   : > { %v1245_v63 = vpop.xlane.xlu1 %1244 }
 0x47b   : > { %6386 = vrcp.f32 %v1245_v63  ;;  %v1418_v18 = vpop.permute.xlu0 %1417 }
 0x47e   : > { %v1442_v4 = vpop.permute.xlu1 %1441 }
 0x47f   : > { %v1422_v17 = vpop.permute.xlu0 %1421  ;;  %5878 = vmatprep.subr.msk.bf16.mxu0 %vm542_vm1, %v1442_v4  ;;  %v1489_v25 = vsel %vm542_vm1, %v1442_v4, 0 }
 0x480   : > { %5446 = vmatpush3.bf16.xpose.msra.mxu0 %v1489_v25  ;;  %v7737_v25 = vld [vmem:[%s9897_s4 + $0x30] sm:$0xff] }
 0x482   : > { %v1420_v57 = vpop.permute.xlu1 %1419 }
 0x483   : > { %v1426_v39 = vpop.permute.xlu0 %1425 }
 0x485   : > { %v6387_v49 = vpop.eup %6386 }
 0x486   : > { %v1424_v7 = vpop.permute.xlu1 %1423  ;;  %v1279_v16 = vmul.f32 %v6387_v49, %v7516_v23  ;;  %v7728_v49 = vld [vmem:[%s9897_s4 + $0x8] sm:$0xff] }
 0x487   : > { %v1741_v3 = vpop.permute.xlu0 %1740 }
 0x488   : > { %5463 = vmatprep.subr.bf16.mxu1 %v1741_v3  ;;  %v1288_v13 = vpack.c.bf16 %v1279_v16, %v1278_v47 }
 0x489   : > { %5464 = vmatpush3.bf16.msra.mxu1 %v1741_v3  ;;  %v7705_v3 = vld [vmem:[%s9897_s4] sm:$0xff] }
 0x48a   : > { %5427 = vmatprep.mubr.bf16.mxu0 %v1288_v13  ;;  %v1743_v55 = vpop.permute.xlu1 %1742 }
 0x48b   : > { %5428 = vmatmul.mubr.bf16.gmra.mrb[60].mxu0 %v1289_v42  ;;  %5465 = vmatprep.subr.bf16.mxu1 %v1743_v55  ;;  %v1745_v15 = vpop.permute.xlu0 %1744  ;;  %v7715_v42 = vld [vmem:[%s9897_s4 + $0x18] sm:$0xff] }
 0x48c   : > { %5447 = vmatprep.mubr.msk.bf16.mxu0 %vm542_vm1, %v1412_v35 }
 0x48d   : > { %5466 = vmatpush3.bf16.msra.mxu1 %v1743_v55 }
 0x48e   : > { %5467 = vmatprep.subr.bf16.mxu1 %v1745_v15  ;;  %v1747_v51 = vpop.permute.xlu1 %1746 }
 0x48f   : > { %v1749_v9 = vpop.permute.xlu0 %1748 }
 0x491   : > { %5468 = vmatpush3.bf16.msra.mxu1 %v1745_v15 }
 0x492   : > { %5469 = vmatprep.subr.bf16.mxu1 %v1747_v51  ;;  %v1753_v21 = vpop.permute.xlu1 %1752 }
 0x493   : > { %5448 = vmatmul.mubr.msk.bf16.vlgmr.msra.gmra.mrb[64].mxu0 %vm542_vm1, %v1414_v58  ;;  %v1751_v23 = vpop.permute.xlu0 %1750 }
 0x494   : > { %5451 = vmatprep.mubr.msk.bf16.mxu0 %vm542_vm1, %v1416_v22 }
 0x495   : > { %5470 = vmatpush3.bf16.msra.mxu1 %v1747_v51 }
 0x496   : > { %5471 = vmatprep.subr.bf16.mxu1 %v1749_v9 }
 0x497   : > { %v1755_v6 = vpop.permute.xlu0 %1754 }
 0x499   : > { %5472 = vmatpush3.bf16.msra.mxu1 %v1749_v9 }
 0x49a   : > { %5473 = vmatprep.subr.bf16.mxu1 %v1751_v23 }
 0x49b   : > { %5452 = vmatmul.mubr.msk.bf16.gmra.mrb[68].mxu0 %vm542_vm1, %v1418_v18 }
 0x49c   : > { %5455 = vmatprep.mubr.msk.bf16.mxu0 %vm542_vm1, %v1420_v57 }
 0x49d   : > { %5474 = vmatpush3.bf16.msra.mxu1 %v1751_v23 }
 0x49e   : > { %5475 = vmatprep.subr.bf16.mxu1 %v1753_v21 }
 0x4a1   : > { %5476 = vmatpush3.bf16.msra.mxu1 %v1753_v21 }
 0x4a2   : > { %5477 = vmatprep.subr.bf16.mxu1 %v1755_v6 }
 0x4a3   : > { %5456 = vmatmul.mubr.msk.bf16.gmra.mrb[72].mxu0 %vm542_vm1, %v1422_v17 }
 0x4a4   : > { %5459 = vmatprep.mubr.msk.bf16.mxu0 %vm542_vm1, %v1424_v7  ;;  %v7697_v7 = vld [vmem:[%s9897_s4 + $0x10] sm:$0xff] }
 0x4a5   : > { %5478 = vmatpush3.bf16.msra.mxu1 %v1755_v6 }
 0x4ab   : > { %5460 = vmatmul.mubr.msk.bf16.gmra.mrb[76].mxu0 %vm542_vm1, %v1426_v39 }
 0x4b8   : > { %v7614_v11 = vpop.f32.mrb[32].mxu0 }
 0x4b9   : > { %10009 = vst [vmem:[#allocation14_spill] sm:$0xff] %v7614_v11  ;;  %v7616_v0 = vpop.f32.mrb[33].mxu0 }
 0x4ba   : > { %10010 = vst [vmem:[#allocation13_spill] sm:$0xff] %v7616_v0  ;;  %v7618_v52 = vpop.f32.mrb[34].mxu0 }
 0x4bb   : > { %10011 = vst [vmem:[#allocation15_spill] sm:$0xff] %v7618_v52  ;;  %v7620_v19 = vpop.f32.mrb[35].mxu0 }
 0x4bc   : > { %10012 = vst [vmem:[#allocation16_spill] sm:$0xff] %v7620_v19 }
 0x4c0   : > { %v7622_v24 = vpop.f32.mrb[36].mxu0 }
 0x4c1   : > { %10013 = vst [vmem:[#allocation17_spill] sm:$0xff] %v7622_v24  ;;  %v7624_v40 = vpop.f32.mrb[37].mxu0 }
 0x4c2   : > { %10014 = vst [vmem:[#allocation18_spill] sm:$0xff] %v7624_v40  ;;  %v7626_v60 = vpop.f32.mrb[38].mxu0  ;;  %v7806_v40 = vld [vmem:[%s9897_s4 + $0x70] sm:$0xff] }
 0x4c3   : > { %10015 = vst [vmem:[#allocation19_spill] sm:$0xff] %v7626_v60  ;;  %v7628_v33 = vpop.f32.mrb[39].mxu0 }
 0x4c4   : > { %10016 = vst [vmem:[#allocation20_spill] sm:$0xff] %v7628_v33  ;;  %v7814_v33 = vld [vmem:[%s9897_s4 + $0x78] sm:$0xff] }
 0x4c8   : > { %v7630_v30 = vpop.f32.mrb[40].mxu0 }
 0x4c9   : > { %10017 = vst [vmem:[#allocation21_spill] sm:$0xff] %v7630_v30  ;;  %v7632_v31 = vpop.f32.mrb[41].mxu0 }
 0x4ca   : > { %10018 = vst [vmem:[#allocation22_spill] sm:$0xff] %v7632_v31  ;;  %v7634_v1 = vpop.f32.mrb[42].mxu0 }
 0x4cb   : > { %10019 = vst [vmem:[#allocation23_spill] sm:$0xff] %v7634_v1  ;;  %v7636_v59 = vpop.f32.mrb[43].mxu0  ;;  %v7761_v1 = vld [vmem:[%s9897_s4 + $0x28] sm:$0xff] }
 0x4cc   : > { %10020 = vst [vmem:[#allocation24_spill] sm:$0xff] %v7636_v59  ;;  %v7796_v59 = vld [vmem:[%s9897_s4 + $0x48] sm:$0xff] }
 0x4d0   : > { %v7638_v61 = vpop.f32.mrb[44].mxu0 }
 0x4d1   : > { %10021 = vst [vmem:[#allocation25_spill] sm:$0xff] %v7638_v61  ;;  %v7640_v2 = vpop.f32.mrb[45].mxu0  ;;  %v7824_v61 = vld [vmem:[%s9897_s4 + $0x60] sm:$0xff] }
 0x4d2   : > { %10022 = vst [vmem:[#allocation26_spill] sm:$0xff] %v7640_v2  ;;  %v7642_v43 = vpop.f32.mrb[46].mxu0 }
 0x4d3   : > { %10023 = vst [vmem:[#allocation27_spill] sm:$0xff] %v7642_v43  ;;  %v7644_v54 = vpop.f32.mrb[47].mxu0  ;;  %v7832_v43 = vld [vmem:[%s9897_s4 + $0x68] sm:$0xff] }
 0x4d4   : > { %10024 = vst [vmem:[#allocation28_spill] sm:$0xff] %v7644_v54 }
 0x4f3   : > { %v7646_v10 = vpop.f32.mrb[48].mxu0 }
 0x4f4   : > { %v7648_v45 = vpop.f32.mrb[49].mxu0 }
 0x4f5   : > { %10025 = vst [vmem:[#allocation29_spill] sm:$0xff] %v7648_v45  ;;  %v7650_v27 = vpop.f32.mrb[50].mxu0 }
 0x4f6   : > { %v7654_v41 = vpop.f32.mrb[51].mxu0 }
 0x4f7   : > { %10026 = vst [vmem:[#allocation30_spill] sm:$0xff] %v7654_v41 }
 0x52f   : > { %v7658_v36 = vpop.f32.mrb[52].mxu0 }
 0x530   : > { %10027 = vst [vmem:[#allocation31_spill] sm:$0xff] %v7658_v36  ;;  %v7660_v46 = vpop.f32.mrb[53].mxu0 }
 0x531   : > { %10028 = vst [vmem:[#allocation32_spill] sm:$0xff] %v7660_v46  ;;  %v7662_v53 = vpop.f32.mrb[54].mxu0 }
 0x532   : > { %10029 = vst [vmem:[#allocation33_spill] sm:$0xff] %v7662_v53  ;;  %v7666_v35 = vpop.f32.mrb[55].mxu0 }
 0x533   : > { %10030 = vst [vmem:[#allocation34_spill] sm:$0xff] %v7666_v35 }
 0x53f   : > { %v7670_v22 = vpop.f32.mrb[56].mxu0 }
 0x540   : > { %10031 = vst [vmem:[#allocation35_spill] sm:$0xff] %v7670_v22  ;;  %v7672_v63 = vpop.f32.mrb[57].mxu0 }
 0x541   : > { %10032 = vst [vmem:[#allocation36_spill] sm:$0xff] %v7672_v63  ;;  %v7674_v18 = vpop.f32.mrb[58].mxu0 }
 0x542   : > { %10033 = vst [vmem:[#allocation37_spill] sm:$0xff] %v7674_v18  ;;  %v7678_v17 = vpop.f32.mrb[59].mxu0 }
 0x543   : > { %10034 = vst [vmem:[#allocation38_spill] sm:$0xff] %v7678_v17 }
 0x55e   : > { %v7682_v48 = vpop.f32.mrb[60].mxu0 }
 0x55f   : > { %10035 = vst [vmem:[#allocation39_spill] sm:$0xff] %v7682_v48  ;;  %v7684_v57 = vpop.f32.mrb[61].mxu0 }
 0x560   : > { %10036 = vst [vmem:[#allocation40_spill] sm:$0xff] %v7684_v57  ;;  %v7686_v12 = vpop.f32.mrb[62].mxu0 }
 0x561   : > { %10037 = vst [vmem:[#allocation41_spill] sm:$0xff] %v7686_v12  ;;  %v7690_v28 = vpop.f32.mrb[63].mxu0 }
 0x562   : > { %10038 = vst [vmem:[#allocation42_spill] sm:$0xff] %v7690_v28 }
 0x566   : > { %v5449_v37 = vpop.f32.mrb[64].mxu0 }
 0x567   : > { %v7700_v47 = vadd.f32 %v7697_v7, %v5449_v37  ;;  %v1525_v16 = vpop.f32.mrb[65].mxu0 }
 0x568   : > { %v7708_v34 = vadd.f32 %v7705_v3, %v1525_v16  ;;  %v5450_v8 = vpop.f32.mrb[66].mxu0 }
 0x569   : > { %1592 = vmax.xlane.f32.xlu0 %v7700_v47  ;;  %v1528_v13 = vpop.f32.mrb[67].mxu0  ;;  %v7718_v55 = vadd.f32 %v7715_v42, %v5450_v8 }
 0x56a   : > { %1588 = vmax.xlane.f32.xlu1 %v7708_v34  ;;  %v7731_v29 = vadd.f32 %v7728_v49, %v1528_v13  ;;  %v7755_v13 = vld [vmem:[%s9897_s4 + $0x20] sm:$0xff] }
 0x56e   : > { %v5453_v15 = vpop.f32.mrb[68].mxu0  ;;  %1594 = vmax.xlane.f32.xlu1 %v7718_v55 }
 0x56f   : > { %v1541_v51 = vpop.f32.mrb[69].mxu0  ;;  %v7740_v58 = vadd.f32 %v7737_v25, %v5453_v15 }
 0x570   : > { %v5454_v9 = vpop.f32.mrb[70].mxu0  ;;  %v1542_v15 = vadd.f32 %v7755_v13, %v1541_v51  ;;  %v7778_v51 = vld [vmem:[%s9897_s4 + $0x58] sm:$0xff] }
 0x571   : > { %v1544_v23 = vpop.f32.mrb[71].mxu0  ;;  %v7748_v30 = vadd.f32 %v7745_v5, %v5454_v9  ;;  %v7770_v9 = vld [vmem:[%s9897_s4 + $0x50] sm:$0xff] }
 0x572   : > { %v7764_v24 = vadd.f32 %v7761_v1, %v1544_v23  ;;  %v7788_v23 = vld [vmem:[%s9897_s4 + $0x40] sm:$0xff] }
 0x576   : > { %v5457_v21 = vpop.f32.mrb[72].mxu0 }
 0x577   : > { %v1557_v6 = vpop.f32.mrb[73].mxu0  ;;  %v7773_v60 = vadd.f32 %v7770_v9, %v5457_v21 }
 0x578   : > { %v5458_v37 = vpop.f32.mrb[74].mxu0  ;;  %v7791_v21 = vadd.f32 %v7788_v23, %v1557_v6 }
 0x579   : > { %v1560_v16 = vpop.f32.mrb[75].mxu0  ;;  %v7781_v31 = vadd.f32 %v7778_v51, %v5458_v37 }
 0x57a   : > { %v7799_v37 = vadd.f32 %v7796_v59, %v1560_v16 }
 0x57e   : > { %v5461_v39 = vpop.f32.mrb[76].mxu0 }
 0x57f   : > { %1879 = vrot.lane.b32.xlu0 %v7015_v26, %s6872_s23  ;;  %v1573_v4 = vpop.f32.mrb[77].mxu0  ;;  %1877 = vrot.lane.b32.xlu1 %v7007_v20, %s6872_s23  ;;  %v7809_v6 = vadd.f32 %v7806_v40, %v5461_v39 }
 0x580   : > { %v5462_v8 = vpop.f32.mrb[78].mxu0  ;;  %v7827_v39 = vadd.f32 %v7824_v61, %v1573_v4 }
 0x581   : > { %v1576_v14 = vpop.f32.mrb[79].mxu0  ;;  %v7817_v16 = vadd.f32 %v7814_v33, %v5462_v8 }
 0x582   : > { %v7835_v8 = vadd.f32 %v7832_v43, %v1576_v14 }
 0x59e   : > { %1590 = vmax.xlane.f32.xlu0 %v7731_v29 }
 0x5a2   : > { %1600 = vmax.xlane.f32.xlu0 %v7740_v58 }
 0x5a3   : > { %1602 = vmax.xlane.f32.xlu1 %v7748_v30 }
 0x5a6   : > { %1596 = vmax.xlane.f32.xlu0 %v1542_v15 }
 0x5a7   : > { %1598 = vmax.xlane.f32.xlu1 %v7764_v24 }
 0x5aa   : > { %1608 = vmax.xlane.f32.xlu0 %v7773_v60 }
 0x5ab   : > { %1610 = vmax.xlane.f32.xlu1 %v7781_v31 }
 0x5ae   : > { %1604 = vmax.xlane.f32.xlu0 %v7791_v21 }
 0x5af   : > { %1606 = vmax.xlane.f32.xlu1 %v7799_v37 }
 0x5b2   : > { %1616 = vmax.xlane.f32.xlu0 %v7809_v6 }
 0x5b3   : > { %1618 = vmax.xlane.f32.xlu1 %v7817_v16 }
 0x5b6   : > { %1612 = vmax.xlane.f32.xlu0 %v7827_v39 }
 0x5b7   : > { %1614 = vmax.xlane.f32.xlu1 %v7835_v8 }
 0x5cc   : > { %1881 = vrot.lane.b32.xlu0 %v7021_v32, %s6872_s23 }
 0x5f6   : > { %v1593_v2 = vpop.xlane.xlu0 %1592 }
 0x5f7   : > { %v1622_v54 = vsub.f32 %v7700_v47, %v1593_v2  ;;  %v1589_v4 = vpop.xlane.xlu1 %1588 }
 0x5f8   : > { %v1620_v0 = vsub.f32 %v7708_v34, %v1589_v4 }
 0x5f9   : > { %v1640_v19 = vmul.f32 1.442695, %v1622_v54 }
 0x5fa   : > { %v1636_v11 = vmul.f32 1.442695, %v1620_v0 }
 0x5fb   : > { %6388 = vpow2.f32 %v1640_v19  ;;  %v1595_v52 = vpop.xlane.xlu1 %1594 }
 0x5fc   : > { %v1623_v14 = vsub.f32 %v7718_v55, %v1595_v52  ;;  %6390 = vpow2.f32 %v1636_v11  ;;  %v7859_v11 = vpop.permute.xlu0 %1879 }
 0x5fe   : > { %v1642_v48 = vmul.f32 1.442695, %v1623_v14 }
 0x5ff   : > { %v7844_v12 = vpop.permute.xlu1 %1877 }
 0x600   : > { %5879 = vmatprep.subr.msk.bf16.mxu1 %vm542_vm1, %v7844_v12  ;;  %6392 = vpow2.f32 %v1642_v48 }
 0x605   : > { %v7848_v22 = vpop.eup %6388 }
 0x606   : > { %1672 = vadd.xlane.f32.xlu1 %v7848_v22  ;;  %v7851_v2 = vpop.eup %6390 }
 0x60a   : > { %1668 = vadd.xlane.f32.xlu1 %v7851_v2  ;;  %v7854_v0 = vpop.eup %6392 }
 0x60e   : > { %1674 = vadd.xlane.f32.xlu1 %v7854_v0 }
 0x61f   : > { %1883 = vrot.lane.b32.xlu1 %v7027_v38, %s6872_s23 }
 0x62b   : > { %v1591_v52 = vpop.xlane.xlu0 %1590 }
 0x62c   : > { %v1621_v19 = vsub.f32 %v7731_v29, %v1591_v52 }
 0x62e   : > { %v1638_v54 = vmul.f32 1.442695, %v1621_v19 }
 0x62f   : > { %v1601_v48 = vpop.xlane.xlu0 %1600 }
 0x630   : > { %6394 = vpow2.f32 %v1638_v54  ;;  %v1603_v47 = vpop.xlane.xlu1 %1602 }
 0x631   : > { %v1627_v55 = vsub.f32 %v7748_v30, %v1603_v47 }
 0x633   : > { %v1597_v34 = vpop.xlane.xlu0 %1596  ;;  %v1650_v53 = vmul.f32 1.442695, %v1627_v55 }
 0x634   : > { %v1624_v4 = vsub.f32 %v1542_v15, %v1597_v34  ;;  %v1599_v14 = vpop.xlane.xlu1 %1598 }
 0x636   : > { %v1644_v18 = vmul.f32 1.442695, %v1624_v4 }
 0x637   : > { %v1609_v36 = vpop.xlane.xlu0 %1608 }
 0x638   : > { %6396 = vpow2.f32 %v1644_v18  ;;  %v1630_v57 = vsub.f32 %v7773_v60, %v1609_v36  ;;  %v1611_v28 = vpop.xlane.xlu1 %1610 }
 0x639   : > { %6398 = vpow2.f32 %v1650_v53  ;;  %v1631_v30 = vsub.f32 %v7781_v31, %v1611_v28 }
 0x63a   : > { %v7864_v45 = vpop.eup %6394  ;;  %v1656_v52 = vmul.f32 1.442695, %v1630_v57 }
 0x63b   : > { %1670 = vadd.xlane.f32.xlu0 %v7864_v45  ;;  %v1605_v29 = vpop.xlane.xlu0 %1604  ;;  %v1658_v60 = vmul.f32 1.442695, %v1631_v30 }
 0x63c   : > { %v1628_v19 = vsub.f32 %v7791_v21, %v1605_v29  ;;  %v1607_v54 = vpop.xlane.xlu1 %1606  ;;  %6400 = vpow2.f32 %v1656_v52  ;;  %v1626_v29 = vsub.f32 %v7740_v58, %v1601_v48 }
 0x63d   : > { %v1629_v36 = vsub.f32 %v7799_v37, %v1607_v54  ;;  %v1625_v54 = vsub.f32 %v7764_v24, %v1599_v14 }
 0x63e   : > { %v1652_v15 = vmul.f32 1.442695, %v1628_v19  ;;  %v1648_v19 = vmul.f32 1.442695, %v1626_v29 }
 0x63f   : > { %v1654_v53 = vmul.f32 1.442695, %v1629_v36  ;;  %v1617_v52 = vpop.xlane.xlu0 %1616  ;;  %v1646_v30 = vmul.f32 1.442695, %v1625_v54 }
 0x640   : > { %v1619_v47 = vpop.xlane.xlu1 %1618  ;;  %6402 = vpow2.f32 %v1652_v15  ;;  %v1634_v15 = vsub.f32 %v7809_v6, %v1617_v52 }
 0x641   : > { %6404 = vpow2.f32 %v1658_v60 }
 0x642   : > { %v7869_v34 = vpop.eup %6396  ;;  %6406 = vpow2.f32 %v1654_v53  ;;  %v1664_v36 = vmul.f32 1.442695, %v1634_v15  ;;  %v1635_v53 = vsub.f32 %v7817_v16, %v1619_v47 }
 0x643   : > { %1676 = vadd.xlane.f32.xlu1 %v7869_v34  ;;  %v7873_v55 = vpop.eup %6398  ;;  %v1613_v60 = vpop.xlane.xlu0 %1612 }
 0x644   : > { %v1615_v18 = vpop.xlane.xlu1 %1614  ;;  %v1666_v24 = vmul.f32 1.442695, %v1635_v53 }
 0x645   : > { %v1633_v57 = vsub.f32 %v7835_v8, %v1615_v18  ;;  %v1632_v18 = vsub.f32 %v7827_v39, %v1613_v60 }
 0x646   : > { %v7877_v31 = vpop.eup %6400 }
 0x647   : > { %1682 = vadd.xlane.f32.xlu1 %v7873_v55  ;;  %v1662_v28 = vmul.f32 1.442695, %v1633_v57  ;;  %v1660_v58 = vmul.f32 1.442695, %v1632_v18  ;;  %v1882_v29 = vpop.permute.xlu0 %1881 }
 0x649   : > { %6408 = vpow2.f32 %v1662_v28 }
 0x64a   : > { %v7880_v21 = vpop.eup %6402  ;;  %6410 = vpow2.f32 %v1648_v19 }
 0x64b   : > { %1688 = vadd.xlane.f32.xlu1 %v7877_v31  ;;  %v7885_v37 = vpop.eup %6404  ;;  %6412 = vpow2.f32 %v1646_v30 }
 0x64c   : > { %v7888_v4 = vpop.eup %6406  ;;  %6414 = vpow2.f32 %v1664_v36 }
 0x64d   : > { %6416 = vpow2.f32 %v1660_v58 }
 0x64e   : > { %6418 = vpow2.f32 %v1666_v24 }
 0x64f   : > { %1684 = vadd.xlane.f32.xlu1 %v7880_v21 }
 0x651   : > { %1885 = vrot.lane.b32.xlu0 %v7033_v44, %s6872_s23 }
 0x653   : > { %1690 = vadd.xlane.f32.xlu1 %v7885_v37  ;;  %v7891_v8 = vpop.eup %6408 }
 0x654   : > { %v7901_v48 = vpop.eup %6410 }
 0x655   : > { %v7906_v6 = vpop.eup %6412 }
 0x656   : > { %v7911_v16 = vpop.eup %6414 }
 0x657   : > { %1686 = vadd.xlane.f32.xlu1 %v7888_v4  ;;  %v7916_v39 = vpop.eup %6416 }
 0x658   : > { %v7921_v14 = vpop.eup %6418 }
 0x65b   : > { %1694 = vadd.xlane.f32.xlu1 %v7891_v8 }
 0x66c   : > { %1887 = vrot.lane.b32.xlu1 %v7039_v50, %s6872_s23 }
 0x670   : > { %1680 = vadd.xlane.f32.xlu0 %v7901_v48  ;;  %1861 = vrot.lane.b32.xlu1 %v7007_v20, %s6873_s20 }
 0x674   : > { %1678 = vadd.xlane.f32.xlu0 %v7906_v6  ;;  %1865 = vrot.lane.b32.xlu1 %v7021_v32, %s6873_s20 }
 0x678   : > { %1696 = vadd.xlane.f32.xlu0 %v7911_v16  ;;  %1869 = vrot.lane.b32.xlu1 %v7033_v44, %s6873_s20 }
 0x67c   : > { %1692 = vadd.xlane.f32.xlu0 %v7916_v39  ;;  %1873 = vrot.lane.b32.xlu1 %v7045_v56, %s6873_s20 }
 0x680   : > { %1698 = vadd.xlane.f32.xlu0 %v7921_v14  ;;  %2192 = vrot.lane.b32.xlu1 %v7015_v26, %s6874_s21 }
 0x684   : > { %2196 = vrot.lane.b32.xlu1 %v7027_v38, %s6874_s21 }
 0x688   : > { %2202 = vrot.lane.b32.xlu1 %v7045_v56, %s6874_s21 }
 0x693   : > { %v1673_v47 = vpop.xlane.xlu1 %1672 }
 0x696   : > { %1889 = vrot.lane.b32.xlu0 %v7045_v56, %s6872_s23 }
 0x697   : > { %v1669_v57 = vpop.xlane.xlu1 %1668 }
 0x69a   : > { %1891 = vrot.lane.b32.xlu0 %v7053_v62, %s6872_s23 }
 0x69b   : > { %v1675_v28 = vpop.xlane.xlu1 %1674 }
 0x69c   : > { %6420 = vrcp.f32 %v1675_v28 }
 0x69d   : > { %6422 = vrcp.f32 %v1669_v57 }
 0x69e   : > { %1863 = vrot.lane.b32.xlu0 %v7015_v26, %s6873_s20  ;;  %6424 = vrcp.f32 %v1673_v47  ;;  %v1918_v47 = vsel %vm542_vm1, %v7844_v12, 0 }
 0x69f   : > { %v1884_v19 = vpop.permute.xlu1 %1883 }
 0x6a0   : > { %v1927_v12 = vsel %vm542_vm1, %v1884_v19, 0 }
 0x6a2   : > { %1867 = vrot.lane.b32.xlu0 %v7027_v38, %s6873_s20 }
 0x6a6   : > { %1871 = vrot.lane.b32.xlu0 %v7039_v50, %s6873_s20  ;;  %v6421_v54 = vpop.eup %6420 }
 0x6a7   : > { %v6423_v15 = vpop.eup %6422  ;;  %v1719_v18 = vmul.f32 %v6421_v54, %v7854_v0 }
 0x6a8   : > { %v6425_v60 = vpop.eup %6424  ;;  %v1716_v53 = vmul.f32 %v6423_v15, %v7851_v2  ;;  %v1921_v2 = vsel %vm542_vm1, %v7859_v11, 0 }
 0x6a9   : > { %v1718_v24 = vmul.f32 %v6425_v60, %v7848_v22  ;;  %v1924_v22 = vsel %vm542_vm1, %v1882_v29, 0 }
 0x6aa   : > { %1875 = vrot.lane.b32.xlu0 %v7053_v62, %s6873_s20 }
 0x6ab   : > { %v1733_v57 = vpack.c.bf16 %v1719_v18, %v1718_v24 }
 0x6ae   : > { %2190 = vrot.lane.b32.xlu0 %v7007_v20, %s6874_s21 }
 0x6b2   : > { %2194 = vrot.lane.b32.xlu0 %v7021_v32, %s6874_s21 }
 0x6b6   : > { %2198 = vrot.lane.b32.xlu0 %v7033_v44, %s6874_s21 }
 0x6ba   : > { %2200 = vrot.lane.b32.xlu0 %v7039_v50, %s6874_s21 }
 0x6be   : > { %2204 = vrot.lane.b32.xlu0 %v7053_v62, %s6874_s21 }
 0x6c8   : > { %v1671_v52 = vpop.xlane.xlu0 %1670 }
 0x6c9   : > { %6426 = vrcp.f32 %v1671_v52 }
 0x6cc   : > { %v1886_v15 = vpop.permute.xlu0 %1885 }
 0x6d0   : > { %v1677_v30 = vpop.xlane.xlu1 %1676 }
 0x6d1   : > { %6428 = vrcp.f32 %v1677_v30 }
 0x6d3   : > { %v6427_v36 = vpop.eup %6426 }
 0x6d4   : > { %v1717_v58 = vmul.f32 %v6427_v36, %v7864_v45  ;;  %v1683_v41 = vpop.xlane.xlu1 %1682 }
 0x6d5   : > { %6430 = vrcp.f32 %v1683_v41 }
 0x6d6   : > { %v1732_v28 = vpack.c.bf16 %v1717_v58, %v1716_v53 }
 0x6d8   : > { %5479 = vmatprep.mubr.bf16.mxu1 %v1732_v28  ;;  %v1689_v52 = vpop.xlane.xlu1 %1688 }
 0x6d9   : > { %5480 = vmatmul.mubr.bf16.vlgmr.msra.gmra.mrb[32].mxu1 %v1733_v57 }
 0x6da   : > { %5496 = vmatpush3.bf16.xpose.msra.mxu1 %v1918_v47 }
 0x6db   : > { %5880 = vmatprep.subr.msk.bf16.mxu1 %vm542_vm1, %v7859_v11  ;;  %v1930_v11 = vsel %vm542_vm1, %v1886_v15, 0  ;;  %v6429_v58 = vpop.eup %6428 }
 0x6dc   : > { %v1685_v0 = vpop.xlane.xlu1 %1684 }
 0x6df   : > { %v6431_v24 = vpop.eup %6430 }
 0x6e0   : > { %v1691_v45 = vpop.xlane.xlu1 %1690 }
 0x6e2   : > { %5498 = vmatpush3.bf16.xpose.msra.mxu1 %v1921_v2 }
 0x6e3   : > { %5881 = vmatprep.subr.msk.bf16.mxu1 %vm542_vm1, %v1882_v29 }
 0x6e4   : > { %v1687_v54 = vpop.xlane.xlu1 %1686 }
 0x6e8   : > { %v1695_v60 = vpop.xlane.xlu1 %1694 }
 0x6ea   : > { %5500 = vmatpush3.bf16.xpose.msra.mxu1 %v1924_v22  ;;  %v1720_v22 = vmul.f32 %v6429_v58, %v7869_v34 }
 0x6eb   : > { %5882 = vmatprep.subr.msk.bf16.mxu1 %vm542_vm1, %v1884_v19 }
 0x6ec   : > { %v1888_v36 = vpop.permute.xlu1 %1887 }
 0x6ed   : > { %v1933_v19 = vsel %vm542_vm1, %v1888_v36, 0 }
 0x6f2   : > { %5502 = vmatpush3.bf16.xpose.msra.mxu1 %v1927_v12 }
 0x6f3   : > { %5883 = vmatprep.subr.msk.bf16.mxu1 %vm542_vm1, %v1886_v15 }
 0x6fa   : > { %5504 = vmatpush3.bf16.xpose.msra.mxu1 %v1930_v11 }
 0x6fb   : > { %5884 = vmatprep.subr.msk.bf16.mxu1 %vm542_vm1, %v1888_v36 }
 0x6fd   : > { %v1681_v18 = vpop.xlane.xlu0 %1680 }
 0x6fe   : > { %6432 = vrcp.f32 %v1681_v18 }
 0x6ff   : > { %6434 = vrcp.f32 %v1687_v54 }
 0x700   : > { %6436 = vrcp.f32 %v1685_v0 }
 0x701   : > { %v1679_v29 = vpop.xlane.xlu0 %1678 }
 0x702   : > { %6438 = vrcp.f32 %v1679_v29  ;;  %5506 = vmatpush3.bf16.xpose.msra.mxu1 %v1933_v19 }
 0x703   : > { %6440 = vrcp.f32 %v1691_v45  ;;  %v1723_v45 = vmul.f32 %v6431_v24, %v7873_v55 }
 0x704   : > { %6442 = vrcp.f32 %v1689_v52 }
 0x705   : > { %v1697_v53 = vpop.xlane.xlu0 %1696  ;;  %6444 = vrcp.f32 %v1695_v60 }
 0x708   : > { %v6433_v28 = vpop.eup %6432 }
 0x709   : > { %v1693_v57 = vpop.xlane.xlu0 %1692  ;;  %v6435_v47 = vpop.eup %6434  ;;  %v1722_v2 = vmul.f32 %v6433_v28, %v7901_v48 }
 0x70a   : > { %6446 = vrcp.f32 %v1693_v57  ;;  %v6437_v30 = vpop.eup %6436  ;;  %v1725_v12 = vmul.f32 %v6435_v47, %v7888_v4  ;;  %v1862_v4 = vpop.permute.xlu1 %1861 }
 0x70b   : > { %v1724_v15 = vmul.f32 %v6437_v30, %v7880_v21  ;;  %v1735_v60 = vpack.c.bf16 %v1723_v45, %v1722_v2 }
 0x70c   : > { %v6439_v41 = vpop.eup %6438 }
 0x70d   : > { %v1699_v0 = vpop.xlane.xlu0 %1698  ;;  %v1721_v54 = vmul.f32 %v6439_v41, %v7906_v6  ;;  %v6441_v11 = vpop.eup %6440  ;;  %v1736_v18 = vpack.c.bf16 %v1725_v12, %v1724_v15 }
 0x70e   : > { %6448 = vrcp.f32 %v1699_v0  ;;  %v6443_v48 = vpop.eup %6442  ;;  %v1727_v29 = vmul.f32 %v6441_v11, %v7885_v37  ;;  %v1866_v57 = vpop.permute.xlu1 %1865 }
 0x70f   : > { %v1734_v52 = vpack.c.bf16 %v1721_v54, %v1720_v22  ;;  %6450 = vrcp.f32 %v1697_v53  ;;  %v6445_v6 = vpop.eup %6444  ;;  %v1726_v53 = vmul.f32 %v6443_v48, %v7877_v31 }
 0x710   : > { %v1729_v58 = vmul.f32 %v6445_v6, %v7891_v8 }
 0x711   : > { %v1890_v36 = vpop.permute.xlu0 %1889  ;;  %5483 = vmatprep.mubr.bf16.mxu1 %v1734_v52  ;;  %v1737_v24 = vpack.c.bf16 %v1727_v29, %v1726_v53 }
 0x712   : > { %5484 = vmatmul.mubr.bf16.gmra.mrb[36].mxu1 %v1735_v60  ;;  %5885 = vmatprep.subr.msk.bf16.mxu1 %vm542_vm1, %v1890_v36  ;;  %v1936_v34 = vsel %vm542_vm1, %v1890_v36, 0  ;;  %v1870_v22 = vpop.permute.xlu1 %1869 }
 0x713   : > { %5487 = vmatprep.mubr.bf16.mxu1 %v1736_v18  ;;  %5508 = vmatpush3.bf16.xpose.msra.mxu1 %v1936_v34 }
 0x714   : > { %v6447_v55 = vpop.eup %6446 }
 0x715   : > { %v1892_v21 = vpop.permute.xlu0 %1891  ;;  %v1728_v19 = vmul.f32 %v6447_v55, %v7916_v39 }
 0x716   : > { %5886 = vmatprep.subr.msk.bf16.mxu1 %vm542_vm1, %v1892_v21  ;;  %v1939_v41 = vsel %vm542_vm1, %v1892_v21, 0  ;;  %v1874_v8 = vpop.permute.xlu1 %1873 }
 0x717   : > { %v1738_v30 = vpack.c.bf16 %v1729_v58, %v1728_v19 }
 0x718   : > { %v6449_v28 = vpop.eup %6448 }
 0x719   : > { %v1864_v47 = vpop.permute.xlu0 %1863  ;;  %v6451_v2 = vpop.eup %6450  ;;  %v1731_v37 = vmul.f32 %v6449_v28, %v7921_v14 }
 0x71a   : > { %5488 = vmatmul.mubr.bf16.gmra.mrb[40].mxu1 %v1737_v24  ;;  %v1730_v0 = vmul.f32 %v6451_v2, %v7911_v16  ;;  %v2193_v52 = vpop.permute.xlu1 %2192 }
 0x71b   : > { %5491 = vmatprep.mubr.bf16.mxu1 %v1738_v30  ;;  %5510 = vmatpush3.bf16.xpose.msra.mxu1 %v1939_v41 }
 0x71c   : > { %v1739_v31 = vpack.c.bf16 %v1731_v37, %v1730_v0 }
 0x71d   : > { %v1868_v39 = vpop.permute.xlu0 %1867 }
 0x71e   : > { %v2197_v16 = vpop.permute.xlu1 %2196 }
 0x721   : > { %v1872_v54 = vpop.permute.xlu0 %1871 }
 0x722   : > { %5492 = vmatmul.mubr.bf16.gmra.mrb[44].mxu1 %v1739_v31  ;;  %v2203_v11 = vpop.permute.xlu1 %2202 }
 0x723   : > { %5511 = vmatprep.mubr.msk.bf16.mxu1 %vm542_vm1, %v1862_v4 }
 0x725   : > { %v1876_v12 = vpop.permute.xlu0 %1875 }
 0x729   : > { %v2191_v45 = vpop.permute.xlu0 %2190 }
 0x72a   : > { %5512 = vmatmul.mubr.msk.bf16.vlgmr.msra.gmra.mrb[48].mxu1 %vm542_vm1, %v1864_v47  ;;  %5527 = vmatprep.subr.bf16.mxu0 %v2191_v45 }
 0x72b   : > { %5515 = vmatprep.mubr.msk.bf16.mxu1 %vm542_vm1, %v1866_v57  ;;  %5528 = vmatpush3.bf16.msra.mxu0 %v2191_v45 }
 0x72c   : > { %5529 = vmatprep.subr.bf16.mxu0 %v2193_v52 }
 0x72d   : > { %v2195_v14 = vpop.permute.xlu0 %2194 }
 0x72f   : > { %5530 = vmatpush3.bf16.msra.mxu0 %v2193_v52 }
 0x730   : > { %5531 = vmatprep.subr.bf16.mxu0 %v2195_v14 }
 0x731   : > { %v2199_v15 = vpop.permute.xlu0 %2198 }
 0x732   : > { %5516 = vmatmul.mubr.msk.bf16.gmra.mrb[52].mxu1 %vm542_vm1, %v1868_v39 }
 0x733   : > { %5519 = vmatprep.mubr.msk.bf16.mxu1 %vm542_vm1, %v1870_v22  ;;  %5532 = vmatpush3.bf16.msra.mxu0 %v2195_v14 }
 0x734   : > { %5533 = vmatprep.subr.bf16.mxu0 %v2197_v16 }
 0x735   : > { %v2201_v60 = vpop.permute.xlu0 %2200 }
 0x737   : > { %5534 = vmatpush3.bf16.msra.mxu0 %v2197_v16 }
 0x738   : > { %5535 = vmatprep.subr.bf16.mxu0 %v2199_v15 }
 0x739   : > { %v2205_v36 = vpop.permute.xlu0 %2204 }
 0x73a   : > { %5520 = vmatmul.mubr.msk.bf16.gmra.mrb[56].mxu1 %vm542_vm1, %v1872_v54 }
 0x73b   : > { %5523 = vmatprep.mubr.msk.bf16.mxu1 %vm542_vm1, %v1874_v8  ;;  %5536 = vmatpush3.bf16.msra.mxu0 %v2199_v15 }
 0x73c   : > { %5537 = vmatprep.subr.bf16.mxu0 %v2201_v60 }
 0x73f   : > { %5538 = vmatpush3.bf16.msra.mxu0 %v2201_v60 }
 0x740   : > { %5539 = vmatprep.subr.bf16.mxu0 %v2203_v11 }
 0x742   : > { %5524 = vmatmul.mubr.msk.bf16.gmra.mrb[60].mxu1 %vm542_vm1, %v1876_v12 }
 0x743   : > { %5540 = vmatpush3.bf16.msra.mxu0 %v2203_v11 }
 0x744   : > { %5541 = vmatprep.subr.bf16.mxu0 %v2205_v36 }
 0x747   : > { %5542 = vmatpush3.bf16.msra.mxu0 %v2205_v36 }
 0x7ac   : > { %v7994_v18 = vpop.f32.mrb[32].mxu1 }
 0x7ad   : > { %10039 = vst [vmem:[#allocation43_spill] sm:$0xff] %v7994_v18  ;;  %v7996_v48 = vpop.f32.mrb[33].mxu1 }
 0x7ae   : > { %v7998_v34 = vpop.f32.mrb[34].mxu1 }
 0x7af   : > { %10040 = vst [vmem:[#allocation44_spill] sm:$0xff] %v7998_v34  ;;  %v8002_v4 = vpop.f32.mrb[35].mxu1 }
 0x7e5   : > { %v8006_v29 = vpop.f32.mrb[36].mxu1 }
 0x7e6   : > { %10041 = vst [vmem:[#allocation45_spill] sm:$0xff] %v8006_v29  ;;  %v8008_v21 = vpop.f32.mrb[37].mxu1  ;;  %v8369_v29 = vld [vmem:[%s9897_s4 + $0x40] sm:$0xff] }
 0x7e7   : > { %10042 = vst [vmem:[#allocation46_spill] sm:$0xff] %v8008_v21  ;;  %v8010_v19 = vpop.f32.mrb[38].mxu1 }
 0x7e8   : > { %10043 = vst [vmem:[#allocation47_spill] sm:$0xff] %v8010_v19  ;;  %v8014_v58 = vpop.f32.mrb[39].mxu1  ;;  %v8377_v19 = vld [vmem:[%s9897_s4 + $0x48] sm:$0xff] }
 0x7e9   : > { %10044 = vst [vmem:[#allocation48_spill] sm:$0xff] %v8014_v58 }
 0x7ed   : > { %v8018_v28 = vpop.f32.mrb[40].mxu1 }
 0x7ee   : > { %10045 = vst [vmem:[#allocation49_spill] sm:$0xff] %v8018_v28  ;;  %v8020_v57 = vpop.f32.mrb[41].mxu1 }
 0x7ef   : > { %10046 = vst [vmem:[#allocation50_spill] sm:$0xff] %v8020_v57  ;;  %v8022_v47 = vpop.f32.mrb[42].mxu1 }
 0x7f0   : > { %10047 = vst [vmem:[#allocation51_spill] sm:$0xff] %v8022_v47  ;;  %v8026_v41 = vpop.f32.mrb[43].mxu1  ;;  %v8341_v47 = vld [vmem:[%s9897_s4 + $0x28] sm:$0xff] }
 0x7f1   : > { %10048 = vst [vmem:[#allocation52_spill] sm:$0xff] %v8026_v41 }
 0x7f5   : > { %v8030_v37 = vpop.f32.mrb[44].mxu1 }
 0x7f6   : > { %10049 = vst [vmem:[#allocation53_spill] sm:$0xff] %v8030_v37  ;;  %v8032_v39 = vpop.f32.mrb[45].mxu1 }
 0x7f7   : > { %10050 = vst [vmem:[#allocation54_spill] sm:$0xff] %v8032_v39  ;;  %v8034_v0 = vpop.f32.mrb[46].mxu1  ;;  %v8405_v39 = vld [vmem:[%s9897_s4 + $0x60] sm:$0xff] }
 0x7f8   : > { %10051 = vst [vmem:[#allocation55_spill] sm:$0xff] %v8034_v0  ;;  %v8038_v31 = vpop.f32.mrb[47].mxu1  ;;  %v8315_v0 = vld [vmem:[%s9897_s4 + $0x30] sm:$0xff] }
 0x7f9   : > { %10052 = vst [vmem:[#allocation56_spill] sm:$0xff] %v8038_v31  ;;  %v8413_v31 = vld [vmem:[%s9897_s4 + $0x68] sm:$0xff] }
 0x7fd   : > { %v5513_v8 = vpop.f32.mrb[48].mxu1 }
 0x7fe   : > { %v1984_v12 = vadd.f32 %v7697_v7, %v5513_v8  ;;  %v1975_v45 = vpop.f32.mrb[49].mxu1 }
 0x7ff   : > { %v1976_v52 = vadd.f32 %v7705_v3, %v1975_v45  ;;  %v5514_v14 = vpop.f32.mrb[50].mxu1 }
 0x800   : > { %2042 = vmax.xlane.f32.xlu0 %v1984_v12  ;;  %v1978_v16 = vpop.f32.mrb[51].mxu1  ;;  %v1987_v15 = vadd.f32 %v7715_v42, %v5514_v14 }
 0x801   : > { %2038 = vmax.xlane.f32.xlu1 %v1976_v52  ;;  %v1979_v8 = vadd.f32 %v7728_v49, %v1978_v16 }
 0x805   : > { %2044 = vmax.xlane.f32.xlu1 %v1987_v15  ;;  %v5517_v60 = vpop.f32.mrb[52].mxu1 }
 0x806   : > { %v1991_v11 = vpop.f32.mrb[53].mxu1  ;;  %v8051_v45 = vadd.f32 %v7737_v25, %v5517_v60 }
 0x807   : > { %v5518_v36 = vpop.f32.mrb[54].mxu1  ;;  %v1992_v24 = vadd.f32 %v7755_v13, %v1991_v11 }
 0x808   : > { %v1994_v22 = vpop.f32.mrb[55].mxu1  ;;  %v2003_v14 = vadd.f32 %v7745_v5, %v5518_v36 }
 0x809   : > { %v8057_v55 = vadd.f32 %v7761_v1, %v1994_v22 }
 0x80d   : > { %v5521_v30 = vpop.f32.mrb[56].mxu1 }
 0x80e   : > { %v2007_v53 = vpop.f32.mrb[57].mxu1  ;;  %v2016_v37 = vadd.f32 %v7770_v9, %v5521_v30 }
 0x80f   : > { %v5522_v54 = vpop.f32.mrb[58].mxu1  ;;  %v2008_v5 = vadd.f32 %v7788_v23, %v2007_v53 }
 0x810   : > { %v2010_v6 = vpop.f32.mrb[59].mxu1  ;;  %v8062_v49 = vadd.f32 %v7778_v51, %v5522_v54 }
 0x811   : > { %v8067_v25 = vadd.f32 %v7796_v59, %v2010_v6 }
 0x815   : > { %v5525_v2 = vpop.f32.mrb[60].mxu1 }
 0x816   : > { %2329 = vrot.lane.b32.xlu0 %v7015_v26, %s6875_s19  ;;  %2327 = vrot.lane.b32.xlu1 %v7007_v20, %s6875_s19  ;;  %v2023_v7 = vpop.f32.mrb[61].mxu1  ;;  %v8071_v1 = vadd.f32 %v7806_v40, %v5525_v2 }
 0x817   : > { %v5526_v3 = vpop.f32.mrb[62].mxu1  ;;  %v8079_v9 = vadd.f32 %v7824_v61, %v2023_v7 }
 0x818   : > { %v2026_v42 = vpop.f32.mrb[63].mxu1  ;;  %v8074_v13 = vadd.f32 %v7814_v33, %v5526_v3 }
 0x819   : > { %v8082_v51 = vadd.f32 %v7832_v43, %v2026_v42 }
 0x835   : > { %2040 = vmax.xlane.f32.xlu0 %v1979_v8 }
 0x839   : > { %2050 = vmax.xlane.f32.xlu0 %v8051_v45 }
 0x83a   : > { %2052 = vmax.xlane.f32.xlu1 %v2003_v14 }
 0x83d   : > { %2046 = vmax.xlane.f32.xlu0 %v1992_v24 }
 0x83e   : > { %2048 = vmax.xlane.f32.xlu1 %v8057_v55 }
 0x841   : > { %2058 = vmax.xlane.f32.xlu0 %v2016_v37 }
 0x842   : > { %2060 = vmax.xlane.f32.xlu1 %v8062_v49 }
 0x845   : > { %2054 = vmax.xlane.f32.xlu0 %v2008_v5 }
 0x846   : > { %2056 = vmax.xlane.f32.xlu1 %v8067_v25 }
 0x849   : > { %2066 = vmax.xlane.f32.xlu0 %v8071_v1 }
 0x84a   : > { %2068 = vmax.xlane.f32.xlu1 %v8074_v13 }
 0x84d   : > { %2062 = vmax.xlane.f32.xlu0 %v8079_v9 }
 0x84e   : > { %2064 = vmax.xlane.f32.xlu1 %v8082_v51 }
 0x863   : > { %2331 = vrot.lane.b32.xlu0 %v7021_v32, %s6875_s19 }
 0x88d   : > { %v2043_v40 = vpop.xlane.xlu0 %2042 }
 0x88e   : > { %v2072_v33 = vsub.f32 %v1984_v12, %v2043_v40  ;;  %v2039_v59 = vpop.xlane.xlu1 %2038 }
 0x88f   : > { %v2070_v23 = vsub.f32 %v1976_v52, %v2039_v59 }
 0x890   : > { %v2090_v6 = vmul.f32 1.442695, %v2072_v33 }
 0x891   : > { %v2086_v53 = vmul.f32 1.442695, %v2070_v23  ;;  %v8103_v52 = vpop.permute.xlu0 %2329 }
 0x892   : > { %6452 = vpow2.f32 %v2090_v6  ;;  %v2045_v30 = vpop.xlane.xlu1 %2044 }
 0x893   : > { %v2073_v61 = vsub.f32 %v1987_v15, %v2045_v30  ;;  %6454 = vpow2.f32 %v2086_v53 }
 0x895   : > { %v2092_v2 = vmul.f32 1.442695, %v2073_v61 }
 0x896   : > { %v8088_v43 = vpop.permute.xlu1 %2327 }
 0x897   : > { %5887 = vmatprep.subr.msk.bf16.mxu0 %vm542_vm1, %v8088_v43  ;;  %6456 = vpow2.f32 %v2092_v2 }
 0x89c   : > { %v8092_v22 = vpop.eup %6452 }
 0x89d   : > { %2122 = vadd.xlane.f32.xlu1 %v8092_v22  ;;  %v8095_v54 = vpop.eup %6454 }
 0x8a1   : > { %2118 = vadd.xlane.f32.xlu1 %v8095_v54  ;;  %v8098_v12 = vpop.eup %6456 }
 0x8a5   : > { %2124 = vadd.xlane.f32.xlu1 %v8098_v12 }
 0x8b6   : > { %2333 = vrot.lane.b32.xlu1 %v7027_v38, %s6875_s19 }
 0x8c2   : > { %v2041_v16 = vpop.xlane.xlu0 %2040 }
 0x8c3   : > { %v2071_v15 = vsub.f32 %v1979_v8, %v2041_v16 }
 0x8c5   : > { %v2088_v60 = vmul.f32 1.442695, %v2071_v15 }
 0x8c6   : > { %v2051_v11 = vpop.xlane.xlu0 %2050 }
 0x8c7   : > { %6458 = vpow2.f32 %v2088_v60  ;;  %v2053_v36 = vpop.xlane.xlu1 %2052 }
 0x8c8   : > { %v2077_v3 = vsub.f32 %v2003_v14, %v2053_v36 }
 0x8ca   : > { %v2047_v7 = vpop.xlane.xlu0 %2046  ;;  %v2100_v23 = vmul.f32 1.442695, %v2077_v3 }
 0x8cb   : > { %v2074_v42 = vsub.f32 %v1992_v24, %v2047_v7  ;;  %v2049_v40 = vpop.xlane.xlu1 %2048 }
 0x8cd   : > { %v2094_v33 = vmul.f32 1.442695, %v2074_v42 }
 0x8ce   : > { %v2059_v59 = vpop.xlane.xlu0 %2058 }
 0x8cf   : > { %6460 = vpow2.f32 %v2094_v33  ;;  %v2080_v6 = vsub.f32 %v2016_v37, %v2059_v59  ;;  %v2061_v53 = vpop.xlane.xlu1 %2060 }
 0x8d0   : > { %6462 = vpow2.f32 %v2100_v23  ;;  %v2081_v14 = vsub.f32 %v8062_v49, %v2061_v53 }
 0x8d1   : > { %v8105_v30 = vpop.eup %6458  ;;  %v2106_v8 = vmul.f32 1.442695, %v2080_v6  ;;  %v2076_v6 = vsub.f32 %v8051_v45, %v2051_v11 }
 0x8d2   : > { %v2055_v61 = vpop.xlane.xlu0 %2054  ;;  %2120 = vadd.xlane.f32.xlu0 %v8105_v30  ;;  %v2108_v37 = vmul.f32 1.442695, %v2081_v14 }
 0x8d3   : > { %v2078_v2 = vsub.f32 %v2008_v5, %v2055_v61  ;;  %v2057_v16 = vpop.xlane.xlu1 %2056  ;;  %6464 = vpow2.f32 %v2106_v8  ;;  %v2098_v61 = vmul.f32 1.442695, %v2076_v6  ;;  %v2075_v8 = vsub.f32 %v8057_v55, %v2049_v40 }
 0x8d4   : > { %v2079_v36 = vsub.f32 %v8067_v25, %v2057_v16 }
 0x8d5   : > { %v2102_v24 = vmul.f32 1.442695, %v2078_v2  ;;  %v2096_v2 = vmul.f32 1.442695, %v2075_v8 }
 0x8d6   : > { %v2104_v5 = vmul.f32 1.442695, %v2079_v36  ;;  %v2067_v53 = vpop.xlane.xlu0 %2066 }
 0x8d7   : > { %v2069_v15 = vpop.xlane.xlu1 %2068  ;;  %6466 = vpow2.f32 %v2102_v24  ;;  %v2084_v16 = vsub.f32 %v8071_v1, %v2067_v53 }
 0x8d8   : > { %6468 = vpow2.f32 %v2108_v37  ;;  %v2085_v36 = vsub.f32 %v8074_v13, %v2069_v15 }
 0x8d9   : > { %v8109_v60 = vpop.eup %6460  ;;  %6470 = vpow2.f32 %v2104_v5  ;;  %v2114_v24 = vmul.f32 1.442695, %v2084_v16 }
 0x8da   : > { %2126 = vadd.xlane.f32.xlu1 %v8109_v60  ;;  %v8113_v3 = vpop.eup %6462  ;;  %v2063_v14 = vpop.xlane.xlu0 %2062  ;;  %v2116_v55 = vmul.f32 1.442695, %v2085_v36 }
 0x8db   : > { %v2065_v7 = vpop.xlane.xlu1 %2064  ;;  %v2082_v37 = vsub.f32 %v8079_v9, %v2063_v14 }
 0x8dc   : > { %v2083_v42 = vsub.f32 %v8082_v51, %v2065_v7 }
 0x8dd   : > { %v8117_v49 = vpop.eup %6464  ;;  %v2110_v45 = vmul.f32 1.442695, %v2082_v37 }
 0x8de   : > { %2132 = vadd.xlane.f32.xlu1 %v8113_v3  ;;  %v2112_v33 = vmul.f32 1.442695, %v2083_v42  ;;  %v2332_v42 = vpop.permute.xlu0 %2331 }
 0x8e0   : > { %6472 = vpow2.f32 %v2112_v33 }
 0x8e1   : > { %v8120_v59 = vpop.eup %6466  ;;  %6474 = vpow2.f32 %v2098_v61 }
 0x8e2   : > { %2138 = vadd.xlane.f32.xlu1 %v8117_v49  ;;  %v8125_v25 = vpop.eup %6468  ;;  %6476 = vpow2.f32 %v2096_v2 }
 0x8e3   : > { %v8128_v23 = vpop.eup %6470  ;;  %6478 = vpow2.f32 %v2114_v24 }
 0x8e4   : > { %6480 = vpow2.f32 %v2110_v45 }
 0x8e5   : > { %6482 = vpow2.f32 %v2116_v55 }
 0x8e6   : > { %2134 = vadd.xlane.f32.xlu1 %v8120_v59 }
 0x8e8   : > { %2335 = vrot.lane.b32.xlu0 %v7033_v44, %s6875_s19 }
 0x8ea   : > { %2140 = vadd.xlane.f32.xlu1 %v8125_v25  ;;  %v8131_v51 = vpop.eup %6472 }
 0x8eb   : > { %v8141_v11 = vpop.eup %6474 }
 0x8ec   : > { %v8146_v1 = vpop.eup %6476 }
 0x8ed   : > { %v8151_v13 = vpop.eup %6478 }
 0x8ee   : > { %2136 = vadd.xlane.f32.xlu1 %v8128_v23  ;;  %v8156_v9 = vpop.eup %6480 }
 0x8ef   : > { %v8161_v40 = vpop.eup %6482 }
 0x8f2   : > { %2144 = vadd.xlane.f32.xlu1 %v8131_v51 }
 0x903   : > { %2337 = vrot.lane.b32.xlu1 %v7039_v50, %s6875_s19 }
 0x907   : > { %2130 = vadd.xlane.f32.xlu0 %v8141_v11  ;;  %2311 = vrot.lane.b32.xlu1 %v7007_v20, %s6876_s22 }
 0x90b   : > { %2128 = vadd.xlane.f32.xlu0 %v8146_v1  ;;  %2315 = vrot.lane.b32.xlu1 %v7021_v32, %s6876_s22 }
 0x90f   : > { %2146 = vadd.xlane.f32.xlu0 %v8151_v13  ;;  %2319 = vrot.lane.b32.xlu1 %v7033_v44, %s6876_s22 }
 0x913   : > { %2142 = vadd.xlane.f32.xlu0 %v8156_v9  ;;  %2323 = vrot.lane.b32.xlu1 %v7045_v56, %s6876_s22 }
 0x917   : > { %2148 = vadd.xlane.f32.xlu0 %v8161_v40  ;;  %2642 = vrot.lane.b32.xlu1 %v7015_v26, %s6877_s24 }
 0x92a   : > { %v2123_v15 = vpop.xlane.xlu1 %2122 }
 0x92d   : > { %2339 = vrot.lane.b32.xlu0 %v7045_v56, %s6875_s19 }
 0x92e   : > { %v2119_v7 = vpop.xlane.xlu1 %2118 }
 0x931   : > { %2341 = vrot.lane.b32.xlu0 %v7053_v62, %s6875_s19 }
 0x932   : > { %v2125_v5 = vpop.xlane.xlu1 %2124 }
 0x933   : > { %6484 = vrcp.f32 %v2125_v5 }
 0x934   : > { %6486 = vrcp.f32 %v2119_v7 }
 0x935   : > { %2313 = vrot.lane.b32.xlu0 %v7015_v26, %s6876_s22  ;;  %6488 = vrcp.f32 %v2123_v15  ;;  %v2368_v15 = vsel %vm542_vm1, %v8088_v43, 0 }
 0x936   : > { %v2334_v6 = vpop.permute.xlu1 %2333 }
 0x937   : > { %v2377_v43 = vsel %vm542_vm1, %v2334_v6, 0 }
 0x939   : > { %2317 = vrot.lane.b32.xlu0 %v7027_v38, %s6876_s22 }
 0x93d   : > { %2321 = vrot.lane.b32.xlu0 %v7039_v50, %s6876_s22  ;;  %v6485_v53 = vpop.eup %6484 }
 0x93e   : > { %v6487_v8 = vpop.eup %6486  ;;  %v2169_v14 = vmul.f32 %v6485_v53, %v8098_v12 }
 0x93f   : > { %v6489_v2 = vpop.eup %6488  ;;  %v2166_v24 = vmul.f32 %v6487_v8, %v8095_v54  ;;  %v2371_v54 = vsel %vm542_vm1, %v8103_v52, 0 }
 0x940   : > { %v2168_v36 = vmul.f32 %v6489_v2, %v8092_v22 }
 0x941   : > { %2325 = vrot.lane.b32.xlu0 %v7053_v62, %s6876_s22 }
 0x942   : > { %v2183_v7 = vpack.c.bf16 %v2169_v14, %v2168_v36 }
 0x945   : > { %2640 = vrot.lane.b32.xlu0 %v7007_v20, %s6877_s24 }
 0x949   : > { %2644 = vrot.lane.b32.xlu0 %v7021_v32, %s6877_s24 }
 0x95f   : > { %v2121_v33 = vpop.xlane.xlu0 %2120 }
 0x960   : > { %6490 = vrcp.f32 %v2121_v33 }
 0x963   : > { %v2336_v53 = vpop.permute.xlu0 %2335 }
 0x967   : > { %v2127_v61 = vpop.xlane.xlu1 %2126 }
 0x968   : > { %6492 = vrcp.f32 %v2127_v61 }
 0x96a   : > { %v6491_v16 = vpop.eup %6490 }
 0x96b   : > { %v2167_v37 = vmul.f32 %v6491_v16, %v8105_v30  ;;  %v2133_v45 = vpop.xlane.xlu1 %2132  ;;  %v2374_v30 = vsel %vm542_vm1, %v2332_v42, 0 }
 0x96c   : > { %6494 = vrcp.f32 %v2133_v45 }
 0x96d   : > { %v2182_v55 = vpack.c.bf16 %v2167_v37, %v2166_v24 }
 0x96f   : > { %5543 = vmatprep.mubr.bf16.mxu0 %v2182_v55  ;;  %v2139_v5 = vpop.xlane.xlu1 %2138 }
 0x970   : > { %5544 = vmatmul.mubr.bf16.vlgmr.msra.gmra.mrb[80].mxu0 %v2183_v7 }
 0x971   : > { %5560 = vmatpush3.bf16.xpose.msra.mxu0 %v2368_v15 }
 0x972   : > { %5888 = vmatprep.subr.msk.bf16.mxu0 %vm542_vm1, %v8103_v52  ;;  %v2380_v52 = vsel %vm542_vm1, %v2336_v53, 0  ;;  %v6493_v24 = vpop.eup %6492 }
 0x973   : > { %v2135_v12 = vpop.xlane.xlu1 %2134 }
 0x976   : > { %v6495_v37 = vpop.eup %6494 }
 0x977   : > { %v2141_v22 = vpop.xlane.xlu1 %2140 }
 0x979   : > { %5562 = vmatpush3.bf16.xpose.msra.mxu0 %v2371_v54 }
 0x97a   : > { %5889 = vmatprep.subr.msk.bf16.mxu0 %vm542_vm1, %v2332_v42 }
 0x97b   : > { %v2137_v33 = vpop.xlane.xlu1 %2136 }
 0x97f   : > { %v2145_v8 = vpop.xlane.xlu1 %2144 }
 0x981   : > { %5564 = vmatpush3.bf16.xpose.msra.mxu0 %v2374_v30 }
 0x982   : > { %5890 = vmatprep.subr.msk.bf16.mxu0 %vm542_vm1, %v2334_v6 }
 0x983   : > { %v2338_v2 = vpop.permute.xlu1 %2337 }
 0x984   : > { %v2383_v6 = vsel %vm542_vm1, %v2338_v2, 0 }
 0x989   : > { %5566 = vmatpush3.bf16.xpose.msra.mxu0 %v2377_v43 }
 0x98a   : > { %5891 = vmatprep.subr.msk.bf16.mxu0 %vm542_vm1, %v2336_v53 }
 0x991   : > { %5568 = vmatpush3.bf16.xpose.msra.mxu0 %v2380_v52 }
 0x992   : > { %5892 = vmatprep.subr.msk.bf16.mxu0 %vm542_vm1, %v2338_v2 }
 0x994   : > { %v2131_v16 = vpop.xlane.xlu0 %2130 }
 0x995   : > { %6496 = vrcp.f32 %v2131_v16 }
 0x996   : > { %6498 = vrcp.f32 %v2137_v33 }
 0x997   : > { %6500 = vrcp.f32 %v2135_v12  ;;  %v2170_v12 = vmul.f32 %v6493_v24, %v8109_v60 }
 0x998   : > { %v2129_v42 = vpop.xlane.xlu0 %2128 }
 0x999   : > { %6502 = vrcp.f32 %v2129_v42  ;;  %5570 = vmatpush3.bf16.xpose.msra.mxu0 %v2383_v6 }
 0x99a   : > { %6504 = vrcp.f32 %v2141_v22  ;;  %v2173_v22 = vmul.f32 %v6495_v37, %v8113_v3 }
 0x99b   : > { %6506 = vrcp.f32 %v2139_v5 }
 0x99c   : > { %v2147_v14 = vpop.xlane.xlu0 %2146  ;;  %6508 = vrcp.f32 %v2145_v8 }
 0x99f   : > { %v6497_v36 = vpop.eup %6496 }
 0x9a0   : > { %v2143_v55 = vpop.xlane.xlu0 %2142  ;;  %v6499_v7 = vpop.eup %6498  ;;  %v2172_v15 = vmul.f32 %v6497_v36, %v8141_v11 }
 0x9a1   : > { %6510 = vrcp.f32 %v2143_v55  ;;  %v6501_v61 = vpop.eup %6500  ;;  %v2175_v33 = vmul.f32 %v6499_v7, %v8128_v23  ;;  %v2312_v23 = vpop.permute.xlu1 %2311 }
 0x9a2   : > { %v2174_v43 = vmul.f32 %v6501_v61, %v8120_v59  ;;  %v2185_v53 = vpack.c.bf16 %v2173_v22, %v2172_v15 }
 0x9a3   : > { %v6503_v45 = vpop.eup %6502 }
 0x9a4   : > { %v2149_v54 = vpop.xlane.xlu0 %2148  ;;  %v2171_v30 = vmul.f32 %v6503_v45, %v8146_v1  ;;  %v6505_v8 = vpop.eup %6504  ;;  %v2186_v2 = vpack.c.bf16 %v2175_v33, %v2174_v43 }
 0x9a5   : > { %6512 = vrcp.f32 %v2149_v54  ;;  %v6507_v11 = vpop.eup %6506  ;;  %v2177_v16 = vmul.f32 %v6505_v8, %v8125_v25  ;;  %v2316_v36 = vpop.permute.xlu1 %2315 }
 0x9a6   : > { %v2184_v5 = vpack.c.bf16 %v2171_v30, %v2170_v12  ;;  %6514 = vrcp.f32 %v2147_v14  ;;  %v6509_v1 = vpop.eup %6508  ;;  %v2176_v6 = vmul.f32 %v6507_v11, %v8117_v49 }
 0x9a7   : > { %v2179_v14 = vmul.f32 %v6509_v1, %v8131_v51 }
 0x9a8   : > { %v2340_v52 = vpop.permute.xlu0 %2339  ;;  %5547 = vmatprep.mubr.bf16.mxu0 %v2184_v5  ;;  %v2187_v24 = vpack.c.bf16 %v2177_v16, %v2176_v6 }
 0x9a9   : > { %5548 = vmatmul.mubr.bf16.gmra.mrb[84].mxu0 %v2185_v53  ;;  %5893 = vmatprep.subr.msk.bf16.mxu0 %vm542_vm1, %v2340_v52  ;;  %v2386_v60 = vsel %vm542_vm1, %v2340_v52, 0  ;;  %v2320_v54 = vpop.permute.xlu1 %2319 }
 0x9aa   : > { %5551 = vmatprep.mubr.bf16.mxu0 %v2186_v2  ;;  %5572 = vmatpush3.bf16.xpose.msra.mxu0 %v2386_v60 }
 0x9ab   : > { %v6511_v3 = vpop.eup %6510 }
 0x9ac   : > { %v2342_v59 = vpop.permute.xlu0 %2341  ;;  %v2178_v42 = vmul.f32 %v6511_v3, %v8156_v9 }
 0x9ad   : > { %5894 = vmatprep.subr.msk.bf16.mxu0 %vm542_vm1, %v2342_v59  ;;  %v2389_v61 = vsel %vm542_vm1, %v2342_v59, 0  ;;  %v2324_v51 = vpop.permute.xlu1 %2323 }
 0x9ae   : > { %v2188_v7 = vpack.c.bf16 %v2179_v14, %v2178_v42 }
 0x9af   : > { %v6513_v37 = vpop.eup %6512 }
 0x9b0   : > { %v2314_v55 = vpop.permute.xlu0 %2313  ;;  %v6515_v45 = vpop.eup %6514  ;;  %v2181_v25 = vmul.f32 %v6513_v37, %v8161_v40 }
 0x9b1   : > { %5552 = vmatmul.mubr.bf16.gmra.mrb[88].mxu0 %v2187_v24  ;;  %v2180_v15 = vmul.f32 %v6515_v45, %v8151_v13  ;;  %v2643_v22 = vpop.permute.xlu1 %2642 }
 0x9b2   : > { %5555 = vmatprep.mubr.bf16.mxu0 %v2188_v7  ;;  %5574 = vmatpush3.bf16.xpose.msra.mxu0 %v2389_v61 }
 0x9b3   : > { %v2189_v49 = vpack.c.bf16 %v2181_v25, %v2180_v15 }
 0x9b4   : > { %v2318_v9 = vpop.permute.xlu0 %2317 }
 0x9b8   : > { %v2322_v12 = vpop.permute.xlu0 %2321 }
 0x9b9   : > { %5556 = vmatmul.mubr.bf16.gmra.mrb[92].mxu0 %v2189_v49  ;;  %v8283_v49 = vld [vmem:[%s9897_s4] sm:$0xff] }
 0x9ba   : > { %5575 = vmatprep.mubr.msk.bf16.mxu0 %vm542_vm1, %v2312_v23 }
 0x9bc   : > { %v2326_v30 = vpop.permute.xlu0 %2325 }
 0x9c0   : > { %v2641_v33 = vpop.permute.xlu0 %2640 }
 0x9c1   : > { %5576 = vmatmul.mubr.msk.bf16.vlgmr.msra.gmra.mrb[96].mxu0 %vm542_vm1, %v2314_v55  ;;  %5591 = vmatprep.subr.bf16.mxu1 %v2641_v33 }
 0x9c2   : > { %5579 = vmatprep.mubr.msk.bf16.mxu0 %vm542_vm1, %v2316_v36  ;;  %5592 = vmatpush3.bf16.msra.mxu1 %v2641_v33  ;;  %v8293_v33 = vld [vmem:[%s9897_s4 + $0x18] sm:$0xff] }
 0x9c3   : > { %5593 = vmatprep.subr.bf16.mxu1 %v2643_v22 }
 0x9c4   : > { %v2645_v40 = vpop.permute.xlu0 %2644 }
 0x9c6   : > { %5594 = vmatpush3.bf16.msra.mxu1 %v2643_v22 }
 0x9c7   : > { %5595 = vmatprep.subr.bf16.mxu1 %v2645_v40 }
 0x9c9   : > { %5580 = vmatmul.mubr.msk.bf16.gmra.mrb[100].mxu0 %vm542_vm1, %v2318_v9  ;;  %v8275_v9 = vld [vmem:[%s9897_s4 + $0x10] sm:$0xff] }
 0x9ca   : > { %5583 = vmatprep.mubr.msk.bf16.mxu0 %vm542_vm1, %v2320_v54  ;;  %5596 = vmatpush3.bf16.msra.mxu1 %v2645_v40 }
 0x9d1   : > { %5584 = vmatmul.mubr.msk.bf16.gmra.mrb[104].mxu0 %vm542_vm1, %v2322_v12 }
 0x9d2   : > { %5587 = vmatprep.mubr.msk.bf16.mxu0 %vm542_vm1, %v2324_v51 }
 0x9d9   : > { %5588 = vmatmul.mubr.msk.bf16.gmra.mrb[108].mxu0 %vm542_vm1, %v2326_v30 }
 0xa43   : > { %v8224_v13 = vpop.f32.mrb[80].mxu0 }
 0xa44   : > { %10053 = vst [vmem:[#allocation57_spill] sm:$0xff] %v8224_v13  ;;  %v8226_v5 = vpop.f32.mrb[81].mxu0 }
 0xa45   : > { %v8228_v43 = vpop.f32.mrb[82].mxu0 }
 0xa46   : > { %10054 = vst [vmem:[#allocation58_spill] sm:$0xff] %v8228_v43  ;;  %v8232_v8 = vpop.f32.mrb[83].mxu0 }
 0xa7c   : > { %v8236_v2 = vpop.f32.mrb[84].mxu0 }
 0xa7d   : > { %10055 = vst [vmem:[#allocation59_spill] sm:$0xff] %v8236_v2  ;;  %v8238_v11 = vpop.f32.mrb[85].mxu0  ;;  %v8351_v2 = vld [vmem:[%s9897_s4 + $0x50] sm:$0xff] }
 0xa7e   : > { %10056 = vst [vmem:[#allocation60_spill] sm:$0xff] %v8238_v11  ;;  %v8240_v60 = vpop.f32.mrb[86].mxu0 }
 0xa7f   : > { %10057 = vst [vmem:[#allocation61_spill] sm:$0xff] %v8240_v60  ;;  %v8244_v23 = vpop.f32.mrb[87].mxu0  ;;  %v8359_v60 = vld [vmem:[%s9897_s4 + $0x58] sm:$0xff] }
 0xa80   : > { %10058 = vst [vmem:[#allocation62_spill] sm:$0xff] %v8244_v23 }
 0xa84   : > { %v8248_v16 = vpop.f32.mrb[88].mxu0 }
 0xa85   : > { %10059 = vst [vmem:[#allocation63_spill] sm:$0xff] %v8248_v16  ;;  %v8250_v59 = vpop.f32.mrb[89].mxu0 }
 0xa86   : > { %10060 = vst [vmem:[#allocation64_spill] sm:$0xff] %v8250_v59  ;;  %v8252_v42 = vpop.f32.mrb[90].mxu0 }
 0xa87   : > { %10061 = vst [vmem:[#allocation65_spill] sm:$0xff] %v8252_v42  ;;  %v8256_v14 = vpop.f32.mrb[91].mxu0  ;;  %v8323_v42 = vld [vmem:[%s9897_s4 + $0x38] sm:$0xff] }
 0xa88   : > { %10062 = vst [vmem:[#allocation66_spill] sm:$0xff] %v8256_v14 }
 0xa8c   : > { %v8260_v37 = vpop.f32.mrb[92].mxu0 }
 0xa8d   : > { %10063 = vst [vmem:[#allocation67_spill] sm:$0xff] %v8260_v37  ;;  %v8262_v36 = vpop.f32.mrb[93].mxu0  ;;  %v8306_v37 = vld [vmem:[%s9897_s4 + $0x8] sm:$0xff] }
 0xa8e   : > { %10064 = vst [vmem:[#allocation68_spill] sm:$0xff] %v8262_v36  ;;  %v8264_v55 = vpop.f32.mrb[94].mxu0  ;;  %v8387_v36 = vld [vmem:[%s9897_s4 + $0x70] sm:$0xff] }
 0xa8f   : > { %10065 = vst [vmem:[#allocation69_spill] sm:$0xff] %v8264_v55  ;;  %v8268_v61 = vpop.f32.mrb[95].mxu0 }
 0xa90   : > { %10066 = vst [vmem:[#allocation70_spill] sm:$0xff] %v8268_v61  ;;  %v8395_v61 = vld [vmem:[%s9897_s4 + $0x78] sm:$0xff] }
 0xa94   : > { %v5577_v25 = vpop.f32.mrb[96].mxu0 }
 0xa95   : > { %v8278_v15 = vadd.f32 %v8275_v9, %v5577_v25  ;;  %v2425_v54 = vpop.f32.mrb[97].mxu0 }
 0xa96   : > { %v8286_v12 = vadd.f32 %v8283_v49, %v2425_v54  ;;  %v5578_v51 = vpop.f32.mrb[98].mxu0 }
 0xa97   : > { %2492 = vmax.xlane.f32.xlu0 %v8278_v15  ;;  %v2428_v30 = vpop.f32.mrb[99].mxu0  ;;  %v8296_v22 = vadd.f32 %v8293_v33, %v5578_v51 }
 0xa98   : > { %2488 = vmax.xlane.f32.xlu1 %v8286_v12  ;;  %v8309_v55 = vadd.f32 %v8306_v37, %v2428_v30  ;;  %v8333_v30 = vld [vmem:[%s9897_s4 + $0x20] sm:$0xff] }
 0xa9c   : > { %2494 = vmax.xlane.f32.xlu1 %v8296_v22  ;;  %v5581_v40 = vpop.f32.mrb[100].mxu0 }
 0xa9d   : > { %v2441_v25 = vpop.f32.mrb[101].mxu0  ;;  %v8318_v16 = vadd.f32 %v8315_v0, %v5581_v40 }
 0xa9e   : > { %v5582_v54 = vpop.f32.mrb[102].mxu0  ;;  %v8336_v40 = vadd.f32 %v8333_v30, %v2441_v25 }
 0xa9f   : > { %v2444_v7 = vpop.f32.mrb[103].mxu0  ;;  %v8326_v28 = vadd.f32 %v8323_v42, %v5582_v54 }
 0xaa0   : > { %v8344_v54 = vadd.f32 %v8341_v47, %v2444_v7 }
 0xaa4   : > { %v5585_v6 = vpop.f32.mrb[104].mxu0 }
 0xaa5   : > { %v2457_v1 = vpop.f32.mrb[105].mxu0  ;;  %v8354_v25 = vadd.f32 %v8351_v2, %v5585_v6 }
 0xaa6   : > { %v5586_v45 = vpop.f32.mrb[106].mxu0  ;;  %v8372_v6 = vadd.f32 %v8369_v29, %v2457_v1 }
 0xaa7   : > { %v2460_v53 = vpop.f32.mrb[107].mxu0  ;;  %v8362_v7 = vadd.f32 %v8359_v60, %v5586_v45 }
 0xaa8   : > { %v8380_v45 = vadd.f32 %v8377_v19, %v2460_v53 }
 0xaac   : > { %v5589_v24 = vpop.f32.mrb[108].mxu0 }
 0xaad   : > { %2648 = vrot.lane.b32.xlu0 %v7033_v44, %s6877_s24  ;;  %2646 = vrot.lane.b32.xlu1 %v7027_v38, %s6877_s24  ;;  %v2473_v3 = vpop.f32.mrb[109].mxu0  ;;  %v8390_v1 = vadd.f32 %v8387_v36, %v5589_v24 }
 0xaae   : > { %v5590_v51 = vpop.f32.mrb[110].mxu0  ;;  %v8408_v24 = vadd.f32 %v8405_v39, %v2473_v3 }
 0xaaf   : > { %v2476_v52 = vpop.f32.mrb[111].mxu0  ;;  %v8398_v53 = vadd.f32 %v8395_v61, %v5590_v51 }
 0xab0   : > { %v8416_v51 = vadd.f32 %v8413_v31, %v2476_v52 }
 0xacc   : > { %2490 = vmax.xlane.f32.xlu0 %v8309_v55 }
 0xad0   : > { %2500 = vmax.xlane.f32.xlu0 %v8318_v16 }
 0xad1   : > { %2502 = vmax.xlane.f32.xlu1 %v8326_v28 }
 0xad4   : > { %2496 = vmax.xlane.f32.xlu0 %v8336_v40 }
 0xad5   : > { %2498 = vmax.xlane.f32.xlu1 %v8344_v54 }
 0xad8   : > { %2508 = vmax.xlane.f32.xlu0 %v8354_v25 }
 0xad9   : > { %2510 = vmax.xlane.f32.xlu1 %v8362_v7 }
 0xadc   : > { %2504 = vmax.xlane.f32.xlu0 %v8372_v6 }
 0xadd   : > { %2506 = vmax.xlane.f32.xlu1 %v8380_v45 }
 0xae0   : > { %2516 = vmax.xlane.f32.xlu0 %v8390_v1 }
 0xae1   : > { %2518 = vmax.xlane.f32.xlu1 %v8398_v53 }
 0xae4   : > { %2512 = vmax.xlane.f32.xlu0 %v8408_v24 }
 0xae5   : > { %2514 = vmax.xlane.f32.xlu1 %v8416_v51 }
 0xafa   : > { %2650 = vrot.lane.b32.xlu0 %v7039_v50, %s6877_s24 }
 0xb24   : > { %v2493_v13 = vpop.xlane.xlu0 %2492 }
 0xb25   : > { %v2522_v43 = vsub.f32 %v8278_v15, %v2493_v13  ;;  %v2489_v3 = vpop.xlane.xlu1 %2488 }
 0xb26   : > { %v2520_v18 = vsub.f32 %v8286_v12, %v2489_v3 }
 0xb27   : > { %v2540_v34 = vmul.f32 1.442695, %v2522_v43 }
 0xb28   : > { %v2536_v59 = vmul.f32 1.442695, %v2520_v18  ;;  %v2649_v63 = vpop.permute.xlu0 %2648 }
 0xb29   : > { %6516 = vpow2.f32 %v2540_v34  ;;  %v2495_v14 = vpop.xlane.xlu1 %2494 }
 0xb2a   : > { %v2523_v52 = vsub.f32 %v8296_v22, %v2495_v14  ;;  %6518 = vpow2.f32 %v2536_v59 }
 0xb2c   : > { %v2542_v57 = vmul.f32 1.442695, %v2523_v52 }
 0xb2d   : > { %v2647_v41 = vpop.permute.xlu1 %2646 }
 0xb2e   : > { %5597 = vmatprep.subr.bf16.mxu1 %v2647_v41  ;;  %6520 = vpow2.f32 %v2542_v57 }
 0xb2f   : > { %5598 = vmatpush3.bf16.msra.mxu1 %v2647_v41 }
 0xb30   : > { %5599 = vmatprep.subr.bf16.mxu1 %v2649_v63 }
 0xb33   : > { %v8425_v17 = vpop.eup %6516  ;;  %5600 = vmatpush3.bf16.msra.mxu1 %v2649_v63 }
 0xb34   : > { %2572 = vadd.xlane.f32.xlu1 %v8425_v17  ;;  %v8428_v13 = vpop.eup %6518 }
 0xb38   : > { %2568 = vadd.xlane.f32.xlu1 %v8428_v13  ;;  %v8431_v18 = vpop.eup %6520 }
 0xb3c   : > { %2574 = vadd.xlane.f32.xlu1 %v8431_v18 }
 0xb4d   : > { %2652 = vrot.lane.b32.xlu1 %v7045_v56, %s6877_s24 }
 0xb59   : > { %v2491_v34 = vpop.xlane.xlu0 %2490 }
 0xb5a   : > { %v2521_v41 = vsub.f32 %v8309_v55, %v2491_v34 }
 0xb5c   : > { %v2538_v57 = vmul.f32 1.442695, %v2521_v41 }
 0xb5d   : > { %v2501_v43 = vpop.xlane.xlu0 %2500 }
 0xb5e   : > { %6522 = vpow2.f32 %v2538_v57  ;;  %v2503_v63 = vpop.xlane.xlu1 %2502 }
 0xb5f   : > { %v2527_v14 = vsub.f32 %v8326_v28, %v2503_v63 }
 0xb61   : > { %v2497_v59 = vpop.xlane.xlu0 %2496  ;;  %v2550_v52 = vmul.f32 1.442695, %v2527_v14 }
 0xb62   : > { %v2524_v15 = vsub.f32 %v8336_v40, %v2497_v59  ;;  %v2499_v12 = vpop.xlane.xlu1 %2498 }
 0xb64   : > { %v2544_v22 = vmul.f32 1.442695, %v2524_v15 }
 0xb65   : > { %v2509_v3 = vpop.xlane.xlu0 %2508 }
 0xb66   : > { %6524 = vpow2.f32 %v2544_v22  ;;  %v2511_v11 = vpop.xlane.xlu1 %2510 }
 0xb67   : > { %6526 = vpow2.f32 %v2550_v52  ;;  %v2531_v34 = vsub.f32 %v8362_v7, %v2511_v11 }
 0xb68   : > { %v8439_v23 = vpop.eup %6522 }
 0xb69   : > { %v2505_v21 = vpop.xlane.xlu0 %2504  ;;  %2570 = vadd.xlane.f32.xlu0 %v8439_v23  ;;  %v2558_v63 = vmul.f32 1.442695, %v2531_v34 }
 0xb6a   : > { %v2507_v55 = vpop.xlane.xlu1 %2506 }
 0xb6b   : > { %v2529_v41 = vsub.f32 %v8380_v45, %v2507_v55 }
 0xb6d   : > { %v2554_v28 = vmul.f32 1.442695, %v2529_v41  ;;  %v2517_v57 = vpop.xlane.xlu0 %2516  ;;  %v2525_v41 = vsub.f32 %v8344_v54, %v2499_v12 }
 0xb6e   : > { %v2519_v40 = vpop.xlane.xlu1 %2518 }
 0xb6f   : > { %6528 = vpow2.f32 %v2554_v28  ;;  %v2535_v22 = vsub.f32 %v8398_v53, %v2519_v40  ;;  %v2526_v28 = vsub.f32 %v8318_v16, %v2501_v43  ;;  %v2546_v40 = vmul.f32 1.442695, %v2525_v41  ;;  %v10071_v41 = vld [vmem:[#allocation7_spill] sm:$0xff] }
 0xb70   : > { %v8444_v59 = vpop.eup %6524  ;;  %6530 = vpow2.f32 %v2558_v63 }
 0xb71   : > { %v2513_v14 = vpop.xlane.xlu0 %2512  ;;  %2576 = vadd.xlane.f32.xlu1 %v8444_v59  ;;  %v8449_v58 = vpop.eup %6526  ;;  %v2566_v45 = vmul.f32 1.442695, %v2535_v22  ;;  %v2548_v63 = vmul.f32 1.442695, %v2526_v28  ;;  %v2530_v22 = vsub.f32 %v8354_v25, %v2509_v3  ;;  %v10074_v28 = vld [vmem:[#allocation12_spill] sm:$0xff] }
 0xb72   : > { %v2515_v15 = vpop.xlane.xlu1 %2514 }
 0xb73   : > { %v2533_v52 = vsub.f32 %v8416_v51, %v2515_v15  ;;  %v2528_v15 = vsub.f32 %v8372_v6, %v2505_v21  ;;  %v2534_v21 = vsub.f32 %v8390_v1, %v2517_v57  ;;  %v10067_v6 = vld [vmem:[#allocation6_spill] sm:$0xff] }
 0xb75   : > { %v2562_v11 = vmul.f32 1.442695, %v2533_v52  ;;  %v2651_v7 = vpop.permute.xlu0 %2650  ;;  %2582 = vadd.xlane.f32.xlu1 %v8449_v58  ;;  %v2552_v52 = vmul.f32 1.442695, %v2528_v15 }
 0xb76   : > { %5601 = vmatprep.subr.bf16.mxu1 %v2651_v7 }
 0xb77   : > { %6532 = vpow2.f32 %v2562_v11  ;;  %5602 = vmatpush3.bf16.msra.mxu1 %v2651_v7  ;;  %v2556_v11 = vmul.f32 1.442695, %v2530_v22  ;;  %v2532_v7 = vsub.f32 %v8408_v24, %v2513_v14 }
 0xb78   : > { %6534 = vpow2.f32 %v2566_v45  ;;  %v10070_v45 = vld [vmem:[#allocation5_spill] sm:$0xff] }
 0xb79   : > { %v8452_v55 = vpop.eup %6528  ;;  %6536 = vpow2.f32 %v2546_v40  ;;  %v2560_v54 = vmul.f32 1.442695, %v2532_v7 }
 0xb7a   : > { %2586 = vadd.xlane.f32.xlu1 %v8452_v55  ;;  %v8455_v34 = vpop.eup %6530  ;;  %6538 = vpow2.f32 %v2548_v63 }
 0xb7b   : > { %6540 = vpow2.f32 %v2552_v52 }
 0xb7c   : > { %6542 = vpow2.f32 %v2556_v11 }
 0xb7d   : > { %6544 = vpow2.f32 %v2560_v54 }
 0xb7e   : > { %2590 = vadd.xlane.f32.xlu1 %v8455_v34 }
 0xb7f   : > { %2654 = vrot.lane.b32.xlu0 %v7053_v62, %s6877_s24 }
 0xb81   : > { %v8460_v53 = vpop.eup %6532 }
 0xb82   : > { %2594 = vadd.xlane.f32.xlu1 %v8460_v53  ;;  %v8463_v51 = vpop.eup %6534 }
 0xb83   : > { %v8475_v16 = vpop.eup %6536 }
 0xb84   : > { %v8481_v25 = vpop.eup %6538 }
 0xb86   : > { %2598 = vadd.xlane.f32.xlu1 %v8463_v51 }
 0xb97   : > { %2763 = vrot.lane.b32.xlu1 %v7015_v26, %s6878_s27  ;;  %v2564_v26 = vmul.f32 1.442695, %v2534_v21 }
 0xb99   : > { %6546 = vpow2.f32 %v2564_v26 }
 0xb9b   : > { %2765 = vrot.lane.b32.xlu1 %v7021_v32, %s6878_s27  ;;  %v8486_v32 = vpop.eup %6540 }
 0xb9c   : > { %v8491_v1 = vpop.eup %6542 }
 0xb9d   : > { %v8496_v24 = vpop.eup %6544 }
 0xb9e   : > { %2578 = vadd.xlane.f32.xlu0 %v8475_v16 }
 0xb9f   : > { %2769 = vrot.lane.b32.xlu1 %v7033_v44, %s6878_s27  ;;  %v10068_v44 = vld [vmem:[#allocation8_spill] sm:$0xff] }
 0xba2   : > { %2580 = vadd.xlane.f32.xlu0 %v8481_v25 }
 0xba3   : > { %2773 = vrot.lane.b32.xlu1 %v7045_v56, %s6878_s27  ;;  %v10069_v56 = vld [vmem:[#allocation11_spill] sm:$0xff]  ;;  %v8501_v43 = vpop.eup %6546 }
 0xba6   : > { %2584 = vadd.xlane.f32.xlu0 %v8486_v32 }
 0xba7   : > { %3084 = vrot.lane.b32.xlu1 %v10067_v6, %s6864_s9 }
 0xbaa   : > { %2588 = vadd.xlane.f32.xlu0 %v8491_v1 }
 0xbab   : > { %3088 = vrot.lane.b32.xlu1 %v10068_v44, %s6864_s9 }
 0xbae   : > { %2592 = vadd.xlane.f32.xlu0 %v8496_v24 }
 0xbaf   : > { %3094 = vrot.lane.b32.xlu1 %v10069_v56, %s6864_s9 }
 0xbb2   : > { %2596 = vadd.xlane.f32.xlu0 %v8501_v43 }
 0xbc1   : > { %v2573_v12 = vpop.xlane.xlu1 %2572 }
 0xbc5   : > { %v2569_v3 = vpop.xlane.xlu1 %2568 }
 0xbc8   : > { %2761 = vrot.lane.b32.xlu0 %v7007_v20, %s6878_s27  ;;  %v10072_v20 = vld [vmem:[#allocation9_spill] sm:$0xff] }
 0xbc9   : > { %v2575_v57 = vpop.xlane.xlu1 %2574 }
 0xbca   : > { %6548 = vrcp.f32 %v2575_v57 }
 0xbcb   : > { %6550 = vrcp.f32 %v2569_v3  ;;  %v2811_v3 = vsel %vm542_vm1, %v10068_v44, 0 }
 0xbcc   : > { %2767 = vrot.lane.b32.xlu0 %v7027_v38, %s6878_s27  ;;  %v10073_v38 = vld [vmem:[#allocation10_spill] sm:$0xff]  ;;  %6552 = vrcp.f32 %v2573_v12  ;;  %v2802_v12 = vsel %vm542_vm1, %v10070_v45, 0 }
 0xbcd   : > { %v2653_v14 = vpop.permute.xlu1 %2652 }
 0xbce   : > { %5603 = vmatprep.subr.bf16.mxu1 %v2653_v14 }
 0xbcf   : > { %5604 = vmatpush3.bf16.msra.mxu1 %v2653_v14  ;;  %v2814_v14 = vsel %vm542_vm1, %v10072_v20, 0 }
 0xbd0   : > { %2771 = vrot.lane.b32.xlu0 %v7039_v50, %s6878_s27 }
 0xbd4   : > { %2775 = vrot.lane.b32.xlu0 %v7053_v62, %s6878_s27  ;;  %v6549_v40 = vpop.eup %6548 }
 0xbd5   : > { %v6551_v63 = vpop.eup %6550  ;;  %v2619_v52 = vmul.f32 %v6549_v40, %v8431_v18  ;;  %v2805_v18 = vsel %vm542_vm1, %v10067_v6, 0 }
 0xbd6   : > { %v6553_v15 = vpop.eup %6552  ;;  %v2616_v11 = vmul.f32 %v6551_v63, %v8428_v13  ;;  %v2817_v63 = vsel %vm542_vm1, %v10073_v38, 0 }
 0xbd7   : > { %v2618_v21 = vmul.f32 %v6553_v15, %v8425_v17  ;;  %v2808_v17 = vsel %vm542_vm1, %v10071_v41, 0 }
 0xbd8   : > { %3082 = vrot.lane.b32.xlu0 %v10070_v45, %s6864_s9 }
 0xbd9   : > { %v2633_v26 = vpack.c.bf16 %v2619_v52, %v2618_v21 }
 0xbdc   : > { %3086 = vrot.lane.b32.xlu0 %v10071_v41, %s6864_s9 }
 0xbe0   : > { %3090 = vrot.lane.b32.xlu0 %v10072_v20, %s6864_s9 }
 0xbe4   : > { %3092 = vrot.lane.b32.xlu0 %v10073_v38, %s6864_s9 }
 0xbe8   : > { %3096 = vrot.lane.b32.xlu0 %v10074_v28, %s6864_s9 }
 0xbf6   : > { %v2571_v50 = vpop.xlane.xlu0 %2570 }
 0xbf7   : > { %6554 = vrcp.f32 %v2571_v50 }
 0xbfa   : > { %v2655_v62 = vpop.permute.xlu0 %2654 }
 0xbfb   : > { %5605 = vmatprep.subr.bf16.mxu1 %v2655_v62 }
 0xbfc   : > { %5606 = vmatpush3.bf16.msra.mxu1 %v2655_v62 }
 0xbfd   : > { %5895 = vmatprep.subr.msk.bf16.mxu1 %vm542_vm1, %v10070_v45 }
 0xc01   : > { %v6555_v22 = vpop.eup %6554 }
 0xc02   : > { %v2617_v7 = vmul.f32 %v6555_v22, %v8439_v23  ;;  %v2577_v23 = vpop.xlane.xlu1 %2576 }
 0xc03   : > { %6556 = vrcp.f32 %v2577_v23 }
 0xc04   : > { %v2632_v54 = vpack.c.bf16 %v2617_v7, %v2616_v11 }
 0xc06   : > { %5607 = vmatprep.mubr.bf16.mxu1 %v2632_v54  ;;  %v2583_v13 = vpop.xlane.xlu1 %2582  ;;  %v2820_v54 = vsel %vm542_vm1, %v10069_v56, 0 }
 0xc07   : > { %5608 = vmatmul.mubr.bf16.vlgmr.msra.gmra.mrb[64].mxu1 %v2633_v26 }
 0xc08   : > { %5624 = vmatpush3.bf16.xpose.msra.mxu1 %v2802_v12 }
 0xc09   : > { %5896 = vmatprep.subr.msk.bf16.mxu1 %vm542_vm1, %v10067_v6 }
 0xc0a   : > { %v2587_v57 = vpop.xlane.xlu1 %2586 }
 0xc0d   : > { %v6557_v52 = vpop.eup %6556 }
 0xc0e   : > { %v2591_v50 = vpop.xlane.xlu1 %2590  ;;  %v2620_v26 = vmul.f32 %v6557_v52, %v8444_v59 }
 0xc10   : > { %5626 = vmatpush3.bf16.xpose.msra.mxu1 %v2805_v18 }
 0xc11   : > { %5897 = vmatprep.subr.msk.bf16.mxu1 %vm542_vm1, %v10071_v41 }
 0xc12   : > { %v2595_v15 = vpop.xlane.xlu1 %2594 }
 0xc16   : > { %v2599_v7 = vpop.xlane.xlu1 %2598 }
 0xc18   : > { %5628 = vmatpush3.bf16.xpose.msra.mxu1 %v2808_v17 }
 0xc19   : > { %5898 = vmatprep.subr.msk.bf16.mxu1 %vm542_vm1, %v10068_v44 }
 0xc1a   : > { %v2764_v59 = vpop.permute.xlu1 %2763 }
 0xc1e   : > { %v2766_v52 = vpop.permute.xlu1 %2765 }
 0xc20   : > { %5630 = vmatpush3.bf16.xpose.msra.mxu1 %v2811_v3 }
 0xc21   : > { %5899 = vmatprep.subr.msk.bf16.mxu1 %vm542_vm1, %v10072_v20 }
 0xc28   : > { %5632 = vmatpush3.bf16.xpose.msra.mxu1 %v2814_v14 }
 0xc29   : > { %5900 = vmatprep.subr.msk.bf16.mxu1 %vm542_vm1, %v10073_v38 }
 0xc2b   : > { %v2579_v62 = vpop.xlane.xlu0 %2578 }
 0xc2c   : > { %6558 = vrcp.f32 %v2579_v62 }
 0xc2d   : > { %6560 = vrcp.f32 %v2583_v13 }
 0xc2f   : > { %v2581_v40 = vpop.xlane.xlu0 %2580 }
 0xc30   : > { %6562 = vrcp.f32 %v2581_v40  ;;  %5634 = vmatpush3.bf16.xpose.msra.mxu1 %v2817_v63  ;;  %v2823_v40 = vsel %vm542_vm1, %v10074_v28, 0 }
 0xc31   : > { %5901 = vmatprep.subr.msk.bf16.mxu1 %vm542_vm1, %v10069_v56  ;;  %6564 = vrcp.f32 %v2587_v57 }
 0xc33   : > { %v2585_v22 = vpop.xlane.xlu0 %2584 }
 0xc34   : > { %6566 = vrcp.f32 %v2585_v22 }
 0xc35   : > { %6568 = vrcp.f32 %v2591_v50 }
 0xc36   : > { %v6559_v11 = vpop.eup %6558 }
 0xc37   : > { %v2589_v21 = vpop.xlane.xlu0 %2588  ;;  %v2621_v12 = vmul.f32 %v6559_v11, %v8475_v16  ;;  %v6561_v18 = vpop.eup %6560 }
 0xc38   : > { %6570 = vrcp.f32 %v2589_v21  ;;  %5636 = vmatpush3.bf16.xpose.msra.mxu1 %v2820_v54  ;;  %v2623_v57 = vmul.f32 %v6561_v18, %v8449_v58 }
 0xc39   : > { %5902 = vmatprep.subr.msk.bf16.mxu1 %vm542_vm1, %v10074_v28  ;;  %v2634_v17 = vpack.c.bf16 %v2621_v12, %v2620_v26  ;;  %6572 = vrcp.f32 %v2595_v15 }
 0xc3a   : > { %v6563_v23 = vpop.eup %6562 }
 0xc3b   : > { %v2593_v13 = vpop.xlane.xlu0 %2592  ;;  %5611 = vmatprep.mubr.bf16.mxu1 %v2634_v17  ;;  %v2622_v3 = vmul.f32 %v6563_v23, %v8481_v25  ;;  %v6565_v14 = vpop.eup %6564 }
 0xc3c   : > { %6574 = vrcp.f32 %v2593_v13  ;;  %v2625_v15 = vmul.f32 %v6565_v14, %v8452_v55  ;;  %v2770_v23 = vpop.permute.xlu1 %2769 }
 0xc3d   : > { %v2635_v50 = vpack.c.bf16 %v2623_v57, %v2622_v3  ;;  %6576 = vrcp.f32 %v2599_v7 }
 0xc3e   : > { %v6567_v16 = vpop.eup %6566 }
 0xc3f   : > { %v2597_v62 = vpop.xlane.xlu0 %2596  ;;  %5612 = vmatmul.mubr.bf16.gmra.mrb[68].mxu1 %v2635_v50  ;;  %v2624_v63 = vmul.f32 %v6567_v16, %v8486_v32  ;;  %v6569_v22 = vpop.eup %6568 }
 0xc40   : > { %6578 = vrcp.f32 %v2597_v62  ;;  %5638 = vmatpush3.bf16.xpose.msra.mxu1 %v2823_v40  ;;  %v2627_v7 = vmul.f32 %v6569_v22, %v8455_v34  ;;  %v2774_v50 = vpop.permute.xlu1 %2773 }
 0xc41   : > { %v2636_v25 = vpack.c.bf16 %v2625_v15, %v2624_v63 }
 0xc42   : > { %v6571_v58 = vpop.eup %6570 }
 0xc43   : > { %v2762_v11 = vpop.permute.xlu0 %2761  ;;  %5615 = vmatprep.mubr.bf16.mxu1 %v2636_v25  ;;  %v2626_v21 = vmul.f32 %v6571_v58, %v8491_v1  ;;  %v6573_v54 = vpop.eup %6572 }
 0xc44   : > { %v2629_v55 = vmul.f32 %v6573_v54, %v8460_v53 }
 0xc45   : > { %v2637_v26 = vpack.c.bf16 %v2627_v7, %v2626_v21 }
 0xc46   : > { %v6575_v12 = vpop.eup %6574 }
 0xc47   : > { %v2768_v18 = vpop.permute.xlu0 %2767  ;;  %5616 = vmatmul.mubr.bf16.gmra.mrb[72].mxu1 %v2637_v26  ;;  %v2628_v32 = vmul.f32 %v6575_v12, %v8496_v24  ;;  %v6577_v17 = vpop.eup %6576 }
 0xc48   : > { %v2631_v1 = vmul.f32 %v6577_v17, %v8463_v51  ;;  %v3085_v24 = vpop.permute.xlu1 %3084 }
 0xc49   : > { %v2638_v13 = vpack.c.bf16 %v2629_v55, %v2628_v32 }
 0xc4a   : > { %v6579_v3 = vpop.eup %6578 }
 0xc4b   : > { %v2772_v57 = vpop.permute.xlu0 %2771  ;;  %5619 = vmatprep.mubr.bf16.mxu1 %v2638_v13  ;;  %v2630_v14 = vmul.f32 %v6579_v3, %v8501_v43 }
 0xc4c   : > { %v3089_v43 = vpop.permute.xlu1 %3088 }
 0xc4d   : > { %v2639_v34 = vpack.c.bf16 %v2631_v1, %v2630_v14 }
 0xc4f   : > { %v2776_v16 = vpop.permute.xlu0 %2775  ;;  %5620 = vmatmul.mubr.bf16.gmra.mrb[76].mxu1 %v2639_v34 }
 0xc50   : > { %5639 = vmatprep.mubr.msk.bf16.mxu1 %vm542_vm1, %v2762_v11 }
 0xc53   : > { %v3083_v62 = vpop.permute.xlu0 %3082 }
 0xc54   : > { %5655 = vmatprep.subr.bf16.mxu0 %v3083_v62 }
 0xc55   : > { %5656 = vmatpush3.bf16.msra.mxu0 %v3083_v62 }
 0xc56   : > { %5657 = vmatprep.subr.bf16.mxu0 %v3085_v24 }
 0xc57   : > { %5640 = vmatmul.mubr.msk.bf16.vlgmr.msra.gmra.mrb[80].mxu1 %vm542_vm1, %v2764_v59  ;;  %v3087_v53 = vpop.permute.xlu0 %3086  ;;  %v3095_v59 = vpop.permute.xlu1 %3094 }
 0xc58   : > { %5643 = vmatprep.mubr.msk.bf16.mxu1 %vm542_vm1, %v2766_v52 }
 0xc59   : > { %5658 = vmatpush3.bf16.msra.mxu0 %v3085_v24 }
 0xc5a   : > { %5659 = vmatprep.subr.bf16.mxu0 %v3087_v53 }
 0xc5b   : > { %v3091_v51 = vpop.permute.xlu0 %3090 }
 0xc5d   : > { %5660 = vmatpush3.bf16.msra.mxu0 %v3087_v53 }
 0xc5e   : > { %5661 = vmatprep.subr.bf16.mxu0 %v3089_v43 }
 0xc5f   : > { %5644 = vmatmul.mubr.msk.bf16.gmra.mrb[84].mxu1 %vm542_vm1, %v2768_v18  ;;  %v3093_v40 = vpop.permute.xlu0 %3092 }
 0xc60   : > { %5647 = vmatprep.mubr.msk.bf16.mxu1 %vm542_vm1, %v2770_v23 }
 0xc61   : > { %5662 = vmatpush3.bf16.msra.mxu0 %v3089_v43 }
 0xc62   : > { %5663 = vmatprep.subr.bf16.mxu0 %v3091_v51 }
 0xc63   : > { %v3097_v63 = vpop.permute.xlu0 %3096 }
 0xc65   : > { %5664 = vmatpush3.bf16.msra.mxu0 %v3091_v51 }
 0xc66   : > { %5665 = vmatprep.subr.bf16.mxu0 %v3093_v40 }
 0xc67   : > { %5648 = vmatmul.mubr.msk.bf16.gmra.mrb[88].mxu1 %vm542_vm1, %v2772_v57 }
 0xc68   : > { %5651 = vmatprep.mubr.msk.bf16.mxu1 %vm542_vm1, %v2774_v50 }
 0xc69   : > { %5666 = vmatpush3.bf16.msra.mxu0 %v3093_v40 }
 0xc6a   : > { %5667 = vmatprep.subr.bf16.mxu0 %v3095_v59 }
 0xc6d   : > { %5668 = vmatpush3.bf16.msra.mxu0 %v3095_v59 }
 0xc6e   : > { %5669 = vmatprep.subr.bf16.mxu0 %v3097_v63 }
 0xc6f   : > { %5652 = vmatmul.mubr.msk.bf16.gmra.mrb[92].mxu1 %vm542_vm1, %v2776_v16 }
 0xc71   : > { %5670 = vmatpush3.bf16.msra.mxu0 %v3097_v63 }
 0xcda   : > { %v8578_v15 = vpop.f32.mrb[64].mxu1 }
 0xcdb   : > { %10075 = vst [vmem:[#allocation6_spill] sm:$0xff] %v8578_v15  ;;  %v8580_v22 = vpop.f32.mrb[65].mxu1 }
 0xcdc   : > { %10076 = vst [vmem:[#allocation8_spill] sm:$0xff] %v8580_v22  ;;  %v8582_v25 = vpop.f32.mrb[66].mxu1 }
 0xcdd   : > { %10077 = vst [vmem:[#allocation11_spill] sm:$0xff] %v8582_v25  ;;  %v8586_v52 = vpop.f32.mrb[67].mxu1 }
 0xcde   : > { %10078 = vst [vmem:[#allocation5_spill] sm:$0xff] %v8586_v52 }
 0xd12   : > { %v8590_v21 = vpop.f32.mrb[68].mxu1 }
 0xd13   : > { %10079 = vst [vmem:[#allocation7_spill] sm:$0xff] %v8590_v21  ;;  %v8592_v7 = vpop.f32.mrb[69].mxu1  ;;  %v8978_v21 = vld [vmem:[%s9897_s4 + $0x70] sm:$0xff] }
 0xd14   : > { %10080 = vst [vmem:[#allocation9_spill] sm:$0xff] %v8592_v7  ;;  %v8594_v54 = vpop.f32.mrb[70].mxu1 }
 0xd15   : > { %10081 = vst [vmem:[#allocation10_spill] sm:$0xff] %v8594_v54  ;;  %v8598_v12 = vpop.f32.mrb[71].mxu1  ;;  %v8986_v54 = vld [vmem:[%s9897_s4 + $0x78] sm:$0xff] }
 0xd16   : > { %10082 = vst [vmem:[#allocation12_spill] sm:$0xff] %v8598_v12 }
 0xd1a   : > { %v8602_v32 = vpop.f32.mrb[72].mxu1 }
 0xd1b   : > { %10083 = vst [vmem:[#allocation71_spill] sm:$0xff] %v8602_v32  ;;  %v8604_v55 = vpop.f32.mrb[73].mxu1 }
 0xd1c   : > { %10084 = vst [vmem:[#allocation72_spill] sm:$0xff] %v8604_v55  ;;  %v8606_v17 = vpop.f32.mrb[74].mxu1 }
 0xd1d   : > { %10085 = vst [vmem:[#allocation73_spill] sm:$0xff] %v8606_v17  ;;  %v8610_v13 = vpop.f32.mrb[75].mxu1 }
 0xd1e   : > { %10086 = vst [vmem:[#allocation74_spill] sm:$0xff] %v8610_v13 }
 0xd22   : > { %v8614_v57 = vpop.f32.mrb[76].mxu1 }
 0xd23   : > { %10087 = vst [vmem:[#allocation75_spill] sm:$0xff] %v8614_v57  ;;  %v8616_v14 = vpop.f32.mrb[77].mxu1 }
 0xd24   : > { %10088 = vst [vmem:[#allocation76_spill] sm:$0xff] %v8616_v14  ;;  %v8618_v1 = vpop.f32.mrb[78].mxu1 }
 0xd25   : > { %10089 = vst [vmem:[#allocation77_spill] sm:$0xff] %v8618_v1  ;;  %v8622_v50 = vpop.f32.mrb[79].mxu1  ;;  %v8917_v1 = vld [vmem:[%s9897_s4 + $0x38] sm:$0xff] }
 0xd26   : > { %10090 = vst [vmem:[#allocation78_spill] sm:$0xff] %v8622_v50 }
 0xd2a   : > { %v5641_v62 = vpop.f32.mrb[80].mxu1 }
 0xd2b   : > { %v2868_v24 = vadd.f32 %v8275_v9, %v5641_v62  ;;  %v2859_v53 = vpop.f32.mrb[81].mxu1 }
 0xd2c   : > { %v2860_v43 = vadd.f32 %v8283_v49, %v2859_v53  ;;  %v5642_v51 = vpop.f32.mrb[82].mxu1 }
 0xd2d   : > { %2926 = vmax.xlane.f32.xlu0 %v2868_v24  ;;  %v2862_v40 = vpop.f32.mrb[83].mxu1  ;;  %v2871_v59 = vadd.f32 %v8293_v33, %v5642_v51 }
 0xd2e   : > { %2922 = vmax.xlane.f32.xlu1 %v2860_v43  ;;  %v2863_v33 = vadd.f32 %v8306_v37, %v2862_v40 }
 0xd32   : > { %v5645_v63 = vpop.f32.mrb[84].mxu1  ;;  %2928 = vmax.xlane.f32.xlu1 %v2871_v59 }
 0xd33   : > { %v2875_v34 = vpop.f32.mrb[85].mxu1  ;;  %v8635_v53 = vadd.f32 %v8315_v0, %v5645_v63 }
 0xd34   : > { %v5646_v23 = vpop.f32.mrb[86].mxu1  ;;  %v2876_v14 = vadd.f32 %v8333_v30, %v2875_v34 }
 0xd35   : > { %v2878_v26 = vpop.f32.mrb[87].mxu1  ;;  %v2887_v51 = vadd.f32 %v8323_v42, %v5646_v23 }
 0xd36   : > { %v8641_v50 = vadd.f32 %v8341_v47, %v2878_v26 }
 0xd3a   : > { %v5649_v58 = vpop.f32.mrb[88].mxu1 }
 0xd3b   : > { %v2891_v3 = vpop.f32.mrb[89].mxu1  ;;  %v2900_v57 = vadd.f32 %v8351_v2, %v5649_v58 }
 0xd3c   : > { %v5650_v16 = vpop.f32.mrb[90].mxu1  ;;  %v2892_v0 = vadd.f32 %v8369_v29, %v2891_v3 }
 0xd3d   : > { %v2894_v18 = vpop.f32.mrb[91].mxu1  ;;  %v8646_v37 = vadd.f32 %v8359_v60, %v5650_v16 }
 0xd3e   : > { %v8651_v42 = vadd.f32 %v8377_v19, %v2894_v18 }
 0xd42   : > { %v5653_v11 = vpop.f32.mrb[92].mxu1 }
 0xd43   : > { %3221 = vrot.lane.b32.xlu0 %v10067_v6, %s6866_s11  ;;  %v2907_v9 = vpop.f32.mrb[93].mxu1  ;;  %3219 = vrot.lane.b32.xlu1 %v10070_v45, %s6866_s11  ;;  %v8655_v47 = vadd.f32 %v8387_v36, %v5653_v11 }
 0xd44   : > { %v5654_v49 = vpop.f32.mrb[94].mxu1  ;;  %v8663_v2 = vadd.f32 %v8405_v39, %v2907_v9 }
 0xd45   : > { %v2910_v62 = vpop.f32.mrb[95].mxu1  ;;  %v8658_v30 = vadd.f32 %v8395_v61, %v5654_v49 }
 0xd46   : > { %v8666_v29 = vadd.f32 %v8413_v31, %v2910_v62 }
 0xd62   : > { %2924 = vmax.xlane.f32.xlu0 %v2863_v33 }
 0xd66   : > { %2934 = vmax.xlane.f32.xlu0 %v8635_v53 }
 0xd67   : > { %2936 = vmax.xlane.f32.xlu1 %v2887_v51 }
 0xd6a   : > { %2930 = vmax.xlane.f32.xlu0 %v2876_v14 }
 0xd6b   : > { %2932 = vmax.xlane.f32.xlu1 %v8641_v50 }
 0xd6e   : > { %2942 = vmax.xlane.f32.xlu0 %v2900_v57 }
 0xd6f   : > { %2944 = vmax.xlane.f32.xlu1 %v8646_v37 }
 0xd72   : > { %2938 = vmax.xlane.f32.xlu0 %v2892_v0 }
 0xd73   : > { %2940 = vmax.xlane.f32.xlu1 %v8651_v42 }
 0xd76   : > { %2950 = vmax.xlane.f32.xlu0 %v8655_v47 }
 0xd77   : > { %2952 = vmax.xlane.f32.xlu1 %v8658_v30 }
 0xd7a   : > { %2946 = vmax.xlane.f32.xlu0 %v8663_v2 }
 0xd7b   : > { %2948 = vmax.xlane.f32.xlu1 %v8666_v29 }
 0xd90   : > { %3223 = vrot.lane.b32.xlu0 %v10071_v41, %s6866_s11 }
 0xdba   : > { %v2927_v19 = vpop.xlane.xlu0 %2926 }
 0xdbb   : > { %v2956_v60 = vsub.f32 %v2868_v24, %v2927_v19  ;;  %v2923_v36 = vpop.xlane.xlu1 %2922 }
 0xdbc   : > { %v2954_v61 = vsub.f32 %v2860_v43, %v2923_v36 }
 0xdbd   : > { %v2974_v58 = vmul.f32 1.442695, %v2956_v60 }
 0xdbe   : > { %v2970_v11 = vmul.f32 1.442695, %v2954_v61  ;;  %v8687_v16 = vpop.permute.xlu0 %3221 }
 0xdbf   : > { %6580 = vpow2.f32 %v2974_v58  ;;  %v2929_v26 = vpop.xlane.xlu1 %2928 }
 0xdc0   : > { %v2957_v39 = vsub.f32 %v2871_v59, %v2929_v26  ;;  %6582 = vpow2.f32 %v2970_v11 }
 0xdc2   : > { %v2976_v18 = vmul.f32 1.442695, %v2957_v39 }
 0xdc3   : > { %v8672_v31 = vpop.permute.xlu1 %3219 }
 0xdc4   : > { %5903 = vmatprep.subr.msk.bf16.mxu0 %vm542_vm1, %v8672_v31  ;;  %6584 = vpow2.f32 %v2976_v18 }
 0xdc9   : > { %v8676_v23 = vpop.eup %6580 }
 0xdca   : > { %3006 = vadd.xlane.f32.xlu1 %v8676_v23  ;;  %v8679_v3 = vpop.eup %6582 }
 0xdce   : > { %3002 = vadd.xlane.f32.xlu1 %v8679_v3  ;;  %v8682_v34 = vpop.eup %6584 }
 0xdd2   : > { %3008 = vadd.xlane.f32.xlu1 %v8682_v34 }
 0xde3   : > { %3225 = vrot.lane.b32.xlu1 %v10068_v44, %s6866_s11 }
 0xdef   : > { %v2925_v24 = vpop.xlane.xlu0 %2924 }
 0xdf0   : > { %v2955_v43 = vsub.f32 %v2863_v33, %v2925_v24 }
 0xdf2   : > { %v2972_v40 = vmul.f32 1.442695, %v2955_v43 }
 0xdf3   : > { %v2935_v59 = vpop.xlane.xlu0 %2934 }
 0xdf4   : > { %6586 = vpow2.f32 %v2972_v40  ;;  %v2937_v63 = vpop.xlane.xlu1 %2936 }
 0xdf5   : > { %v2961_v49 = vsub.f32 %v2887_v51, %v2937_v63 }
 0xdf7   : > { %v2931_v9 = vpop.xlane.xlu0 %2930  ;;  %v2984_v61 = vmul.f32 1.442695, %v2961_v49 }
 0xdf8   : > { %v2958_v62 = vsub.f32 %v2876_v14, %v2931_v9  ;;  %v2933_v19 = vpop.xlane.xlu1 %2932 }
 0xdfa   : > { %v2978_v60 = vmul.f32 1.442695, %v2958_v62 }
 0xdfb   : > { %v2943_v36 = vpop.xlane.xlu0 %2942 }
 0xdfc   : > { %6588 = vpow2.f32 %v2978_v60  ;;  %v2964_v58 = vsub.f32 %v2900_v57, %v2943_v36  ;;  %v2945_v11 = vpop.xlane.xlu1 %2944 }
 0xdfd   : > { %6590 = vpow2.f32 %v2984_v61  ;;  %v2965_v51 = vsub.f32 %v8646_v37, %v2945_v11 }
 0xdfe   : > { %v8689_v26 = vpop.eup %6586  ;;  %v2990_v33 = vmul.f32 1.442695, %v2964_v58  ;;  %v2960_v58 = vsub.f32 %v8635_v53, %v2935_v59 }
 0xdff   : > { %3004 = vadd.xlane.f32.xlu0 %v8689_v26  ;;  %v2939_v39 = vpop.xlane.xlu0 %2938  ;;  %v2992_v57 = vmul.f32 1.442695, %v2965_v51 }
 0xe00   : > { %v2962_v18 = vsub.f32 %v2892_v0, %v2939_v39  ;;  %v2941_v24 = vpop.xlane.xlu1 %2940  ;;  %6592 = vpow2.f32 %v2990_v33  ;;  %v2982_v39 = vmul.f32 1.442695, %v2960_v58  ;;  %v2959_v33 = vsub.f32 %v8641_v50, %v2933_v19 }
 0xe01   : > { %v2963_v63 = vsub.f32 %v8651_v42, %v2941_v24 }
 0xe02   : > { %v2986_v14 = vmul.f32 1.442695, %v2962_v18  ;;  %v2980_v18 = vmul.f32 1.442695, %v2959_v33 }
 0xe03   : > { %v2988_v0 = vmul.f32 1.442695, %v2963_v63  ;;  %v2951_v11 = vpop.xlane.xlu0 %2950 }
 0xe04   : > { %v2953_v43 = vpop.xlane.xlu1 %2952  ;;  %6594 = vpow2.f32 %v2986_v14  ;;  %v2968_v24 = vsub.f32 %v8655_v47, %v2951_v11 }
 0xe05   : > { %6596 = vpow2.f32 %v2992_v57  ;;  %v2969_v63 = vsub.f32 %v8658_v30, %v2953_v43 }
 0xe06   : > { %v8693_v40 = vpop.eup %6588  ;;  %6598 = vpow2.f32 %v2988_v0  ;;  %v2998_v14 = vmul.f32 1.442695, %v2968_v24 }
 0xe07   : > { %3010 = vadd.xlane.f32.xlu1 %v8693_v40  ;;  %v8697_v49 = vpop.eup %6590  ;;  %v2947_v51 = vpop.xlane.xlu0 %2946  ;;  %v3000_v50 = vmul.f32 1.442695, %v2969_v63 }
 0xe08   : > { %v2949_v9 = vpop.xlane.xlu1 %2948  ;;  %v2966_v57 = vsub.f32 %v8663_v2, %v2947_v51 }
 0xe09   : > { %v2967_v62 = vsub.f32 %v8666_v29, %v2949_v9 }
 0xe0a   : > { %v8701_v37 = vpop.eup %6592  ;;  %v2994_v53 = vmul.f32 1.442695, %v2966_v57 }
 0xe0b   : > { %3016 = vadd.xlane.f32.xlu1 %v8697_v49  ;;  %v2996_v60 = vmul.f32 1.442695, %v2967_v62  ;;  %v3224_v62 = vpop.permute.xlu0 %3223 }
 0xe0d   : > { %6600 = vpow2.f32 %v2996_v60 }
 0xe0e   : > { %v8704_v36 = vpop.eup %6594  ;;  %6602 = vpow2.f32 %v2982_v39 }
 0xe0f   : > { %3022 = vadd.xlane.f32.xlu1 %v8701_v37  ;;  %v8709_v42 = vpop.eup %6596  ;;  %6604 = vpow2.f32 %v2980_v18 }
 0xe10   : > { %v8712_v61 = vpop.eup %6598  ;;  %6606 = vpow2.f32 %v2998_v14 }
 0xe11   : > { %6608 = vpow2.f32 %v2994_v53 }
 0xe12   : > { %6610 = vpow2.f32 %v3000_v50 }
 0xe13   : > { %3018 = vadd.xlane.f32.xlu1 %v8704_v36 }
 0xe15   : > { %3227 = vrot.lane.b32.xlu0 %v10072_v20, %s6866_s11 }
 0xe17   : > { %3024 = vadd.xlane.f32.xlu1 %v8709_v42  ;;  %v8715_v29 = vpop.eup %6600 }
 0xe18   : > { %v8725_v59 = vpop.eup %6602 }
 0xe19   : > { %v8730_v47 = vpop.eup %6604 }
 0xe1a   : > { %v8735_v2 = vpop.eup %6606 }
 0xe1b   : > { %3020 = vadd.xlane.f32.xlu1 %v8712_v61  ;;  %v8740_v30 = vpop.eup %6608 }
 0xe1c   : > { %v8745_v19 = vpop.eup %6610 }
 0xe1f   : > { %3028 = vadd.xlane.f32.xlu1 %v8715_v29 }
 0xe30   : > { %3229 = vrot.lane.b32.xlu1 %v10073_v38, %s6866_s11 }
 0xe34   : > { %3014 = vadd.xlane.f32.xlu0 %v8725_v59  ;;  %3203 = vrot.lane.b32.xlu1 %v10070_v45, %s6867_s13 }
 0xe38   : > { %3012 = vadd.xlane.f32.xlu0 %v8730_v47  ;;  %3207 = vrot.lane.b32.xlu1 %v10071_v41, %s6867_s13 }
 0xe3c   : > { %3030 = vadd.xlane.f32.xlu0 %v8735_v2  ;;  %3211 = vrot.lane.b32.xlu1 %v10072_v20, %s6867_s13 }
 0xe40   : > { %3026 = vadd.xlane.f32.xlu0 %v8740_v30  ;;  %3215 = vrot.lane.b32.xlu1 %v10069_v56, %s6867_s13 }
 0xe44   : > { %3032 = vadd.xlane.f32.xlu0 %v8745_v19  ;;  %3534 = vrot.lane.b32.xlu1 %v10067_v6, %s6865_s10 }
 0xe48   : > { %3538 = vrot.lane.b32.xlu1 %v10068_v44, %s6865_s10 }
 0xe4c   : > { %3544 = vrot.lane.b32.xlu1 %v10069_v56, %s6865_s10 }
 0xe57   : > { %v3007_v43 = vpop.xlane.xlu1 %3006 }
 0xe5a   : > { %3231 = vrot.lane.b32.xlu0 %v10069_v56, %s6866_s11 }
 0xe5b   : > { %v3003_v9 = vpop.xlane.xlu1 %3002 }
 0xe5e   : > { %3233 = vrot.lane.b32.xlu0 %v10074_v28, %s6866_s11 }
 0xe5f   : > { %v3009_v0 = vpop.xlane.xlu1 %3008 }
 0xe60   : > { %6612 = vrcp.f32 %v3009_v0 }
 0xe61   : > { %6614 = vrcp.f32 %v3003_v9 }
 0xe62   : > { %3205 = vrot.lane.b32.xlu0 %v10067_v6, %s6867_s13  ;;  %6616 = vrcp.f32 %v3007_v43  ;;  %v3260_v43 = vsel %vm542_vm1, %v8672_v31, 0 }
 0xe63   : > { %v3226_v58 = vpop.permute.xlu1 %3225 }
 0xe64   : > { %v3269_v31 = vsel %vm542_vm1, %v3226_v58, 0 }
 0xe66   : > { %3209 = vrot.lane.b32.xlu0 %v10068_v44, %s6867_s13 }
 0xe6a   : > { %3213 = vrot.lane.b32.xlu0 %v10073_v38, %s6867_s13  ;;  %v6613_v11 = vpop.eup %6612 }
 0xe6b   : > { %v6615_v33 = vpop.eup %6614  ;;  %v3053_v51 = vmul.f32 %v6613_v11, %v8682_v34 }
 0xe6c   : > { %v6617_v18 = vpop.eup %6616  ;;  %v3050_v14 = vmul.f32 %v6615_v33, %v8679_v3  ;;  %v3263_v3 = vsel %vm542_vm1, %v8687_v16, 0 }
 0xe6d   : > { %v3052_v63 = vmul.f32 %v6617_v18, %v8676_v23 }
 0xe6e   : > { %3217 = vrot.lane.b32.xlu0 %v10074_v28, %s6867_s13 }
 0xe6f   : > { %v3067_v9 = vpack.c.bf16 %v3053_v51, %v3052_v63 }
 0xe72   : > { %3532 = vrot.lane.b32.xlu0 %v10070_v45, %s6865_s10 }
 0xe76   : > { %3536 = vrot.lane.b32.xlu0 %v10071_v41, %s6865_s10 }
 0xe7a   : > { %3540 = vrot.lane.b32.xlu0 %v10072_v20, %s6865_s10 }
 0xe7e   : > { %3542 = vrot.lane.b32.xlu0 %v10073_v38, %s6865_s10 }
 0xe82   : > { %3546 = vrot.lane.b32.xlu0 %v10074_v28, %s6865_s10 }
 0xe8c   : > { %v3005_v60 = vpop.xlane.xlu0 %3004 }
 0xe8d   : > { %6618 = vrcp.f32 %v3005_v60 }
 0xe90   : > { %v3228_v11 = vpop.permute.xlu0 %3227 }
 0xe94   : > { %v3011_v39 = vpop.xlane.xlu1 %3010 }
 0xe95   : > { %6620 = vrcp.f32 %v3011_v39 }
 0xe97   : > { %v6619_v24 = vpop.eup %6618 }
 0xe98   : > { %v3051_v57 = vmul.f32 %v6619_v24, %v8689_v26  ;;  %v3017_v53 = vpop.xlane.xlu1 %3016  ;;  %v3266_v26 = vsel %vm542_vm1, %v3224_v62, 0 }
 0xe99   : > { %6622 = vrcp.f32 %v3017_v53 }
 0xe9a   : > { %v3066_v50 = vpack.c.bf16 %v3051_v57, %v3050_v14 }
 0xe9c   : > { %5671 = vmatprep.mubr.bf16.mxu0 %v3066_v50  ;;  %v3023_v0 = vpop.xlane.xlu1 %3022 }
 0xe9d   : > { %5672 = vmatmul.mubr.bf16.vlgmr.msra.gmra.mrb[112].mxu0 %v3067_v9 }
 0xe9e   : > { %5688 = vmatpush3.bf16.xpose.msra.mxu0 %v3260_v43 }
 0xe9f   : > { %5904 = vmatprep.subr.msk.bf16.mxu0 %vm542_vm1, %v8687_v16  ;;  %v3272_v16 = vsel %vm542_vm1, %v3228_v11, 0  ;;  %v6621_v14 = vpop.eup %6620 }
 0xea0   : > { %v3019_v34 = vpop.xlane.xlu1 %3018 }
 0xea3   : > { %v6623_v57 = vpop.eup %6622 }
 0xea4   : > { %v3025_v23 = vpop.xlane.xlu1 %3024 }
 0xea6   : > { %5690 = vmatpush3.bf16.xpose.msra.mxu0 %v3263_v3 }
 0xea7   : > { %5905 = vmatprep.subr.msk.bf16.mxu0 %vm542_vm1, %v3224_v62 }
 0xea8   : > { %v3021_v60 = vpop.xlane.xlu1 %3020 }
 0xeac   : > { %v3029_v33 = vpop.xlane.xlu1 %3028 }
 0xeae   : > { %5692 = vmatpush3.bf16.xpose.msra.mxu0 %v3266_v26 }
 0xeaf   : > { %5906 = vmatprep.subr.msk.bf16.mxu0 %vm542_vm1, %v3226_v58 }
 0xeb0   : > { %v3230_v18 = vpop.permute.xlu1 %3229 }
 0xeb1   : > { %v3275_v58 = vsel %vm542_vm1, %v3230_v18, 0 }
 0xeb6   : > { %5694 = vmatpush3.bf16.xpose.msra.mxu0 %v3269_v31 }
 0xeb7   : > { %5907 = vmatprep.subr.msk.bf16.mxu0 %vm542_vm1, %v3228_v11 }
 0xebe   : > { %5696 = vmatpush3.bf16.xpose.msra.mxu0 %v3272_v16 }
 0xebf   : > { %5908 = vmatprep.subr.msk.bf16.mxu0 %vm542_vm1, %v3230_v18 }
 0xec1   : > { %v3015_v24 = vpop.xlane.xlu0 %3014 }
 0xec2   : > { %6624 = vrcp.f32 %v3015_v24 }
 0xec3   : > { %6626 = vrcp.f32 %v3021_v60 }
 0xec4   : > { %6628 = vrcp.f32 %v3019_v34  ;;  %v3054_v34 = vmul.f32 %v6621_v14, %v8693_v40 }
 0xec5   : > { %v3013_v62 = vpop.xlane.xlu0 %3012 }
 0xec6   : > { %6630 = vrcp.f32 %v3013_v62  ;;  %5698 = vmatpush3.bf16.xpose.msra.mxu0 %v3275_v58 }
 0xec7   : > { %6632 = vrcp.f32 %v3025_v23  ;;  %v3057_v23 = vmul.f32 %v6623_v57, %v8697_v49 }
 0xec8   : > { %6634 = vrcp.f32 %v3023_v0 }
 0xec9   : > { %v3031_v51 = vpop.xlane.xlu0 %3030  ;;  %6636 = vrcp.f32 %v3029_v33 }
 0xecc   : > { %v6625_v63 = vpop.eup %6624 }
 0xecd   : > { %v3027_v50 = vpop.xlane.xlu0 %3026  ;;  %v6627_v9 = vpop.eup %6626  ;;  %v3056_v43 = vmul.f32 %v6625_v63, %v8725_v59 }
 0xece   : > { %6638 = vrcp.f32 %v3027_v50  ;;  %v6629_v39 = vpop.eup %6628  ;;  %v3059_v60 = vmul.f32 %v6627_v9, %v8712_v61  ;;  %v3204_v61 = vpop.permute.xlu1 %3203 }
 0xecf   : > { %v3058_v31 = vmul.f32 %v6629_v39, %v8704_v36  ;;  %v3069_v11 = vpack.c.bf16 %v3057_v23, %v3056_v43 }
 0xed0   : > { %v6631_v53 = vpop.eup %6630 }
 0xed1   : > { %v3033_v3 = vpop.xlane.xlu0 %3032  ;;  %v3055_v26 = vmul.f32 %v6631_v53, %v8730_v47  ;;  %v6633_v33 = vpop.eup %6632  ;;  %v3070_v18 = vpack.c.bf16 %v3059_v60, %v3058_v31 }
 0xed2   : > { %6640 = vrcp.f32 %v3033_v3  ;;  %v6635_v59 = vpop.eup %6634  ;;  %v3061_v24 = vmul.f32 %v6633_v33, %v8709_v42  ;;  %v3208_v63 = vpop.permute.xlu1 %3207 }
 0xed3   : > { %v3068_v0 = vpack.c.bf16 %v3055_v26, %v3054_v34  ;;  %6642 = vrcp.f32 %v3031_v51  ;;  %v6637_v47 = vpop.eup %6636  ;;  %v3060_v58 = vmul.f32 %v6635_v59, %v8701_v37 }
 0xed4   : > { %v3063_v51 = vmul.f32 %v6637_v47, %v8715_v29 }
 0xed5   : > { %v3232_v16 = vpop.permute.xlu0 %3231  ;;  %5675 = vmatprep.mubr.bf16.mxu0 %v3068_v0  ;;  %v3071_v14 = vpack.c.bf16 %v3061_v24, %v3060_v58 }
 0xed6   : > { %5676 = vmatmul.mubr.bf16.gmra.mrb[116].mxu0 %v3069_v11  ;;  %5909 = vmatprep.subr.msk.bf16.mxu0 %vm542_vm1, %v3232_v16  ;;  %v3278_v40 = vsel %vm542_vm1, %v3232_v16, 0  ;;  %v3212_v3 = vpop.permute.xlu1 %3211 }
 0xed7   : > { %5679 = vmatprep.mubr.bf16.mxu0 %v3070_v18  ;;  %5700 = vmatpush3.bf16.xpose.msra.mxu0 %v3278_v40 }
 0xed8   : > { %v6639_v49 = vpop.eup %6638 }
 0xed9   : > { %v3234_v36 = vpop.permute.xlu0 %3233  ;;  %v3062_v62 = vmul.f32 %v6639_v49, %v8740_v30 }
 0xeda   : > { %5910 = vmatprep.subr.msk.bf16.mxu0 %vm542_vm1, %v3234_v36  ;;  %v3281_v39 = vsel %vm542_vm1, %v3234_v36, 0  ;;  %v3216_v29 = vpop.permute.xlu1 %3215 }
 0xedb   : > { %v3072_v9 = vpack.c.bf16 %v3063_v51, %v3062_v62 }
 0xedc   : > { %v6641_v57 = vpop.eup %6640 }
 0xedd   : > { %v3206_v50 = vpop.permute.xlu0 %3205  ;;  %v6643_v53 = vpop.eup %6642  ;;  %v3065_v42 = vmul.f32 %v6641_v57, %v8745_v19 }
 0xede   : > { %5680 = vmatmul.mubr.bf16.gmra.mrb[120].mxu0 %v3071_v14  ;;  %v3064_v43 = vmul.f32 %v6643_v53, %v8735_v2  ;;  %v3535_v23 = vpop.permute.xlu1 %3534 }
 0xedf   : > { %5683 = vmatprep.mubr.bf16.mxu0 %v3072_v9  ;;  %5702 = vmatpush3.bf16.xpose.msra.mxu0 %v3281_v39 }
 0xee0   : > { %v3073_v37 = vpack.c.bf16 %v3065_v42, %v3064_v43 }
 0xee1   : > { %v3210_v30 = vpop.permute.xlu0 %3209 }
 0xee2   : > { %v3539_v2 = vpop.permute.xlu1 %3538 }
 0xee5   : > { %v3214_v34 = vpop.permute.xlu0 %3213 }
 0xee6   : > { %5684 = vmatmul.mubr.bf16.gmra.mrb[124].mxu0 %v3073_v37  ;;  %v3545_v11 = vpop.permute.xlu1 %3544 }
 0xee7   : > { %5703 = vmatprep.mubr.msk.bf16.mxu0 %vm542_vm1, %v3204_v61 }
 0xee9   : > { %v3218_v26 = vpop.permute.xlu0 %3217 }
 0xeed   : > { %v3533_v60 = vpop.permute.xlu0 %3532 }
 0xeee   : > { %5704 = vmatmul.mubr.msk.bf16.vlgmr.msra.gmra.mrb[128].mxu0 %vm542_vm1, %v3206_v50  ;;  %5719 = vmatprep.subr.bf16.mxu1 %v3533_v60 }
 0xeef   : > { %5707 = vmatprep.mubr.msk.bf16.mxu0 %vm542_vm1, %v3208_v63  ;;  %5720 = vmatpush3.bf16.msra.mxu1 %v3533_v60 }
 0xef0   : > { %5721 = vmatprep.subr.bf16.mxu1 %v3535_v23 }
 0xef1   : > { %v3537_v19 = vpop.permute.xlu0 %3536 }
 0xef3   : > { %5722 = vmatpush3.bf16.msra.mxu1 %v3535_v23  ;;  %v8877_v23 = vld [vmem:[%s9897_s4] sm:$0xff] }
 0xef4   : > { %5723 = vmatprep.subr.bf16.mxu1 %v3537_v19 }
 0xef5   : > { %v3541_v0 = vpop.permute.xlu0 %3540 }
 0xef6   : > { %5708 = vmatmul.mubr.msk.bf16.gmra.mrb[132].mxu0 %vm542_vm1, %v3210_v30 }
 0xef7   : > { %5711 = vmatprep.mubr.msk.bf16.mxu0 %vm542_vm1, %v3212_v3  ;;  %5724 = vmatpush3.bf16.msra.mxu1 %v3537_v19 }
 0xef8   : > { %5725 = vmatprep.subr.bf16.mxu1 %v3539_v2 }
 0xef9   : > { %v3543_v31 = vpop.permute.xlu0 %3542 }
 0xefb   : > { %5726 = vmatpush3.bf16.msra.mxu1 %v3539_v2 }
 0xefc   : > { %5727 = vmatprep.subr.bf16.mxu1 %v3541_v0 }
 0xefd   : > { %v3547_v33 = vpop.permute.xlu0 %3546 }
 0xefe   : > { %5712 = vmatmul.mubr.msk.bf16.gmra.mrb[136].mxu0 %vm542_vm1, %v3214_v34 }
 0xeff   : > { %5715 = vmatprep.mubr.msk.bf16.mxu0 %vm542_vm1, %v3216_v29  ;;  %5728 = vmatpush3.bf16.msra.mxu1 %v3541_v0  ;;  %v8869_v29 = vld [vmem:[%s9897_s4 + $0x10] sm:$0xff] }
 0xf00   : > { %5729 = vmatprep.subr.bf16.mxu1 %v3543_v31 }
 0xf03   : > { %5730 = vmatpush3.bf16.msra.mxu1 %v3543_v31  ;;  %v8887_v31 = vld [vmem:[%s9897_s4 + $0x18] sm:$0xff] }
 0xf04   : > { %5731 = vmatprep.subr.bf16.mxu1 %v3545_v11 }
 0xf06   : > { %5716 = vmatmul.mubr.msk.bf16.gmra.mrb[140].mxu0 %vm542_vm1, %v3218_v26 }
 0xf07   : > { %5732 = vmatpush3.bf16.msra.mxu1 %v3545_v11 }
 0xf08   : > { %5733 = vmatprep.subr.bf16.mxu1 %v3547_v33 }
 0xf0b   : > { %5734 = vmatpush3.bf16.msra.mxu1 %v3547_v33 }
 0xf70   : > { %v8818_v16 = vpop.f32.mrb[112].mxu0 }
 0xf71   : > { %10091 = vst [vmem:[#allocation79_spill] sm:$0xff] %v8818_v16  ;;  %v8820_v18 = vpop.f32.mrb[113].mxu0  ;;  %v8996_v16 = vld [vmem:[%s9897_s4 + $0x60] sm:$0xff] }
 0xf72   : > { %10092 = vst [vmem:[#allocation80_spill] sm:$0xff] %v8820_v18  ;;  %v8822_v59 = vpop.f32.mrb[114].mxu0 }
 0xf73   : > { %10093 = vst [vmem:[#allocation81_spill] sm:$0xff] %v8822_v59  ;;  %v8826_v47 = vpop.f32.mrb[115].mxu0  ;;  %v9004_v59 = vld [vmem:[%s9897_s4 + $0x68] sm:$0xff] }
 0xf74   : > { %10094 = vst [vmem:[#allocation82_spill] sm:$0xff] %v8826_v47 }
 0xfa9   : > { %v8830_v49 = vpop.f32.mrb[116].mxu0 }
 0xfaa   : > { %10095 = vst [vmem:[#allocation83_spill] sm:$0xff] %v8830_v49  ;;  %v8832_v24 = vpop.f32.mrb[117].mxu0 }
 0xfab   : > { %10096 = vst [vmem:[#allocation84_spill] sm:$0xff] %v8832_v24  ;;  %v8834_v36 = vpop.f32.mrb[118].mxu0 }
 0xfac   : > { %10097 = vst [vmem:[#allocation85_spill] sm:$0xff] %v8834_v36  ;;  %v8838_v58 = vpop.f32.mrb[119].mxu0  ;;  %v8968_v36 = vld [vmem:[%s9897_s4 + $0x48] sm:$0xff] }
 0xfad   : > { %10098 = vst [vmem:[#allocation86_spill] sm:$0xff] %v8838_v58 }
 0xfb1   : > { %v8842_v14 = vpop.f32.mrb[120].mxu0 }
 0xfb2   : > { %10099 = vst [vmem:[#allocation87_spill] sm:$0xff] %v8842_v14  ;;  %v8844_v57 = vpop.f32.mrb[121].mxu0 }
 0xfb3   : > { %10100 = vst [vmem:[#allocation88_spill] sm:$0xff] %v8844_v57  ;;  %v8846_v63 = vpop.f32.mrb[122].mxu0 }
 0xfb4   : > { %10101 = vst [vmem:[#allocation89_spill] sm:$0xff] %v8846_v63  ;;  %v8850_v9 = vpop.f32.mrb[123].mxu0  ;;  %v8933_v63 = vld [vmem:[%s9897_s4 + $0x28] sm:$0xff] }
 0xfb5   : > { %10102 = vst [vmem:[#allocation90_spill] sm:$0xff] %v8850_v9 }
 0xfb9   : > { %v8854_v53 = vpop.f32.mrb[124].mxu0 }
 0xfba   : > { %10103 = vst [vmem:[#allocation91_spill] sm:$0xff] %v8854_v53  ;;  %v8856_v42 = vpop.f32.mrb[125].mxu0  ;;  %v8909_v53 = vld [vmem:[%s9897_s4 + $0x30] sm:$0xff] }
 0xfbb   : > { %10104 = vst [vmem:[#allocation92_spill] sm:$0xff] %v8856_v42  ;;  %v8858_v30 = vpop.f32.mrb[126].mxu0  ;;  %v8900_v42 = vld [vmem:[%s9897_s4 + $0x8] sm:$0xff] }
 0xfbc   : > { %10105 = vst [vmem:[#allocation93_spill] sm:$0xff] %v8858_v30  ;;  %v8862_v3 = vpop.f32.mrb[127].mxu0 }
 0xfbd   : > { %10106 = vst [vmem:[#allocation94_spill] sm:$0xff] %v8862_v3 }
 0xfc1   : > { %v5705_v34 = vpop.f32.mrb[128].mxu0 }
 0xfc2   : > { %v8872_v26 = vadd.f32 %v8869_v29, %v5705_v34  ;;  %v3317_v60 = vpop.f32.mrb[129].mxu0 }
 0xfc3   : > { %v8880_v19 = vadd.f32 %v8877_v23, %v3317_v60  ;;  %v5706_v2 = vpop.f32.mrb[130].mxu0 }
 0xfc4   : > { %3384 = vmax.xlane.f32.xlu0 %v8872_v26  ;;  %v3320_v0 = vpop.f32.mrb[131].mxu0  ;;  %v8890_v11 = vadd.f32 %v8887_v31, %v5706_v2 }
 0xfc5   : > { %3380 = vmax.xlane.f32.xlu1 %v8880_v19  ;;  %v8903_v3 = vadd.f32 %v8900_v42, %v3320_v0  ;;  %v8927_v0 = vld [vmem:[%s9897_s4 + $0x20] sm:$0xff] }
 0xfc9   : > { %3386 = vmax.xlane.f32.xlu1 %v8890_v11  ;;  %v5709_v33 = vpop.f32.mrb[132].mxu0 }
 0xfca   : > { %v3333_v34 = vpop.f32.mrb[133].mxu0  ;;  %v8912_v30 = vadd.f32 %v8909_v53, %v5709_v33 }
 0xfcb   : > { %v5710_v60 = vpop.f32.mrb[134].mxu0  ;;  %v3334_v33 = vadd.f32 %v8927_v0, %v3333_v34  ;;  %v8950_v34 = vld [vmem:[%s9897_s4 + $0x58] sm:$0xff] }
 0xfcc   : > { %v3336_v37 = vpop.f32.mrb[135].mxu0  ;;  %v8920_v14 = vadd.f32 %v8917_v1, %v5710_v60  ;;  %v8942_v60 = vld [vmem:[%s9897_s4 + $0x50] sm:$0xff] }
 0xfcd   : > { %v8936_v32 = vadd.f32 %v8933_v63, %v3336_v37  ;;  %v8960_v37 = vld [vmem:[%s9897_s4 + $0x40] sm:$0xff] }
 0xfd1   : > { %v5713_v43 = vpop.f32.mrb[136].mxu0 }
 0xfd2   : > { %v3349_v50 = vpop.f32.mrb[137].mxu0  ;;  %v8945_v17 = vadd.f32 %v8942_v60, %v5713_v43 }
 0xfd3   : > { %v5714_v62 = vpop.f32.mrb[138].mxu0  ;;  %v8963_v43 = vadd.f32 %v8960_v37, %v3349_v50 }
 0xfd4   : > { %v3352_v40 = vpop.f32.mrb[139].mxu0  ;;  %v8953_v49 = vadd.f32 %v8950_v34, %v5714_v62 }
 0xfd5   : > { %v8971_v62 = vadd.f32 %v8968_v36, %v3352_v40 }
 0xfd9   : > { %v5717_v39 = vpop.f32.mrb[140].mxu0 }
 0xfda   : > { %3671 = vrot.lane.b32.xlu0 %v10067_v6, %s6870_s7  ;;  %3669 = vrot.lane.b32.xlu1 %v10070_v45, %s6870_s7  ;;  %v3365_v51 = vpop.f32.mrb[141].mxu0  ;;  %v8981_v50 = vadd.f32 %v8978_v21, %v5717_v39 }
 0xfdb   : > { %v5718_v2 = vpop.f32.mrb[142].mxu0  ;;  %v8999_v39 = vadd.f32 %v8996_v16, %v3365_v51 }
 0xfdc   : > { %v3368_v61 = vpop.f32.mrb[143].mxu0  ;;  %v8989_v40 = vadd.f32 %v8986_v54, %v5718_v2 }
 0xfdd   : > { %v9007_v2 = vadd.f32 %v9004_v59, %v3368_v61 }
 0xff9   : > { %3382 = vmax.xlane.f32.xlu0 %v8903_v3 }
 0xffd   : > { %3392 = vmax.xlane.f32.xlu0 %v8912_v30 }
 0xffe   : > { %3394 = vmax.xlane.f32.xlu1 %v8920_v14 }
0x1001   : > { %3388 = vmax.xlane.f32.xlu0 %v3334_v33 }
0x1002   : > { %3390 = vmax.xlane.f32.xlu1 %v8936_v32 }
0x1005   : > { %3400 = vmax.xlane.f32.xlu0 %v8945_v17 }
0x1006   : > { %3402 = vmax.xlane.f32.xlu1 %v8953_v49 }
0x1009   : > { %3396 = vmax.xlane.f32.xlu0 %v8963_v43 }
0x100a   : > { %3398 = vmax.xlane.f32.xlu1 %v8971_v62 }
0x100d   : > { %3408 = vmax.xlane.f32.xlu0 %v8981_v50 }
0x100e   : > { %3410 = vmax.xlane.f32.xlu1 %v8989_v40 }
0x1011   : > { %3404 = vmax.xlane.f32.xlu0 %v8999_v39 }
0x1012   : > { %3406 = vmax.xlane.f32.xlu1 %v9007_v2 }
0x1027   : > { %3673 = vrot.lane.b32.xlu0 %v10071_v41, %s6870_s7 }
0x1051   : > { %v3385_v15 = vpop.xlane.xlu0 %3384 }
0x1052   : > { %v3414_v25 = vsub.f32 %v8872_v26, %v3385_v15  ;;  %v3381_v51 = vpop.xlane.xlu1 %3380 }
0x1053   : > { %v3412_v57 = vsub.f32 %v8880_v19, %v3381_v51 }
0x1054   : > { %v3432_v9 = vmul.f32 1.442695, %v3414_v25 }
0x1055   : > { %v3428_v55 = vmul.f32 1.442695, %v3412_v57 }
0x1056   : > { %6644 = vpow2.f32 %v3432_v9  ;;  %v3387_v13 = vpop.xlane.xlu1 %3386 }
0x1057   : > { %v3415_v61 = vsub.f32 %v8890_v11, %v3387_v13  ;;  %6646 = vpow2.f32 %v3428_v55  ;;  %v9031_v55 = vpop.permute.xlu0 %3671 }
0x1059   : > { %v3434_v24 = vmul.f32 1.442695, %v3415_v61 }
0x105a   : > { %v9016_v58 = vpop.permute.xlu1 %3669 }
0x105b   : > { %5911 = vmatprep.subr.msk.bf16.mxu1 %vm542_vm1, %v9016_v58  ;;  %6648 = vpow2.f32 %v3434_v24 }
0x1060   : > { %v9020_v7 = vpop.eup %6644 }
0x1061   : > { %3464 = vadd.xlane.f32.xlu1 %v9020_v7  ;;  %v9023_v15 = vpop.eup %6646 }
0x1065   : > { %3460 = vadd.xlane.f32.xlu1 %v9023_v15  ;;  %v9026_v25 = vpop.eup %6648 }
0x1069   : > { %3466 = vadd.xlane.f32.xlu1 %v9026_v25 }
0x107a   : > { %3675 = vrot.lane.b32.xlu1 %v10068_v44, %s6870_s7 }
0x1086   : > { %v3383_v13 = vpop.xlane.xlu0 %3382 }
0x1087   : > { %v3413_v24 = vsub.f32 %v8903_v3, %v3383_v13 }
0x1089   : > { %v3430_v57 = vmul.f32 1.442695, %v3413_v24 }
0x108a   : > { %v3393_v9 = vpop.xlane.xlu0 %3392 }
0x108b   : > { %6650 = vpow2.f32 %v3430_v57  ;;  %v3395_v26 = vpop.xlane.xlu1 %3394 }
0x108c   : > { %v3419_v11 = vsub.f32 %v8920_v14, %v3395_v26 }
0x108e   : > { %v3389_v19 = vpop.xlane.xlu0 %3388  ;;  %v3442_v35 = vmul.f32 1.442695, %v3419_v11  ;;  %v3418_v11 = vsub.f32 %v8912_v30, %v3393_v9 }
0x108f   : > { %v3416_v51 = vsub.f32 %v3334_v33, %v3389_v19  ;;  %v3391_v61 = vpop.xlane.xlu1 %3390 }
0x1091   : > { %v3436_v12 = vmul.f32 1.442695, %v3416_v51 }
0x1092   : > { %v3401_v46 = vpop.xlane.xlu0 %3400 }
0x1093   : > { %6652 = vpow2.f32 %v3436_v12  ;;  %v3422_v18 = vsub.f32 %v8945_v17, %v3401_v46  ;;  %v3403_v47 = vpop.xlane.xlu1 %3402 }
0x1094   : > { %6654 = vpow2.f32 %v3442_v35  ;;  %v3423_v14 = vsub.f32 %v8953_v49, %v3403_v47 }
0x1095   : > { %v9036_v22 = vpop.eup %6650  ;;  %v3448_v3 = vmul.f32 1.442695, %v3422_v18 }
0x1096   : > { %v3397_v52 = vpop.xlane.xlu0 %3396  ;;  %3462 = vadd.xlane.f32.xlu0 %v9036_v22  ;;  %v3450_v46 = vmul.f32 1.442695, %v3423_v14 }
0x1097   : > { %v3420_v13 = vsub.f32 %v8963_v43, %v3397_v52  ;;  %v3399_v24 = vpop.xlane.xlu1 %3398  ;;  %6656 = vpow2.f32 %v3448_v3  ;;  %v3440_v3 = vmul.f32 1.442695, %v3418_v11 }
0x1098   : > { %v3421_v12 = vsub.f32 %v8971_v62, %v3399_v24 }
0x1099   : > { %v3444_v33 = vmul.f32 1.442695, %v3420_v13  ;;  %v3417_v13 = vsub.f32 %v8936_v32, %v3391_v61 }
0x109a   : > { %v3446_v35 = vmul.f32 1.442695, %v3421_v12  ;;  %v3409_v51 = vpop.xlane.xlu0 %3408 }
0x109b   : > { %v3411_v57 = vpop.xlane.xlu1 %3410  ;;  %6658 = vpow2.f32 %v3444_v33  ;;  %v3438_v24 = vmul.f32 1.442695, %v3417_v13  ;;  %v3426_v14 = vsub.f32 %v8981_v50, %v3409_v51 }
0x109c   : > { %6660 = vpow2.f32 %v3450_v46 }
0x109d   : > { %v9041_v26 = vpop.eup %6652  ;;  %6662 = vpow2.f32 %v3446_v35  ;;  %v3456_v46 = vmul.f32 1.442695, %v3426_v14 }
0x109e   : > { %3468 = vadd.xlane.f32.xlu1 %v9041_v26  ;;  %v9045_v19 = vpop.eup %6654  ;;  %v3405_v33 = vpop.xlane.xlu0 %3404 }
0x109f   : > { %v3407_v17 = vpop.xlane.xlu1 %3406  ;;  %v3424_v12 = vsub.f32 %v8999_v39, %v3405_v33 }
0x10a0   : > { %v3425_v52 = vsub.f32 %v9007_v2, %v3407_v17  ;;  %v3427_v17 = vsub.f32 %v8989_v40, %v3411_v57 }
0x10a1   : > { %v9049_v18 = vpop.eup %6656  ;;  %v3452_v30 = vmul.f32 1.442695, %v3424_v12 }
0x10a2   : > { %3474 = vadd.xlane.f32.xlu1 %v9045_v19  ;;  %v3454_v47 = vmul.f32 1.442695, %v3425_v52  ;;  %v3458_v32 = vmul.f32 1.442695, %v3427_v17 }
0x10a4   : > { %6664 = vpow2.f32 %v3454_v47  ;;  %v3674_v47 = vpop.permute.xlu0 %3673 }
0x10a5   : > { %v9052_v49 = vpop.eup %6658  ;;  %6666 = vpow2.f32 %v3440_v3 }
0x10a6   : > { %3480 = vadd.xlane.f32.xlu1 %v9049_v18  ;;  %v9057_v43 = vpop.eup %6660  ;;  %6668 = vpow2.f32 %v3438_v24 }
0x10a7   : > { %v9060_v62 = vpop.eup %6662  ;;  %6670 = vpow2.f32 %v3456_v46 }
0x10a8   : > { %6672 = vpow2.f32 %v3452_v30 }
0x10a9   : > { %6674 = vpow2.f32 %v3458_v32 }
0x10aa   : > { %3476 = vadd.xlane.f32.xlu1 %v9052_v49 }
0x10ac   : > { %3677 = vrot.lane.b32.xlu0 %v10072_v20, %s6870_s7 }
0x10ae   : > { %3482 = vadd.xlane.f32.xlu1 %v9057_v43  ;;  %v9063_v2 = vpop.eup %6664 }
0x10af   : > { %v9073_v9 = vpop.eup %6666 }
0x10b0   : > { %v9078_v50 = vpop.eup %6668 }
0x10b1   : > { %v9083_v39 = vpop.eup %6670 }
0x10b2   : > { %3478 = vadd.xlane.f32.xlu1 %v9060_v62  ;;  %v9088_v40 = vpop.eup %6672 }
0x10b3   : > { %v9093_v61 = vpop.eup %6674 }
0x10b6   : > { %3486 = vadd.xlane.f32.xlu1 %v9063_v2 }
0x10c7   : > { %3679 = vrot.lane.b32.xlu1 %v10073_v38, %s6870_s7 }
0x10cb   : > { %3472 = vadd.xlane.f32.xlu0 %v9073_v9  ;;  %3653 = vrot.lane.b32.xlu1 %v10070_v45, %s6868_s14 }
0x10cf   : > { %3470 = vadd.xlane.f32.xlu0 %v9078_v50  ;;  %3657 = vrot.lane.b32.xlu1 %v10071_v41, %s6868_s14 }
0x10d3   : > { %3488 = vadd.xlane.f32.xlu0 %v9083_v39  ;;  %3661 = vrot.lane.b32.xlu1 %v10072_v20, %s6868_s14 }
0x10d7   : > { %3484 = vadd.xlane.f32.xlu0 %v9088_v40  ;;  %3665 = vrot.lane.b32.xlu1 %v10069_v56, %s6868_s14 }
0x10db   : > { %3490 = vadd.xlane.f32.xlu0 %v9093_v61  ;;  %3984 = vrot.lane.b32.xlu1 %v10067_v6, %s6869_s15 }
0x10ee   : > { %v3465_v57 = vpop.xlane.xlu1 %3464 }
0x10f1   : > { %3681 = vrot.lane.b32.xlu0 %v10069_v56, %s6870_s7 }
0x10f2   : > { %v3461_v35 = vpop.xlane.xlu1 %3460 }
0x10f5   : > { %3683 = vrot.lane.b32.xlu0 %v10074_v28, %s6870_s7 }
0x10f6   : > { %v3467_v52 = vpop.xlane.xlu1 %3466 }
0x10f7   : > { %6676 = vrcp.f32 %v3467_v52 }
0x10f8   : > { %6678 = vrcp.f32 %v3461_v35 }
0x10f9   : > { %3655 = vrot.lane.b32.xlu0 %v10067_v6, %s6868_s14  ;;  %6680 = vrcp.f32 %v3465_v57  ;;  %v3710_v57 = vsel %vm542_vm1, %v9016_v58, 0 }
0x10fa   : > { %v3676_v11 = vpop.permute.xlu1 %3675 }
0x10fb   : > { %v3719_v58 = vsel %vm542_vm1, %v3676_v11, 0 }
0x10fd   : > { %3659 = vrot.lane.b32.xlu0 %v10068_v44, %s6868_s14 }
0x1101   : > { %3663 = vrot.lane.b32.xlu0 %v10073_v38, %s6868_s14  ;;  %v6677_v51 = vpop.eup %6676 }
0x1102   : > { %v6679_v13 = vpop.eup %6678  ;;  %v3511_v33 = vmul.f32 %v6677_v51, %v9026_v25 }
0x1103   : > { %v6681_v24 = vpop.eup %6680  ;;  %v3508_v46 = vmul.f32 %v6679_v13, %v9023_v15  ;;  %v3713_v15 = vsel %vm542_vm1, %v9031_v55, 0 }
0x1104   : > { %v3510_v12 = vmul.f32 %v6681_v24, %v9020_v7  ;;  %v3716_v7 = vsel %vm542_vm1, %v3674_v47, 0 }
0x1105   : > { %3667 = vrot.lane.b32.xlu0 %v10074_v28, %s6868_s14  ;;  %s4931_s14 = sshll.u32 %s10238_s12, 3 }
0x1106   : > { %v3525_v32 = vpack.c.bf16 %v3511_v33, %v3510_v12 }
0x1109   : > { %3982 = vrot.lane.b32.xlu0 %v10070_v45, %s6869_s15 }
0x1123   : > { %v3463_v6 = vpop.xlane.xlu0 %3462 }
0x1124   : > { %6682 = vrcp.f32 %v3463_v6 }
0x1127   : > { %v3678_v6 = vpop.permute.xlu0 %3677 }
0x112b   : > { %v3469_v3 = vpop.xlane.xlu1 %3468 }
0x112c   : > { %6684 = vrcp.f32 %v3469_v3 }
0x112e   : > { %v6683_v14 = vpop.eup %6682 }
0x112f   : > { %v3509_v45 = vmul.f32 %v6683_v14, %v9036_v22  ;;  %v3475_v17 = vpop.xlane.xlu1 %3474 }
0x1130   : > { %6686 = vrcp.f32 %v3475_v17 }
0x1131   : > { %v3524_v30 = vpack.c.bf16 %v3509_v45, %v3508_v46 }
0x1133   : > { %5735 = vmatprep.mubr.bf16.mxu1 %v3524_v30  ;;  %v3481_v35 = vpop.xlane.xlu1 %3480 }
0x1134   : > { %5736 = vmatmul.mubr.bf16.vlgmr.msra.gmra.mrb[96].mxu1 %v3525_v32 }
0x1135   : > { %5752 = vmatpush3.bf16.xpose.msra.mxu1 %v3710_v57 }
0x1136   : > { %5912 = vmatprep.subr.msk.bf16.mxu1 %vm542_vm1, %v9031_v55  ;;  %v3722_v55 = vsel %vm542_vm1, %v3678_v6, 0  ;;  %v6685_v33 = vpop.eup %6684 }
0x1137   : > { %v3477_v25 = vpop.xlane.xlu1 %3476 }
0x113a   : > { %v6687_v46 = vpop.eup %6686 }
0x113b   : > { %v3483_v22 = vpop.xlane.xlu1 %3482 }
0x113d   : > { %5754 = vmatpush3.bf16.xpose.msra.mxu1 %v3713_v15  ;;  %v3512_v15 = vmul.f32 %v6685_v33, %v9041_v26 }
0x113e   : > { %5913 = vmatprep.subr.msk.bf16.mxu1 %vm542_vm1, %v3674_v47 }
0x113f   : > { %v3479_v52 = vpop.xlane.xlu1 %3478 }
0x1143   : > { %v3487_v51 = vpop.xlane.xlu1 %3486 }
0x1145   : > { %5756 = vmatpush3.bf16.xpose.msra.mxu1 %v3716_v7 }
0x1146   : > { %5914 = vmatprep.subr.msk.bf16.mxu1 %vm542_vm1, %v3676_v11 }
0x1147   : > { %v3680_v13 = vpop.permute.xlu1 %3679 }
0x1148   : > { %v3725_v11 = vsel %vm542_vm1, %v3680_v13, 0 }
0x114d   : > { %5758 = vmatpush3.bf16.xpose.msra.mxu1 %v3719_v58 }
0x114e   : > { %5915 = vmatprep.subr.msk.bf16.mxu1 %vm542_vm1, %v3678_v6 }
0x1155   : > { %5760 = vmatpush3.bf16.xpose.msra.mxu1 %v3722_v55 }
0x1156   : > { %5916 = vmatprep.subr.msk.bf16.mxu1 %vm542_vm1, %v3680_v13 }
0x1158   : > { %v3473_v24 = vpop.xlane.xlu0 %3472 }
0x1159   : > { %6688 = vrcp.f32 %v3473_v24 }
0x115a   : > { %6690 = vrcp.f32 %v3479_v52 }
0x115b   : > { %6692 = vrcp.f32 %v3477_v25 }
0x115c   : > { %v3471_v47 = vpop.xlane.xlu0 %3470 }
0x115d   : > { %6694 = vrcp.f32 %v3471_v47  ;;  %5762 = vmatpush3.bf16.xpose.msra.mxu1 %v3725_v11 }
0x115e   : > { %6696 = vrcp.f32 %v3483_v22  ;;  %v3515_v22 = vmul.f32 %v6687_v46, %v9045_v19 }
0x115f   : > { %6698 = vrcp.f32 %v3481_v35 }
0x1160   : > { %v3489_v14 = vpop.xlane.xlu0 %3488  ;;  %6700 = vrcp.f32 %v3487_v51 }
0x1163   : > { %v6689_v45 = vpop.eup %6688 }
0x1164   : > { %v3485_v12 = vpop.xlane.xlu0 %3484  ;;  %v6691_v30 = vpop.eup %6690  ;;  %v3514_v32 = vmul.f32 %v6689_v45, %v9073_v9 }
0x1165   : > { %6702 = vrcp.f32 %v3485_v12  ;;  %v6693_v3 = vpop.eup %6692  ;;  %v3517_v7 = vmul.f32 %v6691_v30, %v9060_v62  ;;  %v3654_v62 = vpop.permute.xlu1 %3653 }
0x1166   : > { %v3516_v52 = vmul.f32 %v6693_v3, %v9052_v49  ;;  %v3527_v58 = vpack.c.bf16 %v3515_v22, %v3514_v32 }
0x1167   : > { %v6695_v17 = vpop.eup %6694 }
0x1168   : > { %v3491_v57 = vpop.xlane.xlu0 %3490  ;;  %v3513_v25 = vmul.f32 %v6695_v17, %v9078_v50  ;;  %v6697_v6 = vpop.eup %6696  ;;  %v3528_v55 = vpack.c.bf16 %v3517_v7, %v3516_v52 }
0x1169   : > { %6704 = vrcp.f32 %v3491_v57  ;;  %v6699_v9 = vpop.eup %6698  ;;  %v3519_v13 = vmul.f32 %v6697_v6, %v9057_v43  ;;  %v3658_v12 = vpop.permute.xlu1 %3657 }
0x116a   : > { %v3526_v35 = vpack.c.bf16 %v3513_v25, %v3512_v15  ;;  %6706 = vrcp.f32 %v3489_v14  ;;  %v6701_v50 = vpop.eup %6700  ;;  %v3518_v47 = vmul.f32 %v6699_v9, %v9049_v18 }
0x116b   : > { %v3521_v11 = vmul.f32 %v6701_v50, %v9063_v2 }
0x116c   : > { %v3682_v51 = vpop.permute.xlu0 %3681  ;;  %5739 = vmatprep.mubr.bf16.mxu1 %v3526_v35  ;;  %v3529_v14 = vpack.c.bf16 %v3519_v13, %v3518_v47 }
0x116d   : > { %5740 = vmatmul.mubr.bf16.gmra.mrb[100].mxu1 %v3527_v58  ;;  %5917 = vmatprep.subr.msk.bf16.mxu1 %vm542_vm1, %v3682_v51  ;;  %v3728_v26 = vsel %vm542_vm1, %v3682_v51, 0  ;;  %v3662_v32 = vpop.permute.xlu1 %3661 }
0x116e   : > { %5743 = vmatprep.mubr.bf16.mxu1 %v3528_v55  ;;  %5764 = vmatpush3.bf16.xpose.msra.mxu1 %v3728_v26 }
0x116f   : > { %v6703_v19 = vpop.eup %6702 }
0x1170   : > { %v3684_v49 = vpop.permute.xlu0 %3683  ;;  %v3520_v24 = vmul.f32 %v6703_v19, %v9088_v40 }
0x1171   : > { %5918 = vmatprep.subr.msk.bf16.mxu1 %vm542_vm1, %v3684_v49  ;;  %v3731_v30 = vsel %vm542_vm1, %v3684_v49, 0  ;;  %v3666_v15 = vpop.permute.xlu1 %3665 }
0x1172   : > { %v3530_v45 = vpack.c.bf16 %v3521_v11, %v3520_v24 }
0x1173   : > { %v6705_v33 = vpop.eup %6704 }
0x1174   : > { %v3656_v46 = vpop.permute.xlu0 %3655  ;;  %v6707_v3 = vpop.eup %6706  ;;  %v3523_v43 = vmul.f32 %v6705_v33, %v9093_v61 }
0x1175   : > { %5744 = vmatmul.mubr.bf16.gmra.mrb[104].mxu1 %v3529_v14  ;;  %v3522_v17 = vmul.f32 %v6707_v3, %v9083_v39  ;;  %v3985_v7 = vpop.permute.xlu1 %3984 }
0x1176   : > { %5747 = vmatprep.mubr.bf16.mxu1 %v3530_v45  ;;  %5766 = vmatpush3.bf16.xpose.msra.mxu1 %v3731_v30 }
0x1177   : > { %v3531_v18 = vpack.c.bf16 %v3523_v43, %v3522_v17 }
0x1178   : > { %v3660_v40 = vpop.permute.xlu0 %3659 }
0x117c   : > { %v3664_v57 = vpop.permute.xlu0 %3663 }
0x117d   : > { %5748 = vmatmul.mubr.bf16.gmra.mrb[108].mxu1 %v3531_v18 }
0x117e   : > { %5767 = vmatprep.mubr.msk.bf16.mxu1 %vm542_vm1, %v3654_v62 }
0x1180   : > { %v3668_v2 = vpop.permute.xlu0 %3667 }
0x1184   : > { %v3983_v25 = vpop.permute.xlu0 %3982 }
0x1185   : > { %5768 = vmatmul.mubr.msk.bf16.vlgmr.msra.gmra.mrb[112].mxu1 %vm542_vm1, %v3656_v46  ;;  %5783 = vmatprep.subr.bf16.mxu0 %v3983_v25 }
0x1186   : > { %5839 = vmatprep.subr.bf16.mxu1 %v3983_v25  ;;  %5771 = vmatprep.mubr.msk.bf16.mxu1 %vm542_vm1, %v3658_v12 }
0x1187   : > { %5784 = vmatpush3.bf16.msra.mxu0 %v3983_v25  ;;  %5847 = vmatpush3.bf16.msra.mxu1 %v3983_v25 }
0x1188   : > { %5785 = vmatprep.subr.bf16.mxu0 %v3985_v7  ;;  %5840 = vmatprep.subr.bf16.mxu1 %v3985_v7 }
0x118b   : > { %5786 = vmatpush3.bf16.msra.mxu0 %v3985_v7  ;;  %5848 = vmatpush3.bf16.msra.mxu1 %v3985_v7 }
0x118d   : > { %5772 = vmatmul.mubr.msk.bf16.gmra.mrb[116].mxu1 %vm542_vm1, %v3660_v40 }
0x118e   : > { %5775 = vmatprep.mubr.msk.bf16.mxu1 %vm542_vm1, %v3662_v32 }
0x1195   : > { %5776 = vmatmul.mubr.msk.bf16.gmra.mrb[120].mxu1 %vm542_vm1, %v3664_v57 }
0x1196   : > { %5779 = vmatprep.mubr.msk.bf16.mxu1 %vm542_vm1, %v3666_v15 }
0x119d   : > { %5780 = vmatmul.mubr.msk.bf16.gmra.mrb[124].mxu1 %vm542_vm1, %v3668_v2 }
0x1207   : > { %v9154_v39 = vpop.f32.mrb[96].mxu1 }
0x1208   : > { %v9156_v61 = vpop.f32.mrb[97].mxu1 }
0x1209   : > { %v9158_v22 = vpop.f32.mrb[98].mxu1 }
0x120a   : > { %v6011_v35 = vpack.i.bf16 %v9158_v22, %v9154_v39  ;;  %v9162_v52 = vpop.f32.mrb[99].mxu1  ;;  %v10176_v22 = vld [vmem:[#allocation61_spill] sm:$0xff] }
0x120b   : > { %v6006_v58 = vpack.i.bf16 %v9162_v52, %v9156_v61  ;;  %v10122_v61 = vld [vmem:[#allocation62_spill] sm:$0xff]  ;;  %v10123_v52 = vld [vmem:[#allocation60_spill] sm:$0xff] }
0x1240   : > { %v9166_v6 = vpop.f32.mrb[100].mxu1 }
0x1241   : > { %v9168_v51 = vpop.f32.mrb[101].mxu1 }
0x1242   : > { %v9170_v55 = vpop.f32.mrb[102].mxu1 }
0x1243   : > { %v6071_v9 = vpack.i.bf16 %v9170_v55, %v9166_v6  ;;  %v9174_v26 = vpop.f32.mrb[103].mxu1  ;;  %v10191_v6 = vld [vmem:[#allocation65_spill] sm:$0xff]  ;;  %v10192_v55 = vld [vmem:[#allocation63_spill] sm:$0xff] }
0x1244   : > { %v6066_v50 = vpack.i.bf16 %v9174_v26, %v9168_v51  ;;  %v10143_v26 = vld [vmem:[#allocation44_spill] sm:$0xff] }
0x1248   : > { %v9178_v19 = vpop.f32.mrb[104].mxu1 }
0x1249   : > { %v9180_v62 = vpop.f32.mrb[105].mxu1 }
0x124a   : > { %v9182_v13 = vpop.f32.mrb[106].mxu1 }
0x124b   : > { %v6131_v49 = vpack.i.bf16 %v9182_v13, %v9178_v19  ;;  %v9186_v24 = vpop.f32.mrb[107].mxu1 }
0x124c   : > { %v6126_v47 = vpack.i.bf16 %v9186_v24, %v9180_v62  ;;  %v10167_v24 = vld [vmem:[#allocation33_spill] sm:$0xff] }
0x1250   : > { %v9190_v11 = vpop.f32.mrb[108].mxu1 }
0x1251   : > { %v9192_v14 = vpop.f32.mrb[109].mxu1 }
0x1252   : > { %v9194_v33 = vpop.f32.mrb[110].mxu1 }
0x1253   : > { %v6221_v46 = vpack.i.bf16 %v9194_v33, %v9190_v11  ;;  %v9198_v45 = vpop.f32.mrb[111].mxu1 }
0x1254   : > { %v6216_v12 = vpack.i.bf16 %v9198_v45, %v9192_v14 }
0x1258   : > { %v5769_v30 = vpop.f32.mrb[112].mxu1 }
0x1259   : > { %v3776_v3 = vadd.f32 %v8869_v29, %v5769_v30  ;;  %v3767_v43 = vpop.f32.mrb[113].mxu1 }
0x125a   : > { %v3768_v40 = vadd.f32 %v8877_v23, %v3767_v43  ;;  %v5770_v17 = vpop.f32.mrb[114].mxu1 }
0x125b   : > { %3834 = vmax.xlane.f32.xlu0 %v3776_v3  ;;  %v3770_v32 = vpop.f32.mrb[115].mxu1  ;;  %v3779_v57 = vadd.f32 %v8887_v31, %v5770_v17 }
0x125c   : > { %v9205_v18 = vadd.f32 %v8900_v42, %v3770_v32  ;;  %3830 = vmax.xlane.f32.xlu1 %v3768_v40 }
0x125f   : > { %3832 = vmax.xlane.f32.xlu0 %v9205_v18 }
0x1260   : > { %3836 = vmax.xlane.f32.xlu1 %v3779_v57  ;;  %v5773_v2 = vpop.f32.mrb[116].mxu1 }
0x1261   : > { %v3792_v15 = vadd.f32 %v8909_v53, %v5773_v2  ;;  %v3783_v25 = vpop.f32.mrb[117].mxu1 }
0x1262   : > { %v5774_v29 = vpop.f32.mrb[118].mxu1  ;;  %v3784_v30 = vadd.f32 %v8927_v0, %v3783_v25 }
0x1263   : > { %v9211_v7 = vadd.f32 %v8917_v1, %v5774_v29  ;;  %3842 = vmax.xlane.f32.xlu0 %v3792_v15  ;;  %v3786_v23 = vpop.f32.mrb[119].mxu1 }
0x1264   : > { %v9216_v42 = vadd.f32 %v8933_v63, %v3786_v23 }
0x1265   : > { %3844 = vmax.xlane.f32.xlu1 %v9211_v7 }
0x1267   : > { %3838 = vmax.xlane.f32.xlu0 %v3784_v30 }
0x1268   : > { %v5777_v31 = vpop.f32.mrb[120].mxu1 }
0x1269   : > { %v9219_v43 = vadd.f32 %v8942_v60, %v5777_v31  ;;  %3840 = vmax.xlane.f32.xlu1 %v9216_v42  ;;  %v3799_v53 = vpop.f32.mrb[121].mxu1 }
0x126a   : > { %v5778_v17 = vpop.f32.mrb[122].mxu1  ;;  %v9227_v32 = vadd.f32 %v8960_v37, %v3799_v53 }
0x126b   : > { %v9223_v1 = vadd.f32 %v8950_v34, %v5778_v17  ;;  %3850 = vmax.xlane.f32.xlu0 %v9219_v43  ;;  %v3802_v0 = vpop.f32.mrb[123].mxu1 }
0x126c   : > { %v9231_v63 = vadd.f32 %v8968_v36, %v3802_v0 }
0x126d   : > { %3852 = vmax.xlane.f32.xlu1 %v9223_v1 }
0x126f   : > { %3846 = vmax.xlane.f32.xlu0 %v9227_v32 }
0x1270   : > { %v5781_v60 = vpop.f32.mrb[124].mxu1 }
0x1271   : > { %v9235_v2 = vadd.f32 %v8978_v21, %v5781_v60  ;;  %3848 = vmax.xlane.f32.xlu1 %v9231_v63  ;;  %v3815_v34 = vpop.f32.mrb[125].mxu1 }
0x1272   : > { %v5782_v25 = vpop.f32.mrb[126].mxu1  ;;  %v9240_v37 = vadd.f32 %v8996_v16, %v3815_v34 }
0x1273   : > { %3858 = vmax.xlane.f32.xlu0 %v9235_v2  ;;  %v3818_v29 = vpop.f32.mrb[127].mxu1  ;;  %v9252_v21 = vadd.f32 %v8986_v54, %v5782_v25 }
0x1274   : > { %v9256_v16 = vadd.f32 %v9004_v59, %v3818_v29 }
0x1277   : > { %3854 = vmax.xlane.f32.xlu0 %v9240_v37 }
0x1282   : > { %3990 = vrot.lane.b32.xlu1 %v10072_v20, %s6869_s15 }
0x128d   : > { %3986 = vrot.lane.b32.xlu0 %v10071_v41, %s6869_s15 }
0x1291   : > { %3988 = vrot.lane.b32.xlu0 %v10068_v44, %s6869_s15 }
0x1295   : > { %3994 = vrot.lane.b32.xlu0 %v10069_v56, %s6869_s15 }
0x12a6   : > { %3860 = vmax.xlane.f32.xlu1 %v9252_v21 }
0x12aa   : > { %3856 = vmax.xlane.f32.xlu1 %v9256_v16 }
0x12bb   : > { %3992 = vrot.lane.b32.xlu1 %v10073_v38, %s6869_s15 }
0x12e8   : > { %v3835_v41 = vpop.xlane.xlu0 %3834 }
0x12e9   : > { %v3864_v20 = vsub.f32 %v3776_v3, %v3835_v41  ;;  %v3831_v36 = vpop.xlane.xlu1 %3830 }
0x12ea   : > { %v3862_v44 = vsub.f32 %v3768_v40, %v3831_v36 }
0x12eb   : > { %v3882_v23 = vmul.f32 1.442695, %v3864_v20 }
0x12ec   : > { %v3833_v31 = vpop.xlane.xlu0 %3832  ;;  %v3878_v56 = vmul.f32 1.442695, %v3862_v44 }
0x12ed   : > { %6708 = vpow2.f32 %v3882_v23  ;;  %v3837_v54 = vpop.xlane.xlu1 %3836  ;;  %v3863_v17 = vsub.f32 %v9205_v18, %v3833_v31 }
0x12ee   : > { %v3865_v53 = vsub.f32 %v3779_v57, %v3837_v54  ;;  %6710 = vpow2.f32 %v3878_v56 }
0x12ef   : > { %v3880_v29 = vmul.f32 1.442695, %v3863_v17 }
0x12f0   : > { %v3884_v0 = vmul.f32 1.442695, %v3865_v53  ;;  %v3843_v59 = vpop.xlane.xlu0 %3842 }
0x12f1   : > { %v3868_v60 = vsub.f32 %v3792_v15, %v3843_v59 }
0x12f2   : > { %v3845_v34 = vpop.xlane.xlu1 %3844  ;;  %6712 = vpow2.f32 %v3884_v0 }
0x12f3   : > { %v3890_v25 = vmul.f32 1.442695, %v3868_v60  ;;  %v3869_v38 = vsub.f32 %v9211_v7, %v3845_v34 }
0x12f4   : > { %v3839_v3 = vpop.xlane.xlu0 %3838 }
0x12f5   : > { %6714 = vpow2.f32 %v3890_v25  ;;  %v3866_v40 = vsub.f32 %v3784_v30, %v3839_v3  ;;  %v3892_v18 = vmul.f32 1.442695, %v3869_v38 }
0x12f6   : > { %v3841_v41 = vpop.xlane.xlu1 %3840  ;;  %6716 = vpow2.f32 %v3880_v29 }
0x12f7   : > { %v9263_v20 = vpop.eup %6708  ;;  %v3886_v36 = vmul.f32 1.442695, %v3866_v40  ;;  %v3867_v57 = vsub.f32 %v9216_v42, %v3841_v41 }
0x12f8   : > { %v3851_v44 = vpop.xlane.xlu0 %3850  ;;  %3914 = vadd.xlane.f32.xlu1 %v9263_v20  ;;  %v9268_v7 = vpop.eup %6710 }
0x12f9   : > { %6718 = vpow2.f32 %v3886_v36  ;;  %v3888_v15 = vmul.f32 1.442695, %v3867_v57  ;;  %v3872_v23 = vsub.f32 %v9219_v43, %v3851_v44 }
0x12fa   : > { %v3853_v31 = vpop.xlane.xlu1 %3852  ;;  %6720 = vpow2.f32 %v3892_v18 }
0x12fb   : > { %6722 = vpow2.f32 %v3888_v15  ;;  %v3898_v56 = vmul.f32 1.442695, %v3872_v23  ;;  %v3873_v43 = vsub.f32 %v9223_v1, %v3853_v31 }
0x12fc   : > { %v3847_v30 = vpop.xlane.xlu0 %3846  ;;  %3910 = vadd.xlane.f32.xlu1 %v9268_v7  ;;  %v9272_v54 = vpop.eup %6712 }
0x12fd   : > { %v3870_v42 = vsub.f32 %v9227_v32, %v3847_v30  ;;  %6724 = vpow2.f32 %v3898_v56  ;;  %v3900_v1 = vmul.f32 1.442695, %v3873_v43  ;;  %v10107_v56 = vpack.i.bf16 %v7650_v27, %v7646_v10 }
0x12fe   : > { %v3849_v53 = vpop.xlane.xlu1 %3848 }
0x12ff   : > { %v9274_v17 = vpop.eup %6714  ;;  %v3871_v0 = vsub.f32 %v9231_v63, %v3849_v53  ;;  %v3894_v60 = vmul.f32 1.442695, %v3870_v42  ;;  %v10108_v42 = vpack.i.bf16 %v8002_v4, %v7996_v48  ;;  %v10113_v4 = vld [vmem:[#allocation82_spill] sm:$0xff] }
0x1300   : > { %v3859_v59 = vpop.xlane.xlu0 %3858  ;;  %3922 = vadd.xlane.f32.xlu0 %v9274_v17  ;;  %3916 = vadd.xlane.f32.xlu1 %v9272_v54  ;;  %v9281_v32 = vpop.eup %6716 }
0x1301   : > { %v3896_v34 = vmul.f32 1.442695, %v3871_v0  ;;  %v3876_v25 = vsub.f32 %v9235_v2, %v3859_v59  ;;  %v10109_v0 = vpack.i.bf16 %v8232_v8, %v8226_v5  ;;  %v10116_v8 = vld [vmem:[#allocation34_spill] sm:$0xff] }
0x1302   : > { %v3991_v44 = vpop.permute.xlu1 %3990 }
0x1303   : > { %v9283_v29 = vpop.eup %6718  ;;  %6726 = vpow2.f32 %v3896_v34  ;;  %v3906_v38 = vmul.f32 1.442695, %v3876_v25 }
0x1304   : > { %3918 = vadd.xlane.f32.xlu0 %v9283_v29  ;;  %v3855_v63 = vpop.xlane.xlu0 %3854  ;;  %3912 = vadd.xlane.f32.xlu1 %v9281_v32  ;;  %6728 = vpow2.f32 %v3894_v60  ;;  %v9288_v40 = vpop.eup %6720  ;;  %v10111_v60 = vld [vmem:[#allocation8_spill] sm:$0xff] }
0x1305   : > { %v3874_v3 = vsub.f32 %v9240_v37, %v3855_v63  ;;  %v9290_v41 = vpop.eup %6722  ;;  %6730 = vpow2.f32 %v3906_v38  ;;  %v10114_v38 = vld [vmem:[#allocation80_spill] sm:$0xff] }
0x1306   : > { %6732 = vpow2.f32 %v3900_v1  ;;  %v10115_v63 = vpack.i.bf16 %v10113_v4, %v10114_v38  ;;  %v10140_v38 = vld [vmem:[#allocation66_spill] sm:$0xff] }
0x1307   : > { %v3902_v2 = vmul.f32 1.442695, %v3874_v3  ;;  %v9294_v57 = vpop.eup %6724  ;;  %v10119_v3 = vld [vmem:[#allocation48_spill] sm:$0xff] }
0x1308   : > { %v3987_v36 = vpop.permute.xlu0 %3986  ;;  %3924 = vadd.xlane.f32.xlu0 %v9288_v40  ;;  %3920 = vadd.xlane.f32.xlu1 %v9290_v41 }
0x1309   : > { %5787 = vmatprep.subr.bf16.mxu0 %v3987_v36  ;;  %5841 = vmatprep.subr.bf16.mxu1 %v3987_v36  ;;  %6734 = vpow2.f32 %v3902_v2  ;;  %v10120_v2 = vld [vmem:[#allocation46_spill] sm:$0xff] }
0x130a   : > { %5788 = vmatpush3.bf16.msra.mxu0 %v3987_v36  ;;  %5849 = vmatpush3.bf16.msra.mxu1 %v3987_v36  ;;  %v10121_v36 = vpack.i.bf16 %v10119_v3, %v10120_v2  ;;  %v10149_v3 = vld [vmem:[#allocation58_spill] sm:$0xff]  ;;  %v10150_v2 = vld [vmem:[#allocation57_spill] sm:$0xff] }
0x130c   : > { %v3989_v37 = vpop.permute.xlu0 %3988  ;;  %3930 = vadd.xlane.f32.xlu0 %v9294_v57 }
0x130d   : > { %v9297_v18 = vpop.eup %6726  ;;  %5789 = vmatprep.subr.bf16.mxu0 %v3989_v37  ;;  %5842 = vmatprep.subr.bf16.mxu1 %v3989_v37 }
0x130e   : > { %5790 = vmatpush3.bf16.msra.mxu0 %v3989_v37  ;;  %5850 = vmatpush3.bf16.msra.mxu1 %v3989_v37  ;;  %v9299_v15 = vpop.eup %6728 }
0x130f   : > { %3928 = vadd.xlane.f32.xlu1 %v9297_v18  ;;  %5791 = vmatprep.subr.bf16.mxu0 %v3991_v44  ;;  %v9303_v23 = vpop.eup %6730 }
0x1310   : > { %5843 = vmatprep.subr.bf16.mxu1 %v3991_v44  ;;  %3926 = vadd.xlane.f32.xlu0 %v9299_v15  ;;  %v9305_v31 = vpop.eup %6732  ;;  %v3995_v5 = vpop.permute.xlu0 %3994 }
0x1312   : > { %5792 = vmatpush3.bf16.msra.mxu0 %v3991_v44  ;;  %5851 = vmatpush3.bf16.msra.mxu1 %v3991_v44  ;;  %v10125_v44 = vld [vmem:[#allocation12_spill] sm:$0xff] }
0x1313   : > { %3938 = vadd.xlane.f32.xlu1 %v9303_v23  ;;  %v9309_v30 = vpop.eup %6734 }
0x1314   : > { %3932 = vadd.xlane.f32.xlu0 %v9305_v31 }
0x1317   : > { %3934 = vadd.xlane.f32.xlu1 %v9309_v30 }
0x1328   : > { %3996 = vrot.lane.b32.xlu1 %v10074_v28, %s6869_s15  ;;  %v10110_v28 = vld [vmem:[#allocation5_spill] sm:$0xff] }
0x1329   : > { %v10112_v34 = vpack.i.bf16 %v10110_v28, %v10111_v60  ;;  %v10132_v28 = vld [vmem:[#allocation36_spill] sm:$0xff] }
0x132c   : > { %5962 = vrot.lane.b32.xlu1 %v10107_v56, %s6878_s27  ;;  %v10126_v56 = vld [vmem:[#allocation9_spill] sm:$0xff] }
0x1330   : > { %5967 = vrot.lane.b32.xlu1 %v10108_v42, %s6877_s24  ;;  %v10127_v42 = vpack.i.bf16 %v10125_v44, %v10126_v56  ;;  %v10155_v44 = vld [vmem:[#allocation11_spill] sm:$0xff]  ;;  %v10156_v56 = vld [vmem:[#allocation6_spill] sm:$0xff] }
0x1333   : > { %v3861_v53 = vpop.xlane.xlu1 %3860 }
0x1334   : > { %5977 = vrot.lane.b32.xlu1 %v10109_v0, %s6875_s19  ;;  %v3877_v59 = vsub.f32 %v9252_v21, %v3861_v53  ;;  %v10117_v21 = vld [vmem:[#allocation32_spill] sm:$0xff]  ;;  %v10128_v53 = vld [vmem:[#allocation86_spill] sm:$0xff] }
0x1335   : > { %v10129_v0 = vld [vmem:[#allocation84_spill] sm:$0xff] }
0x1336   : > { %v3908_v48 = vmul.f32 1.442695, %v3877_v59  ;;  %v10131_v59 = vld [vmem:[#allocation38_spill] sm:$0xff] }
0x1337   : > { %v3857_v43 = vpop.xlane.xlu1 %3856  ;;  %v10133_v60 = vpack.i.bf16 %v10131_v59, %v10132_v28  ;;  %v10161_v59 = vld [vmem:[#allocation42_spill] sm:$0xff]  ;;  %v10162_v28 = vld [vmem:[#allocation40_spill] sm:$0xff] }
0x1338   : > { %5987 = vrot.lane.b32.xlu1 %v10112_v34, %s6876_s22  ;;  %v3875_v10 = vsub.f32 %v9256_v16, %v3857_v43  ;;  %v10118_v16 = vpack.i.bf16 %v10116_v8, %v10117_v21  ;;  %v10130_v43 = vpack.i.bf16 %v10128_v53, %v10129_v0  ;;  %v10134_v34 = vld [vmem:[#allocation52_spill] sm:$0xff]  ;;  %v10146_v8 = vld [vmem:[#allocation74_spill] sm:$0xff]  ;;  %v10158_v53 = vld [vmem:[#allocation81_spill] sm:$0xff] }
0x1339   : > { %v10147_v21 = vld [vmem:[#allocation72_spill] sm:$0xff]  ;;  %v10159_v0 = vld [vmem:[#allocation79_spill] sm:$0xff] }
0x133a   : > { %v3904_v27 = vmul.f32 1.442695, %v3875_v10  ;;  %v10135_v10 = vld [vmem:[#allocation50_spill] sm:$0xff] }
0x133b   : > { %v3993_v25 = vpop.permute.xlu1 %3992 }
0x133c   : > { %6736 = vpow2.f32 %v3904_v27  ;;  %5997 = vrot.lane.b32.xlu1 %v10115_v63, %s6874_s21  ;;  %5793 = vmatprep.subr.bf16.mxu0 %v3993_v25  ;;  %v10136_v27 = vpack.i.bf16 %v10134_v34, %v10135_v10  ;;  %v10141_v63 = vld [vmem:[#allocation64_spill] sm:$0xff]  ;;  %v10165_v10 = vld [vmem:[#allocation54_spill] sm:$0xff] }
0x133d   : > { %5844 = vmatprep.subr.bf16.mxu1 %v3993_v25  ;;  %5794 = vmatpush3.bf16.msra.mxu0 %v3993_v25  ;;  %6738 = vpow2.f32 %v3908_v48  ;;  %v10138_v48 = vld [vmem:[#allocation29_spill] sm:$0xff]  ;;  %v10142_v51 = vpack.i.bf16 %v10140_v38, %v10141_v63  ;;  %v10164_v34 = vld [vmem:[#allocation56_spill] sm:$0xff]  ;;  %v10173_v38 = vld [vmem:[#allocation47_spill] sm:$0xff] }
0x133e   : > { %5852 = vmatpush3.bf16.msra.mxu1 %v3993_v25  ;;  %5795 = vmatprep.subr.bf16.mxu0 %v3995_v5  ;;  %v10137_v25 = vld [vmem:[#allocation30_spill] sm:$0xff]  ;;  %v10166_v62 = vpack.i.bf16 %v10164_v34, %v10165_v10  ;;  %v10174_v63 = vld [vmem:[#allocation45_spill] sm:$0xff] }
0x133f   : > { %5845 = vmatprep.subr.bf16.mxu1 %v3995_v5  ;;  %v10139_v4 = vpack.i.bf16 %v10137_v25, %v10138_v48  ;;  %v10170_v25 = vld [vmem:[#allocation70_spill] sm:$0xff]  ;;  %v10171_v48 = vld [vmem:[#allocation68_spill] sm:$0xff]  ;;  %v10175_v39 = vpack.i.bf16 %v10173_v38, %v10174_v63 }
0x1340   : > { %6007 = vrot.lane.b32.xlu1 %v6006_v58, %s6872_s23  ;;  %v10124_v58 = vpack.i.bf16 %v10122_v61, %v10123_v52  ;;  %v10152_v61 = vld [vmem:[#allocation90_spill] sm:$0xff]  ;;  %v10153_v52 = vld [vmem:[#allocation88_spill] sm:$0xff] }
0x1341   : > { %5796 = vmatpush3.bf16.msra.mxu0 %v3995_v5 }
0x1342   : > { %5853 = vmatpush3.bf16.msra.mxu1 %v3995_v5 }
0x1344   : > { %6017 = vrot.lane.b32.xlu1 %v10118_v16, %s6878_s27  ;;  %v10148_v16 = vpack.i.bf16 %v10146_v8, %v10147_v21  ;;  %v10182_v21 = vld [vmem:[#allocation85_spill] sm:$0xff] }
0x1346   : > { %v9344_v1 = vpop.eup %6736 }
0x1347   : > { %3936 = vadd.xlane.f32.xlu0 %v9344_v1  ;;  %v9351_v37 = vpop.eup %6738 }
0x1348   : > { %6027 = vrot.lane.b32.xlu1 %v10121_v36, %s6877_s24  ;;  %v10151_v36 = vpack.i.bf16 %v10149_v3, %v10150_v2 }
0x134b   : > { %3940 = vadd.xlane.f32.xlu0 %v9351_v37 }
0x134c   : > { %6037 = vrot.lane.b32.xlu1 %v10124_v58, %s6875_s19  ;;  %v10154_v58 = vpack.i.bf16 %v10152_v61, %v10153_v52 }
0x1350   : > { %6047 = vrot.lane.b32.xlu1 %v10127_v42, %s6876_s22  ;;  %v10157_v42 = vpack.i.bf16 %v10155_v44, %v10156_v56  ;;  %v10186_v44 = vld [vmem:[#allocation35_spill] sm:$0xff] }
0x1354   : > { %6057 = vrot.lane.b32.xlu1 %v10130_v43, %s6874_s21  ;;  %v10160_v43 = vpack.i.bf16 %v10158_v53, %v10159_v0  ;;  %v10188_v0 = vld [vmem:[#allocation51_spill] sm:$0xff] }
0x1358   : > { %6067 = vrot.lane.b32.xlu1 %v6066_v50, %s6872_s23  ;;  %v10144_v50 = vld [vmem:[#allocation43_spill] sm:$0xff] }
0x1359   : > { %v10145_v5 = vpack.i.bf16 %v10143_v26, %v10144_v50  ;;  %v10179_v26 = vld [vmem:[#allocation10_spill] sm:$0xff]  ;;  %v10180_v50 = vld [vmem:[#allocation7_spill] sm:$0xff] }
0x135c   : > { %6077 = vrot.lane.b32.xlu1 %v10133_v60, %s6878_s27  ;;  %v10163_v60 = vpack.i.bf16 %v10161_v59, %v10162_v28 }
0x1360   : > { %6087 = vrot.lane.b32.xlu1 %v10136_v27, %s6877_s24 }
0x1361   : > { %5957 = vrot.lane.b32.xlu0 %v10139_v4, %s6878_s27  ;;  %v10172_v4 = vpack.i.bf16 %v10170_v25, %v10171_v48 }
0x1364   : > { %6097 = vrot.lane.b32.xlu1 %v10142_v51, %s6875_s19 }
0x1365   : > { %5972 = vrot.lane.b32.xlu0 %v10145_v5, %s6877_s24  ;;  %v10181_v5 = vpack.i.bf16 %v10179_v26, %v10180_v50 }
0x1368   : > { %6107 = vrot.lane.b32.xlu1 %v10148_v16, %s6876_s22  ;;  %v10183_v16 = vld [vmem:[#allocation83_spill] sm:$0xff] }
0x1369   : > { %5982 = vrot.lane.b32.xlu0 %v10151_v36, %s6875_s19  ;;  %v10184_v3 = vpack.i.bf16 %v10182_v21, %v10183_v16 }
0x136c   : > { %6117 = vrot.lane.b32.xlu1 %v10154_v58, %s6874_s21  ;;  %v10185_v58 = vld [vmem:[#allocation37_spill] sm:$0xff] }
0x136d   : > { %5992 = vrot.lane.b32.xlu0 %v10157_v42, %s6876_s22  ;;  %v10187_v56 = vpack.i.bf16 %v10185_v58, %v10186_v44 }
0x1370   : > { %6127 = vrot.lane.b32.xlu1 %v6126_v47, %s6872_s23  ;;  %v10168_v47 = vld [vmem:[#allocation31_spill] sm:$0xff] }
0x1371   : > { %6002 = vrot.lane.b32.xlu0 %v10160_v43, %s6874_s21  ;;  %v10169_v27 = vpack.i.bf16 %v10167_v24, %v10168_v47  ;;  %v10189_v43 = vld [vmem:[#allocation49_spill] sm:$0xff]  ;;  %v10195_v47 = vld [vmem:[#allocation71_spill] sm:$0xff] }
0x1372   : > { %v10190_v59 = vpack.i.bf16 %v10188_v0, %v10189_v43  ;;  %v10194_v24 = vld [vmem:[#allocation73_spill] sm:$0xff]  ;;  %v10206_v43 = vld [vmem:[#allocation15_spill] sm:$0xff] }
0x1374   : > { %6137 = vrot.lane.b32.xlu1 %v10163_v60, %s6878_s27 }
0x1375   : > { %6012 = vrot.lane.b32.xlu0 %v6011_v35, %s6872_s23  ;;  %v10177_v35 = vld [vmem:[#allocation59_spill] sm:$0xff] }
0x1376   : > { %v10178_v51 = vpack.i.bf16 %v10176_v22, %v10177_v35  ;;  %v10198_v22 = vld [vmem:[#allocation87_spill] sm:$0xff] }
0x1378   : > { %6147 = vrot.lane.b32.xlu1 %v10166_v62, %s6877_s24 }
0x1379   : > { %6022 = vrot.lane.b32.xlu0 %v10169_v27, %s6878_s27  ;;  %v10196_v27 = vpack.i.bf16 %v10194_v24, %v10195_v47 }
0x137c   : > { %6157 = vrot.lane.b32.xlu1 %v10172_v4, %s6875_s19 }
0x137d   : > { %6032 = vrot.lane.b32.xlu0 %v10175_v39, %s6877_s24  ;;  %v10197_v39 = vld [vmem:[#allocation89_spill] sm:$0xff] }
0x137e   : > { %v10199_v35 = vpack.i.bf16 %v10197_v39, %v10198_v22 }
0x1381   : > { %6042 = vrot.lane.b32.xlu0 %v10178_v51, %s6875_s19 }
0x1385   : > { %6052 = vrot.lane.b32.xlu0 %v10181_v5, %s6876_s22  ;;  %v3915_v8 = vpop.xlane.xlu1 %3914 }
0x1389   : > { %6062 = vrot.lane.b32.xlu0 %v10184_v3, %s6874_s21  ;;  %v3911_v2 = vpop.xlane.xlu1 %3910 }
0x138a   : > { %6740 = vrcp.f32 %v3911_v2  ;;  %v10200_v2 = vld [vmem:[#allocation41_spill] sm:$0xff] }
0x138d   : > { %v3923_v36 = vpop.xlane.xlu0 %3922  ;;  %6072 = vrot.lane.b32.xlu0 %v6071_v9, %s6872_s23  ;;  %v3917_v61 = vpop.xlane.xlu1 %3916  ;;  %v10193_v9 = vpack.i.bf16 %v10191_v6, %v10192_v55 }
0x1391   : > { %v3919_v52 = vpop.xlane.xlu0 %3918  ;;  %6082 = vrot.lane.b32.xlu0 %v10187_v56, %s6878_s27  ;;  %v3913_v42 = vpop.xlane.xlu1 %3912  ;;  %v10203_v56 = vld [vmem:[#allocation55_spill] sm:$0xff] }
0x1392   : > { %6742 = vrcp.f32 %v3913_v42  ;;  %v10204_v42 = vld [vmem:[#allocation53_spill] sm:$0xff] }
0x1393   : > { %6744 = vrcp.f32 %v3917_v61 }
0x1394   : > { %v6741_v34 = vpop.eup %6740 }
0x1395   : > { %v3925_v53 = vpop.xlane.xlu0 %3924  ;;  %6092 = vrot.lane.b32.xlu0 %v10190_v59, %s6877_s24  ;;  %v3921_v28 = vpop.xlane.xlu1 %3920  ;;  %v3958_v25 = vmul.f32 %v6741_v34, %v9268_v7  ;;  %v10207_v59 = vld [vmem:[#allocation14_spill] sm:$0xff]  ;;  %v10208_v34 = vld [vmem:[#allocation69_spill] sm:$0xff] }
0x1396   : > { %6746 = vrcp.f32 %v3921_v28 }
0x1397   : > { %6748 = vrcp.f32 %v3915_v8 }
0x1398   : > { %6750 = vrcp.f32 %v3919_v52 }
0x1399   : > { %6102 = vrot.lane.b32.xlu0 %v10193_v9, %s6875_s19  ;;  %v3931_v60 = vpop.xlane.xlu0 %3930  ;;  %6752 = vrcp.f32 %v3925_v53  ;;  %v10205_v53 = vpack.i.bf16 %v10203_v56, %v10204_v42 }
0x139c   : > { %v3929_v10 = vpop.xlane.xlu1 %3928  ;;  %v6743_v62 = vpop.eup %6742 }
0x139d   : > { %6112 = vrot.lane.b32.xlu0 %v10196_v27, %s6876_s22  ;;  %v3959_v48 = vmul.f32 %v6743_v62, %v9281_v32  ;;  %v3927_v4 = vpop.xlane.xlu0 %3926  ;;  %v6745_v51 = vpop.eup %6744 }
0x139e   : > { %6754 = vrcp.f32 %v3927_v4  ;;  %v3961_v5 = vmul.f32 %v6745_v51, %v9272_v54 }
0x139f   : > { %v3974_v63 = vpack.c.bf16 %v3959_v48, %v3958_v25  ;;  %6756 = vrcp.f32 %v3923_v36  ;;  %v10201_v36 = vld [vmem:[#allocation39_spill] sm:$0xff] }
0x13a0   : > { %v9472_v38 = vpop.xlane.xlu1 %3938  ;;  %v6747_v50 = vpop.eup %6746  ;;  %6758 = vrcp.f32 %v3929_v10  ;;  %v10202_v61 = vpack.i.bf16 %v10200_v2, %v10201_v36  ;;  %v10209_v10 = vld [vmem:[#allocation67_spill] sm:$0xff] }
0x13a1   : > { %6122 = vrot.lane.b32.xlu0 %v10199_v35, %s6874_s21  ;;  %5799 = vmatprep.mubr.bf16.mxu0 %v3974_v63  ;;  %v6749_v7 = vpop.eup %6748  ;;  %v3933_v8 = vpop.xlane.xlu0 %3932  ;;  %v3963_v16 = vmul.f32 %v6747_v50, %v9290_v41  ;;  %v10210_v62 = vpack.i.bf16 %v10208_v34, %v10209_v10 }
0x13a2   : > { %v6751_v32 = vpop.eup %6750  ;;  %v3960_v3 = vmul.f32 %v6749_v7, %v9263_v20  ;;  %6760 = vrcp.f32 %v3933_v8 }
0x13a3   : > { %v3962_v19 = vmul.f32 %v6751_v32, %v9283_v29  ;;  %6762 = vrcp.f32 %v3931_v60 }
0x13a4   : > { %v3935_v26 = vpop.xlane.xlu1 %3934  ;;  %v3975_v13 = vpack.c.bf16 %v3961_v5, %v3960_v3 }
0x13a5   : > { %6132 = vrot.lane.b32.xlu0 %v6131_v49, %s6872_s23  ;;  %v6753_v49 = vpop.eup %6752  ;;  %v3976_v52 = vpack.c.bf16 %v3963_v16, %v3962_v19  ;;  %6764 = vrcp.f32 %v3935_v26 }
0x13a6   : > { %v3965_v6 = vmul.f32 %v6753_v49, %v9288_v40  ;;  %v10211_v49 = vld [vmem:[#allocation16_spill] sm:$0xff] }
0x13a8   : > { %v3997_v21 = vpop.permute.xlu1 %3996  ;;  %v6755_v41 = vpop.eup %6754 }
0x13a9   : > { %5797 = vmatprep.subr.bf16.mxu0 %v3997_v21  ;;  %5846 = vmatprep.subr.bf16.mxu1 %v3997_v21  ;;  %v6757_v44 = vpop.eup %6756  ;;  %v3966_v9 = vmul.f32 %v6755_v41, %v9299_v15 }
0x13aa   : > { %6142 = vrot.lane.b32.xlu0 %v10202_v61, %s6878_s27  ;;  %5798 = vmatpush3.bf16.msra.mxu0 %v3997_v21  ;;  %v6759_v0 = vpop.eup %6758  ;;  %v3964_v60 = vmul.f32 %v6757_v44, %v9274_v17 }
0x13ab   : > { %5854 = vmatpush3.bf16.msra.mxu1 %v3997_v21  ;;  %v3967_v24 = vmul.f32 %v6759_v0, %v9297_v18 }
0x13ac   : > { %v5963_v54 = vpop.permute.xlu1 %5962  ;;  %v3977_v47 = vpack.c.bf16 %v3965_v6, %v3964_v60  ;;  %v6761_v27 = vpop.eup %6760 }
0x13ad   : > { %v5965_v58 = vunpack.i.h.bf16 %v5963_v54  ;;  %v5964_v20 = vunpack.i.l.bf16 %v5963_v54  ;;  %5800 = vmatmul.mubr.bf16.vlgmr.msra.gmra.mrb[144].mxu0 %v3975_v13  ;;  %v3978_v48 = vpack.c.bf16 %v3967_v24, %v3966_v9  ;;  %v6763_v4 = vpop.eup %6762  ;;  %v3969_v40 = vmul.f32 %v6761_v27, %v9305_v31 }
0x13ae   : > { %6152 = vrot.lane.b32.xlu0 %v10205_v53, %s6877_s24  ;;  %5803 = vmatprep.mubr.bf16.mxu0 %v3976_v52  ;;  %v3968_v15 = vmul.f32 %v6763_v4, %v9294_v57  ;;  %v10212_v52 = vld [vmem:[#allocation13_spill] sm:$0xff] }
0x13af   : > { %v9496_v29 = vsel %vm542_vm1, %v10206_v43, %v5965_v58  ;;  %v9500_v28 = vsel %vm542_vm1, %v10207_v59, %v5964_v20  ;;  %v6765_v5 = vpop.eup %6764 }
0x13b0   : > { %v5968_v55 = vpop.permute.xlu1 %5967  ;;  %v3979_v17 = vpack.c.bf16 %v3969_v40, %v3968_v15  ;;  %v3970_v61 = vmul.f32 %v6765_v5, %v9309_v30 }
0x13b1   : > { %v5970_v3 = vunpack.i.h.bf16 %v5968_v55  ;;  %v5969_v2 = vunpack.i.l.bf16 %v5968_v55 }
0x13b2   : > { %6162 = vrot.lane.b32.xlu0 %v10210_v62, %s6875_s19 }
0x13b4   : > { %v5978_v25 = vpop.permute.xlu1 %5977 }
0x13b5   : > { %5804 = vmatmul.mubr.bf16.gmra.mrb[148].mxu0 %v3977_v47  ;;  %v5980_v36 = vunpack.i.h.bf16 %v5978_v25  ;;  %v5979_v19 = vunpack.i.l.bf16 %v5978_v25 }
0x13b6   : > { %5807 = vmatprep.mubr.bf16.mxu0 %v3978_v48 }
0x13b8   : > { %v5988_v63 = vpop.permute.xlu1 %5987 }
0x13b9   : > { %v5990_v13 = vunpack.i.h.bf16 %v5988_v63  ;;  %v5989_v20 = vunpack.i.l.bf16 %v5988_v63 }
0x13bc   : > { %v5998_v39 = vpop.permute.xlu1 %5997 }
0x13bd   : > { %5808 = vmatmul.mubr.bf16.gmra.mrb[152].mxu0 %v3979_v17  ;;  %v6000_v0 = vunpack.i.h.bf16 %v5998_v39  ;;  %v5999_v43 = vunpack.i.l.bf16 %v5998_v39 }
0x13c0   : > { %v9512_v22 = vpop.permute.xlu1 %6007 }
0x13c4   : > { %v9514_v35 = vpop.permute.xlu1 %6017 }
0x13c5   : > { %v6019_v11 = vunpack.i.l.bf16 %v9514_v35 }
0x13c8   : > { %v9516_v18 = vpop.permute.xlu1 %6027 }
0x13c9   : > { %v6030_v33 = vunpack.i.h.bf16 %v9516_v18 }
0x13cc   : > { %v9518_v51 = vpop.permute.xlu1 %6037 }
0x13cd   : > { %v6040_v14 = vunpack.i.h.bf16 %v9518_v51  ;;  %v6039_v45 = vunpack.i.l.bf16 %v9518_v51 }
0x13d0   : > { %v9520_v50 = vpop.permute.xlu1 %6047 }
0x13d4   : > { %v9522_v7 = vpop.permute.xlu1 %6057  ;;  %v3937_v31 = vpop.xlane.xlu0 %3936 }
0x13d5   : > { %6766 = vrcp.f32 %v3937_v31 }
0x13d6   : > { %6768 = vrcp.f32 %v9472_v38 }
0x13d8   : > { %v9525_v57 = vpop.permute.xlu1 %6067  ;;  %v3941_v32 = vpop.xlane.xlu0 %3940 }
0x13d9   : > { %6770 = vrcp.f32 %v3941_v32  ;;  %v6070_v51 = vunpack.i.h.bf16 %v9525_v57 }
0x13dc   : > { %v9527_v8 = vpop.permute.xlu1 %6077  ;;  %v5958_v21 = vpop.permute.xlu0 %5957 }
0x13dd   : > { %v5960_v16 = vunpack.i.h.bf16 %v5958_v21  ;;  %v5959_v26 = vunpack.i.l.bf16 %v5958_v21 }
0x13df   : > { %v6767_v38 = vpop.eup %6766  ;;  %v4552_v54 = vsel %vm542_vm1, %v10211_v49, %v5960_v16  ;;  %v4551_v41 = vsel %vm542_vm1, %v10212_v52, %v5959_v26  ;;  %v10213_v52 = vld [vmem:[#allocation28_spill] sm:$0xff] }
0x13e0   : > { %v6769_v58 = vpop.eup %6768  ;;  %v4568_v44 = vsel %vm4567_vm2, %v4551_v41, %v5969_v2  ;;  %v4569_v56 = vsel %vm4567_vm2, %v4552_v54, %v5970_v3  ;;  %v9536_v42 = vpop.permute.xlu1 %6087  ;;  %v3971_v30 = vmul.f32 %v6767_v38, %v9344_v1 }
0x13e1   : > { %v5973_v53 = vpop.permute.xlu0 %5972  ;;  %v4585_v59 = vsel %vm4584_vm3, %v4568_v44, %v5979_v19  ;;  %v4586_v6 = vsel %vm4584_vm3, %v4569_v56, %v5980_v36  ;;  %v3972_v62 = vmul.f32 %v6769_v58, %v9303_v23  ;;  %v10214_v58 = vld [vmem:[#allocation26_spill] sm:$0xff] }
0x13e2   : > { %v5975_v55 = vunpack.i.h.bf16 %v5973_v53  ;;  %v5974_v9 = vunpack.i.l.bf16 %v5973_v53  ;;  %v3980_v60 = vpack.c.bf16 %v3971_v30, %v3970_v61  ;;  %v4602_v34 = vsel %vm4601_vm4, %v4585_v59, %v5989_v20 }
0x13e3   : > { %v6771_v10 = vpop.eup %6770  ;;  %v4603_v24 = vsel %vm4601_vm4, %v4586_v6, %v5990_v13  ;;  %v9545_v47 = vsel %vm4618_vm5, %v4602_v34, %v5999_v43 }
0x13e4   : > { %v3973_v1 = vmul.f32 %v6771_v10, %v9351_v37  ;;  %v4570_v27 = vsel %vm4567_vm2, %v9500_v28, %v5974_v9  ;;  %v4571_v25 = vsel %vm4567_vm2, %v9496_v29, %v5975_v55  ;;  %v9552_v48 = vpop.permute.xlu1 %6097  ;;  %5811 = vmatprep.mubr.bf16.mxu1 %v3980_v60  ;;  %v9555_v40 = vsel %vm4618_vm5, %v4603_v24, %v6000_v0  ;;  %v10215_v24 = vld [vmem:[#allocation27_spill] sm:$0xff] }
0x13e5   : > { %v5983_v4 = vpop.permute.xlu0 %5982 }
0x13e6   : > { %v5985_v23 = vunpack.i.h.bf16 %v5983_v4  ;;  %v5984_v63 = vunpack.i.l.bf16 %v5983_v4  ;;  %v3981_v15 = vpack.c.bf16 %v3973_v1, %v3972_v62  ;;  %v6256_v4 = vld [vmem:[#allocation2] sm:$0xff]  }
0x13e7   : > { %5815 = vmatprep.subr.bf16.mxu0 %v6256_v4 }
0x13e8   : > { %v4587_v17 = vsel %vm4584_vm3, %v4570_v27, %v5984_v63  ;;  %v4588_v37 = vsel %vm4584_vm3, %v4571_v25, %v5985_v23  ;;  %v9559_v39 = vpop.permute.xlu1 %6107  ;;  %5812 = vmatmul.mubr.bf16.vlgmr.msra.gmra.mrb[128].mxu1 %v3981_v15  ;;  %v10216_v27 = vld [vmem:[#allocation25_spill] sm:$0xff]  ;;  %v6257_v23 = vld [vmem:[#allocation2 + $0x8] sm:$0xff]   ;;  %5816 = vmatpush3.bf16.msra.mxu0 %v6256_v4  ;;  %v6258_v63 = vld [vmem:[#allocation2 + $0x10] sm:$0xff]  }
0x13e9   : > { %v5993_v28 = vpop.permute.xlu0 %5992  ;;  %5817 = vmatprep.subr.bf16.mxu0 %v6257_v23  ;;  %v6259_v15 = vld [vmem:[#allocation2 + $0x18] sm:$0xff]   ;;  %v10224_v4 = vld [vmem:[#allocation91_spill] sm:$0xff] }
0x13ea   : > { %v5995_v31 = vunpack.i.h.bf16 %v5993_v28  ;;  %v5994_v29 = vunpack.i.l.bf16 %v5993_v28 }
0x13ec   : > { %v4604_v32 = vsel %vm4601_vm4, %v4587_v17, %v5994_v29  ;;  %v4605_v5 = vsel %vm4601_vm4, %v4588_v37, %v5995_v31  ;;  %v9563_v21 = vpop.permute.xlu1 %6117  ;;  %5818 = vmatpush3.bf16.msra.mxu0 %v6257_v23 }
0x13ed   : > { %v6003_v16 = vpop.permute.xlu0 %6002  ;;  %5819 = vmatprep.subr.bf16.mxu0 %v6258_v63 }
0x13ee   : > { %v6005_v26 = vunpack.i.h.bf16 %v6003_v16  ;;  %v6004_v3 = vunpack.i.l.bf16 %v6003_v16  ;;  %v10217_v16 = vld [vmem:[#allocation77_spill] sm:$0xff] }
0x13f0   : > { %v9566_v2 = vsel %vm4618_vm5, %v4604_v32, %v6004_v3  ;;  %v9569_v36 = vsel %vm4618_vm5, %v4605_v5, %v6005_v26  ;;  %v9571_v61 = vpop.permute.xlu1 %6127  ;;  %5820 = vmatpush3.bf16.msra.mxu0 %v6258_v63  ;;  %v10218_v26 = vld [vmem:[#allocation75_spill] sm:$0xff] }
0x13f1   : > { %v9573_v38 = vpop.permute.xlu0 %6012  ;;  %5821 = vmatprep.subr.bf16.mxu0 %v6259_v15  ;;  %v10219_v3 = vpack.i.bf16 %v10217_v16, %v10218_v26 }
0x13f4   : > { %v6138_v19 = vpop.permute.xlu1 %6137  ;;  %5822 = vmatpush3.bf16.msra.mxu0 %v6259_v15  ;;  %v10226_v15 = vld [vmem:[#allocation94_spill] sm:$0xff] }
0x13f5   : > { %v9575_v13 = vpop.permute.xlu0 %6022  ;;  %v6140_v49 = vunpack.i.h.bf16 %v6138_v19  ;;  %v6139_v54 = vunpack.i.l.bf16 %v6138_v19 }
0x13f7   : > { %v9579_v41 = vsel %vm542_vm1, %v10213_v52, %v6140_v49  ;;  %v9583_v20 = vsel %vm542_vm1, %v10214_v58, %v6139_v54  ;;  %v10220_v49 = vld [vmem:[#allocation78_spill] sm:$0xff]  ;;  %v10221_v54 = vld [vmem:[#allocation76_spill] sm:$0xff] }
0x13f8   : > { %v10222_v52 = vpack.i.bf16 %v10220_v49, %v10221_v54  ;;  %v6020_v54 = vunpack.i.h.bf16 %v9514_v35  ;;  %v6060_v35 = vunpack.i.h.bf16 %v9522_v7 }
0x13f9   : > { %v9585_v44 = vpop.permute.xlu0 %6032 }
0x13fd   : > { %v9587_v56 = vpop.permute.xlu0 %6042 }
0x1401   : > { %v9589_v53 = vpop.permute.xlu0 %6052 }
0x1405   : > { %v9591_v30 = vpop.permute.xlu0 %6062 }
0x1409   : > { %v9593_v0 = vpop.permute.xlu0 %6072 }
0x140d   : > { %v9595_v43 = vpop.permute.xlu0 %6082 }
0x1411   : > { %v9597_v59 = vpop.permute.xlu0 %6092 }
0x1415   : > { %v9599_v6 = vpop.permute.xlu0 %6102 }
0x1419   : > { %v9601_v55 = vpop.permute.xlu0 %6112 }
0x141d   : > { %v9603_v9 = vpop.permute.xlu0 %6122 }
0x1421   : > { %v9605_v60 = vpop.permute.xlu0 %6132 }
0x1425   : > { %v6143_v34 = vpop.permute.xlu0 %6142 }
0x1426   : > { %v6145_v10 = vunpack.i.h.bf16 %v6143_v34  ;;  %v6144_v62 = vunpack.i.l.bf16 %v6143_v34 }
0x1428   : > { %v9609_v1 = vsel %vm542_vm1, %v10215_v24, %v6145_v10  ;;  %v9613_v25 = vsel %vm542_vm1, %v10216_v27, %v6144_v62  ;;  %v10223_v27 = vld [vmem:[#allocation93_spill] sm:$0xff] }
0x1429   : > { %v10225_v23 = vpack.i.bf16 %v10223_v27, %v10224_v4  ;;  %v6069_v4 = vunpack.i.l.bf16 %v9525_v57 }
0x1480   : > { %v5801_v17 = vpop.f32.mrb[144].mxu0 }
0x1481   : > { %v4040_v37 = vpop.f32.mrb[145].mxu0 }
0x1482   : > { %v5802_v28 = vpop.f32.mrb[146].mxu0 }
0x1483   : > { %v6166_v31 = vpack.i.bf16 %v5802_v28, %v5801_v17  ;;  %v4043_v29 = vpop.f32.mrb[147].mxu0  ;;  %v10227_v17 = vld [vmem:[#allocation92_spill] sm:$0xff] }
0x1484   : > { %v6171_v32 = vpack.i.bf16 %v4043_v29, %v4040_v37  ;;  %v10228_v37 = vpack.i.bf16 %v10226_v15, %v10227_v17  ;;  %v9670_v17 = vpop.permute.xlu1 %6147 }
0x1485   : > { %6167 = vrot.lane.b32.xlu0 %v6166_v31, %s6873_s20 }
0x1486   : > { %6172 = vrot.lane.b32.xlu1 %v6171_v32, %s6873_s20 }
0x1488   : > { %v5805_v5 = vpop.f32.mrb[148].mxu0 }
0x1489   : > { %6182 = vrot.lane.b32.xlu0 %v10219_v3, %s6876_s22  ;;  %v4056_v19 = vpop.f32.mrb[149].mxu0 }
0x148a   : > { %6177 = vrot.lane.b32.xlu1 %v10222_v52, %s6876_s22  ;;  %v5806_v58 = vpop.f32.mrb[150].mxu0  ;;  %v6049_v52 = vunpack.i.l.bf16 %v9520_v50 }
0x148b   : > { %v6186_v34 = vpack.i.bf16 %v5806_v58, %v5805_v5  ;;  %v4059_v10 = vpop.f32.mrb[151].mxu0  ;;  %v10229_v58 = vld [vmem:[#allocation20_spill] sm:$0xff] }
0x148c   : > { %v6191_v62 = vpack.i.bf16 %v4059_v10, %v4056_v19  ;;  %v10230_v10 = vld [vmem:[#allocation18_spill] sm:$0xff] }
0x148d   : > { %6187 = vrot.lane.b32.xlu0 %v6186_v34, %s6873_s20  ;;  %v4556_v34 = vsel %vm542_vm1, %v10229_v58, %v6020_v54  ;;  %v6025_v54 = vunpack.i.h.bf16 %v9575_v13  ;;  %v6100_v58 = vunpack.i.h.bf16 %v9552_v48 }
0x148e   : > { %6192 = vrot.lane.b32.xlu1 %v6191_v62, %s6873_s20  ;;  %v4555_v62 = vsel %vm542_vm1, %v10230_v10, %v6019_v11  ;;  %v4573_v27 = vsel %vm4567_vm2, %v4556_v34, %v6030_v33  ;;  %v6024_v11 = vunpack.i.l.bf16 %v9575_v13  ;;  %v10231_v33 = vld [vmem:[#allocation24_spill] sm:$0xff]  ;;  %v9703_v34 = vpop.permute.xlu1 %6157 }
0x148f   : > { %v4590_v15 = vsel %vm4584_vm3, %v4573_v27, %v6040_v14  ;;  %v6035_v14 = vunpack.i.h.bf16 %v9585_v44 }
0x1490   : > { %v5809_v24 = vpop.f32.mrb[152].mxu0 }
0x1491   : > { %6202 = vrot.lane.b32.xlu0 %v10225_v23, %s6874_s21  ;;  %v4072_v63 = vpop.f32.mrb[153].mxu0  ;;  %v9665_v23 = vpop.permute.xlu0 %6152 }
0x1492   : > { %6197 = vrot.lane.b32.xlu1 %v10228_v37, %s6874_s21  ;;  %v5810_v28 = vpop.f32.mrb[154].mxu0  ;;  %s9856_s21 = scalar_lea.vmem %s9898_s5, %s4931_s14 }
0x1493   : > { %v6206_v31 = vpack.i.bf16 %v5810_v28, %v5809_v24  ;;  %v4075_v29 = vpop.f32.mrb[155].mxu0  ;;  %v6059_v24 = vunpack.i.l.bf16 %v9522_v7  ;;  %v6080_v28 = vunpack.i.h.bf16 %v9527_v8 }
0x1494   : > { %v6211_v32 = vpack.i.bf16 %v4075_v29, %v4072_v63 }
0x1495   : > { %6207 = vrot.lane.b32.xlu0 %v6206_v31, %s6873_s20  ;;  %v6079_v31 = vunpack.i.l.bf16 %v9527_v8  ;;  %v6015_v8 = vunpack.i.h.bf16 %v9573_v38 }
0x1496   : > { %6212 = vrot.lane.b32.xlu1 %v6211_v32, %s6873_s20  ;;  %v6090_v32 = vunpack.i.h.bf16 %v9536_v42 }
0x1499   : > { %6222 = vrot.lane.b32.xlu0 %v6221_v46, %s6872_s23  ;;  %v6029_v46 = vunpack.i.l.bf16 %v9516_v18 }
0x149a   : > { %6217 = vrot.lane.b32.xlu1 %v6216_v12, %s6872_s23  ;;  %v6050_v12 = vunpack.i.h.bf16 %v9520_v50  ;;  %v6010_v50 = vunpack.i.h.bf16 %v9512_v22 }
0x149b   : > { %v4572_v18 = vsel %vm4567_vm2, %v4555_v62, %v6029_v46  ;;  %v6110_v62 = vunpack.i.h.bf16 %v9559_v39 }
0x149c   : > { %v4589_v63 = vsel %vm4584_vm3, %v4572_v18, %v6039_v45  ;;  %v4607_v37 = vsel %vm4601_vm4, %v4590_v15, %v6050_v12  ;;  %v6034_v45 = vunpack.i.l.bf16 %v9585_v44  ;;  %v9698_v12 = vpop.permute.xlu0 %6162  ;;  %v4637_v44 = vsel %vm4635_vm6, %v9555_v40, %v6010_v50  ;;  %v10233_v18 = vld [vmem:[#allocation19_spill] sm:$0xff] }
0x149d   : > { %v4606_v7 = vsel %vm4601_vm4, %v4589_v63, %v6049_v52  ;;  %v4624_v29 = vsel %vm4618_vm5, %v4607_v37, %v6060_v35  ;;  %v6109_v35 = vunpack.i.l.bf16 %v9559_v39  ;;  %v4558_v27 = vsel %vm542_vm1, %v10233_v18, %v6025_v54 }
0x149e   : > { %v4623_v57 = vsel %vm4618_vm5, %v4606_v7, %v6059_v24  ;;  %v4575_v63 = vsel %vm4567_vm2, %v4558_v27, %v6035_v14  ;;  %v6045_v39 = vunpack.i.h.bf16 %v9587_v56  ;;  %v6044_v50 = vunpack.i.l.bf16 %v9587_v56 }
0x149f   : > { %v6054_v37 = vunpack.i.l.bf16 %v9589_v53  ;;  %v6074_v56 = vunpack.i.l.bf16 %v9593_v0  ;;  %v6095_v18 = vunpack.i.h.bf16 %v9597_v59 }
0x14bb   : > { %v5813_v5 = vpop.f32.mrb[128].mxu1 }
0x14bc   : > { %v4088_v16 = vpop.f32.mrb[129].mxu1 }
0x14bd   : > { %v5814_v26 = vpop.f32.mrb[130].mxu1 }
0x14be   : > { %v6231_v3 = vpack.i.bf16 %v5814_v26, %v5813_v5  ;;  %v4091_v19 = vpop.f32.mrb[131].mxu1  ;;  %v6089_v5 = vunpack.i.l.bf16 %v9536_v42  ;;  %v9682_v26 = vsel %vm4635_vm6, %v4623_v57, %v6069_v4  ;;  %v4560_v42 = vsel %vm542_vm1, %v10231_v33, %v6080_v28 }
0x14bf   : > { %v6226_v49 = vpack.i.bf16 %v4091_v19, %v4088_v16  ;;  %v6009_v16 = vunpack.i.l.bf16 %v9512_v22  ;;  %v6099_v19 = vunpack.i.l.bf16 %v9552_v48  ;;  %v10232_v22 = vld [vmem:[#allocation22_spill] sm:$0xff]  ;;  %v4639_v48 = vsel %vm4635_vm6, %v9569_v36, %v6015_v8 }
0x14c0   : > { %6232 = vrot.lane.b32.xlu0 %v6231_v3, %s6873_s20  ;;  %v9685_v3 = vsel %vm4635_vm6, %v4624_v29, %v6070_v51  ;;  %v4559_v46 = vsel %vm542_vm1, %v10232_v22, %v6079_v31  ;;  %v10234_v51 = vld [vmem:[#allocation17_spill] sm:$0xff]  ;;  %v6065_v28 = vunpack.i.h.bf16 %v9591_v30  ;;  %v6064_v29 = vunpack.i.l.bf16 %v9591_v30 }
0x14c1   : > { %6227 = vrot.lane.b32.xlu1 %v6226_v49, %s6873_s20  ;;  %v6014_v49 = vunpack.i.l.bf16 %v9573_v38  ;;  %v4576_v52 = vsel %vm4567_vm2, %v4559_v46, %v6089_v5  ;;  %v4577_v38 = vsel %vm4567_vm2, %v4560_v42, %v6090_v32  ;;  %v4636_v13 = vsel %vm4635_vm6, %v9545_v47, %v6009_v16 }
0x14c2   : > { %v4593_v10 = vsel %vm4584_vm3, %v4576_v52, %v6099_v19  ;;  %v4557_v47 = vsel %vm542_vm1, %v10234_v51, %v6024_v11  ;;  %v6075_v32 = vunpack.i.h.bf16 %v9593_v0  ;;  %v4592_v11 = vsel %vm4584_vm3, %v4575_v63, %v6045_v39 }
0x14c3   : > { %v4638_v24 = vsel %vm4635_vm6, %v9566_v2, %v6014_v49  ;;  %v4574_v4 = vsel %vm4567_vm2, %v4557_v47, %v6034_v45  ;;  %v6055_v2 = vunpack.i.h.bf16 %v9589_v53  ;;  %v6085_v30 = vunpack.i.h.bf16 %v9595_v43 }
0x14c4   : > { %v4591_v54 = vsel %vm4584_vm3, %v4574_v4, %v6044_v50  ;;  %v4594_v22 = vsel %vm4584_vm3, %v4577_v38, %v6100_v58  ;;  %v4610_v0 = vsel %vm4601_vm4, %v4593_v10, %v6109_v35  ;;  %v6120_v52 = vunpack.i.h.bf16 %v9563_v21 }
0x14c5   : > { %v4608_v46 = vsel %vm4601_vm4, %v4591_v54, %v6054_v37  ;;  %v4609_v14 = vsel %vm4601_vm4, %v4592_v11, %v6055_v2  ;;  %v4611_v45 = vsel %vm4601_vm4, %v4594_v22, %v6110_v62  ;;  %v6084_v10 = vunpack.i.l.bf16 %v9595_v43  ;;  %v10235_v62 = vld [vmem:[#allocation23_spill] sm:$0xff] }
0x14c6   : > { %v6094_v4 = vunpack.i.l.bf16 %v9597_v59  ;;  %v6115_v43 = vunpack.i.h.bf16 %v9601_v55 }
0x14f7   : > { %v6168_v40 = vpop.permute.xlu0 %6167 }
0x14f8   : > { %v6170_v15 = vunpack.i.h.bf16 %v6168_v40  ;;  %v6169_v36 = vunpack.i.l.bf16 %v6168_v40  ;;  %v6173_v7 = vpop.permute.xlu1 %6172  ;;  %v6104_v40 = vunpack.i.l.bf16 %v9599_v6 }
0x14f9   : > { %v6175_v31 = vunpack.i.h.bf16 %v6173_v7  ;;  %v6174_v57 = vunpack.i.l.bf16 %v6173_v7 }
0x14fa   : > { %v4655_v5 = vsel %vm4652_vm7, %v4638_v24, %v6169_v36  ;;  %v4656_v16 = vsel %vm4652_vm7, %v4639_v48, %v6170_v15  ;;  %v6119_v24 = vunpack.i.l.bf16 %v9563_v21  ;;  %v4562_v48 = vsel %vm542_vm1, %v10235_v62, %v6085_v30 }
0x14fb   : > { %v4670_v19 = vpack.c.bf16 %v4656_v16, %v4655_v5  ;;  %v4653_v8 = vsel %vm4652_vm7, %v4636_v13, %v6174_v57  ;;  %v4654_v49 = vsel %vm4652_vm7, %v4637_v44, %v6175_v31  ;;  %v9734_v53 = vpop.permute.xlu0 %6182  ;;  %v4625_v13 = vsel %vm4618_vm5, %v4608_v46, %v6064_v29 }
0x14fc   : > { %v4669_v33 = vpack.c.bf16 %v4654_v49, %v4653_v8  ;;  %v9739_v42 = vpop.permute.xlu1 %6177  ;;  %v4626_v44 = vsel %vm4618_vm5, %v4609_v14, %v6065_v28  ;;  %v4642_v38 = vsel %vm4635_vm6, %v4625_v13, %v6074_v56  ;;  %v6105_v21 = vunpack.i.h.bf16 %v9599_v6  ;;  %v10236_v28 = vld [vmem:[#allocation21_spill] sm:$0xff] }
0x14fd   : > { %v4643_v58 = vsel %vm4635_vm6, %v4626_v44, %v6075_v32  ;;  %v6114_v15 = vunpack.i.l.bf16 %v9601_v55  ;;  %v4561_v6 = vsel %vm542_vm1, %v10236_v28, %v6084_v10  ;;  %v6125_v31 = vunpack.i.h.bf16 %v9603_v9 }
0x14fe   : > { %5823 = vmatprep.mubr.msk.bf16.mxu0 %vm348_vm0, %v4669_v33  ;;  %v6124_v57 = vunpack.i.l.bf16 %v9603_v9  ;;  %v4578_v55 = vsel %vm4567_vm2, %v4561_v6, %v6094_v4  ;;  %v4579_v5 = vsel %vm4567_vm2, %v4562_v48, %v6095_v18  ;;  %v6130_v16 = vunpack.i.h.bf16 %v9571_v61 }
0x14ff   : > { %v6188_v35 = vpop.permute.xlu0 %6187  ;;  %5824 = vmatmul.mubr.msk.bf16.vlgmr.msra.gmra.mrb[156].mxu0 %vm348_vm0, %v4670_v19  ;;  %v6129_v56 = vunpack.i.l.bf16 %v9571_v61  ;;  %v4595_v19 = vsel %vm4584_vm3, %v4578_v55, %v6104_v40  ;;  %v4596_v8 = vsel %vm4584_vm3, %v4579_v5, %v6105_v21  ;;  %v4627_v9 = vsel %vm4618_vm5, %v4610_v0, %v6119_v24 }
0x1500   : > { %v6190_v27 = vunpack.i.h.bf16 %v6188_v35  ;;  %v6189_v51 = vunpack.i.l.bf16 %v6188_v35  ;;  %v6193_v47 = vpop.permute.xlu1 %6192  ;;  %v4628_v49 = vsel %vm4618_vm5, %v4611_v45, %v6120_v52  ;;  %v4612_v54 = vsel %vm4601_vm4, %v4595_v19, %v6114_v15 }
0x1501   : > { %v6195_v63 = vunpack.i.h.bf16 %v6193_v47  ;;  %v6194_v39 = vunpack.i.l.bf16 %v6193_v47  ;;  %v4613_v11 = vsel %vm4601_vm4, %v4596_v8, %v6115_v43  ;;  %v4644_v52 = vsel %vm4635_vm6, %v4627_v9, %v6129_v56 }
0x1502   : > { %v4660_v50 = vsel %vm4652_vm7, %v4643_v58, %v6190_v27  ;;  %v4659_v2 = vsel %vm4652_vm7, %v4642_v38, %v6189_v51  ;;  %v4630_v61 = vsel %vm4618_vm5, %v4613_v11, %v6125_v31  ;;  %v4645_v44 = vsel %vm4635_vm6, %v4628_v49, %v6130_v16 }
0x1503   : > { %v4672_v36 = vpack.c.bf16 %v4660_v50, %v4659_v2  ;;  %v4657_v7 = vsel %vm4652_vm7, %v9682_v26, %v6194_v39  ;;  %v4658_v59 = vsel %vm4652_vm7, %v9685_v3, %v6195_v63  ;;  %v9769_v37 = vpop.permute.xlu0 %6202  ;;  %v6135_v26 = vunpack.i.h.bf16 %v9605_v60 }
0x1504   : > { %v4671_v29 = vpack.c.bf16 %v4658_v59, %v4657_v7  ;;  %v9775_v32 = vpop.permute.xlu1 %6197  ;;  %v6134_v3 = vunpack.i.l.bf16 %v9605_v60  ;;  %v4629_v60 = vsel %vm4618_vm5, %v4612_v54, %v6124_v57  ;;  %v6150_v48 = vunpack.i.h.bf16 %v9670_v17 }
0x1505   : > { %v4647_v0 = vsel %vm4635_vm6, %v4630_v61, %v6135_v26  ;;  %v6149_v18 = vunpack.i.l.bf16 %v9670_v17  ;;  %v6160_v27 = vunpack.i.h.bf16 %v9703_v34  ;;  %v6159_v51 = vunpack.i.l.bf16 %v9703_v34 }
0x1506   : > { %5827 = vmatprep.mubr.msk.bf16.mxu0 %vm348_vm0, %v4671_v29  ;;  %v4646_v14 = vsel %vm4635_vm6, %v4629_v60, %v6134_v3  ;;  %v6155_v47 = vunpack.i.h.bf16 %v9665_v23  ;;  %v6154_v4 = vunpack.i.l.bf16 %v9665_v23  ;;  %v4581_v63 = vsel %vm4567_vm2, %v9579_v41, %v6150_v48 }
0x1507   : > { %v6208_v30 = vpop.permute.xlu0 %6207  ;;  %5828 = vmatmul.mubr.msk.bf16.gmra.mrb[160].mxu0 %vm348_vm0, %v4672_v36  ;;  %v4580_v21 = vsel %vm4567_vm2, %v9583_v20, %v6149_v18  ;;  %v6165_v39 = vunpack.i.h.bf16 %v9698_v12  ;;  %v6164_v40 = vunpack.i.l.bf16 %v9698_v12  ;;  %v4598_v43 = vsel %vm4584_vm3, %v4581_v63, %v6160_v27 }
0x1508   : > { %v6210_v33 = vunpack.i.h.bf16 %v6208_v30  ;;  %v6209_v22 = vunpack.i.l.bf16 %v6208_v30  ;;  %v6213_v46 = vpop.permute.xlu1 %6212  ;;  %v4597_v17 = vsel %vm4584_vm3, %v4580_v21, %v6159_v51  ;;  %v6185_v34 = vunpack.i.h.bf16 %v9734_v53 }
0x1509   : > { %v6215_v13 = vunpack.i.h.bf16 %v6213_v46  ;;  %v6214_v45 = vunpack.i.l.bf16 %v6213_v46  ;;  %v6184_v50 = vunpack.i.l.bf16 %v9734_v53  ;;  %v6180_v23 = vunpack.i.h.bf16 %v9739_v42 }
0x150a   : > { %v4664_v24 = vsel %vm4652_vm7, %v4647_v0, %v6210_v33  ;;  %v4663_v38 = vsel %vm4652_vm7, %v4646_v14, %v6209_v22  ;;  %v6179_v20 = vunpack.i.l.bf16 %v9739_v42  ;;  %v6205_v15 = vunpack.i.h.bf16 %v9769_v37 }
0x150b   : > { %v4674_v58 = vpack.c.bf16 %v4664_v24, %v4663_v38  ;;  %v4661_v10 = vsel %vm4652_vm7, %v4644_v52, %v6214_v45  ;;  %v4662_v35 = vsel %vm4652_vm7, %v4645_v44, %v6215_v13  ;;  %v6223_v2 = vpop.permute.xlu0 %6222  ;;  %v6204_v41 = vunpack.i.l.bf16 %v9769_v37  ;;  %v5020_v13 = vld [vmem:[%s9896_s3] ss:$0 sm:$0xff] }
0x150c   : > { %v4673_v62 = vpack.c.bf16 %v4662_v35, %v4661_v10  ;;  %v6218_v36 = vpop.permute.xlu1 %6217  ;;  %v4582_v12 = vsel %vm4567_vm2, %v9613_v25, %v6154_v4  ;;  %v4583_v7 = vsel %vm4567_vm2, %v9609_v1, %v6155_v47  ;;  %v6200_v59 = vunpack.i.h.bf16 %v9775_v32 }
0x150d   : > { %v6199_v53 = vunpack.i.l.bf16 %v9775_v32  ;;  %v4599_v28 = vsel %vm4584_vm3, %v4582_v12, %v6164_v40  ;;  %v4600_v6 = vsel %vm4584_vm3, %v4583_v7, %v6165_v39  ;;  %v6225_v42 = vunpack.i.h.bf16 %v6223_v2 }
0x150e   : > { %5831 = vmatprep.mubr.msk.bf16.mxu0 %vm348_vm0, %v4673_v62  ;;  %v6224_v31 = vunpack.i.l.bf16 %v6223_v2  ;;  %v4617_v57 = vsel %vm4601_vm4, %v4600_v6, %v6185_v34  ;;  %v4616_v37 = vsel %vm4601_vm4, %v4599_v28, %v6184_v50  ;;  %v6220_v29 = vunpack.i.h.bf16 %v6218_v36 }
0x150f   : > { %5832 = vmatmul.mubr.msk.bf16.gmra.mrb[164].mxu0 %vm348_vm0, %v4674_v58  ;;  %v6219_v55 = vunpack.i.l.bf16 %v6218_v36  ;;  %v4614_v25 = vsel %vm4601_vm4, %v4597_v17, %v6179_v20  ;;  %v4615_v1 = vsel %vm4601_vm4, %v4598_v43, %v6180_v23  ;;  %v4634_v5 = vsel %vm4618_vm5, %v4617_v57, %v6205_v15 }
0x1510   : > { %v4633_v32 = vsel %vm4618_vm5, %v4616_v37, %v6204_v41  ;;  %v4631_v3 = vsel %vm4618_vm5, %v4614_v25, %v6199_v53  ;;  %v4632_v16 = vsel %vm4618_vm5, %v4615_v1, %v6200_v59  ;;  %v4651_v9 = vsel %vm4635_vm6, %v4634_v5, %v6225_v42 }
0x1511   : > { %v4650_v49 = vsel %vm4635_vm6, %v4633_v32, %v6224_v31  ;;  %v4648_v30 = vsel %vm4635_vm6, %v4631_v3, %v6219_v55  ;;  %v4649_v60 = vsel %vm4635_vm6, %v4632_v16, %v6220_v29 }
0x1532   : > { %v6233_v26 = vpop.permute.xlu0 %6232 }
0x1533   : > { %v6235_v56 = vunpack.i.h.bf16 %v6233_v26  ;;  %v6234_v19 = vunpack.i.l.bf16 %v6233_v26  ;;  %v6228_v8 = vpop.permute.xlu1 %6227 }
0x1534   : > { %v6230_v54 = vunpack.i.h.bf16 %v6228_v8  ;;  %v6229_v11 = vunpack.i.l.bf16 %v6228_v8 }
0x1535   : > { %v4667_v61 = vsel %vm4652_vm7, %v4650_v49, %v6234_v19  ;;  %v4668_v33 = vsel %vm4652_vm7, %v4651_v9, %v6235_v56 }
0x1536   : > { %v4676_v22 = vpack.c.bf16 %v4668_v33, %v4667_v61  ;;  %v4665_v46 = vsel %vm4652_vm7, %v4648_v30, %v6229_v11  ;;  %v4666_v14 = vsel %vm4652_vm7, %v4649_v60, %v6230_v54 }
0x1537   : > { %v4675_v0 = vpack.c.bf16 %v4666_v14, %v4665_v46 }
0x1539   : > { %5835 = vmatprep.mubr.msk.bf16.mxu0 %vm348_vm0, %v4675_v0 }
0x153a   : > { %5836 = vmatmul.mubr.msk.bf16.gmra.mrb[168].mxu0 %vm348_vm0, %v4676_v22 }
0x15d2   : > { %v5825_v45 = vpop.f32.mrb[156].mxu0 }
0x15d3   : > { %v4783_v52 = vadd.f32 %v5825_v45, %v5020_v13  ;;  %v4774_v44 = vpop.f32.mrb[157].mxu0 }
0x15d4   : > { %v4775_v24 = vadd.f32 %v5020_v13, %v4774_v44  ;;  %v5826_v38 = vpop.f32.mrb[158].mxu0 }
0x15d5   : > { %4839 = vst.msk [vmem:[%s9856_s21 + $0x10] sm:$0xff] %vm348_vm0, %v4783_v52  ;;  %v4786_v58 = vadd.f32 %v5826_v38, %v5020_v13  ;;  %v4777_v10 = vpop.f32.mrb[159].mxu0 }
0x15d6   : > { %4837 = vst.msk [vmem:[%s9856_s21] sm:$0xff] %vm348_vm0, %v4775_v24  ;;  %v4778_v35 = vadd.f32 %v5020_v13, %v4777_v10 }
0x15d7   : > { %4840 = vst.msk [vmem:[%s9856_s21 + $0x18] sm:$0xff] %vm348_vm0, %v4786_v58 }
0x15d8   : > { %4838 = vst.msk [vmem:[%s9856_s21 + $0x8] sm:$0xff] %vm348_vm0, %v4778_v35 }
0x15da   : > { %v5829_v62 = vpop.f32.mrb[160].mxu0 }
0x15db   : > { %v4799_v48 = vadd.f32 %v5829_v62, %v5020_v13  ;;  %v4790_v18 = vpop.f32.mrb[161].mxu0 }
0x15dc   : > { %v4791_v27 = vadd.f32 %v5020_v13, %v4790_v18  ;;  %v5830_v51 = vpop.f32.mrb[162].mxu0 }
0x15dd   : > { %4843 = vst.msk [vmem:[%s9856_s21 + $0x30] sm:$0xff] %vm348_vm0, %v4799_v48  ;;  %v4802_v47 = vadd.f32 %v5830_v51, %v5020_v13  ;;  %v4793_v4 = vpop.f32.mrb[163].mxu0 }
0x15de   : > { %4841 = vst.msk [vmem:[%s9856_s21 + $0x20] sm:$0xff] %vm348_vm0, %v4791_v27  ;;  %v4794_v21 = vadd.f32 %v5020_v13, %v4793_v4 }
0x15df   : > { %4844 = vst.msk [vmem:[%s9856_s21 + $0x38] sm:$0xff] %vm348_vm0, %v4802_v47 }
0x15e0   : > { %4842 = vst.msk [vmem:[%s9856_s21 + $0x28] sm:$0xff] %vm348_vm0, %v4794_v21 }
0x15e2   : > { %v5833_v63 = vpop.f32.mrb[164].mxu0 }
0x15e3   : > { %v4815_v39 = vadd.f32 %v5833_v63, %v5020_v13  ;;  %v4806_v40 = vpop.f32.mrb[165].mxu0 }
0x15e4   : > { %v4807_v17 = vadd.f32 %v5020_v13, %v4806_v40  ;;  %v5834_v43 = vpop.f32.mrb[166].mxu0 }
0x15e5   : > { %4847 = vst.msk [vmem:[%s9856_s21 + $0x50] sm:$0xff] %vm348_vm0, %v4815_v39  ;;  %v4818_v34 = vadd.f32 %v5834_v43, %v5020_v13  ;;  %v4809_v50 = vpop.f32.mrb[167].mxu0 }
0x15e6   : > { %4845 = vst.msk [vmem:[%s9856_s21 + $0x40] sm:$0xff] %vm348_vm0, %v4807_v17  ;;  %v4810_v2 = vadd.f32 %v5020_v13, %v4809_v50 }
0x15e7   : > { %4848 = vst.msk [vmem:[%s9856_s21 + $0x58] sm:$0xff] %vm348_vm0, %v4818_v34 }
0x15e8   : > { %4846 = vst.msk [vmem:[%s9856_s21 + $0x48] sm:$0xff] %vm348_vm0, %v4810_v2 }
0x160d   : > { %v5837_v23 = vpop.f32.mrb[168].mxu0 }
0x160e   : > { %v4831_v20 = vadd.f32 %v5837_v23, %v5020_v13  ;;  %v4822_v15 = vpop.f32.mrb[169].mxu0 }
0x160f   : > { %v4823_v41 = vadd.f32 %v5020_v13, %v4822_v15  ;;  %v5838_v36 = vpop.f32.mrb[170].mxu0 }
0x1610   : > { %4851 = vst.msk [vmem:[%s9856_s21 + $0x70] sm:$0xff] %vm348_vm0, %v4831_v20  ;;  %v4834_v12 = vadd.f32 %v5838_v36, %v5020_v13  ;;  %v4825_v7 = vpop.f32.mrb[171].mxu0 }
0x1611   : > { %4849 = vst.msk [vmem:[%s9856_s21 + $0x60] sm:$0xff] %vm348_vm0, %v4823_v41  ;;  %v4826_v59 = vadd.f32 %v5020_v13, %v4825_v7 }
0x1612   : > { %4852 = vst.msk [vmem:[%s9856_s21 + $0x78] sm:$0xff] %vm348_vm0, %v4834_v12 }
0x1613   : > { %4850 = vst.msk [vmem:[%s9856_s21 + $0x68] sm:$0xff] %vm348_vm0, %v4826_v59 }
0x1614 PF: > { %s16_s18 = sadd.s32 1, %s6858_s18  }
0x1615   : > { %p13_p3 = scmp.ge.s32.totalorder %s16_s18, 4  }
0x1617   :  { %15 = sbr.rel (!%p13_p3) target bundleno = 1 (0x1), region = 75 }
0x161e   :  { %4875 = vsyncpa [#allocation3], 1 }
0x161f   :  { %4877 = vsyncpa [#allocation3 + $0x1], 1 }

</bundles_post_ra>
